<compile_context>
chip_gen: v7x
topology: tpu7x:2x2x1
jax: 0.10.0
libtpu: 0.0.40
codegen_flags: <defaults>
</compile_context>

<pallas_src>
import functools

import jax
import jax.numpy as jnp
import numpy as np
from jax.experimental import pallas as pl
from jax.experimental.pallas import tpu as pltpu

NEG_SLOPE = 0.01   # torch F.leaky_relu default
OUT_PAD = 128      # lane-dense output slab width


def _leaky(x):
    return jnp.where(x >= 0, x, NEG_SLOPE * x)


def _sigmoid(x):
    return 1.0 / (1.0 + jnp.exp(-x))


def _dot(a, b):
    return jnp.dot(a, b, preferred_element_type=jnp.float32)


# ---------------------------------------------------------------------------
# Shared math: used verbatim inside the Pallas kernel (per batch tile) and as
# the pure-JAX reference (full batch), so numerics are checked 1:1.
# ---------------------------------------------------------------------------
def _forward(x, mask, params, sum_scale, epic_layers):
    (wl1, bl1, wg1, bg1, wg2, bg2, wg3a, wg3b, bg3,
     wg4, bg4, wg5, bg5, wout, bout,
     ctx_w, ctx_b, g1_w, g1_b, b1_w, g2_w, g2_b, b2_w,
     loc_w, loc_b, hg_w, hg_b, hb_w) = params

    B, N, F = x.shape
    H = wl1.shape[1]

    # ---- local embedding -----------------------------------------------
    x_local = _leaky(_dot(x.reshape(B * N, F), wl1) + bl1).reshape(B, N, H)

    # ---- masked pooling of the raw input --------------------------------
    xm = x * mask                                   # x = x * mask
    mask_sum = mask.sum(axis=1)                     # (B, 1)
    # TODO(synk): mask rows that are all zero divide by zero (same as torch).
    inv_mask_sum = 1.0 / mask_sum
    x_sum = (xm * mask).sum(axis=1)                 # (B, F)
    x_mean = x_sum * inv_mask_sum
    x_sum_s = x_sum * sum_scale
    xg_mean = _dot(x_mean, wg1) + bg1               # fc_g1  (B, LAT)
    xg_sum = _dot(x_sum_s, wg2) + bg2               # fc_g2  (B, LAT)
    # fc_g3(cat([x_mean, x_sum], -1)) as split-weight partial dots:
    x_global = _leaky(_dot(xg_mean, wg3a) + _dot(xg_sum, wg3b) + bg3)

    # ---- EPiC ConcatSquash layers with residuals -------------------------
    for l in range(epic_layers):
        xl_m = x_local * mask                       # (B, N, H)
        p_sum = (xl_m * mask).sum(axis=1)           # (B, H)
        p_mean = p_sum * inv_mask_sum
        p_sum_s = p_sum * sum_scale

        # _layer_ctx = ConcatSquashLinear_2inputs(ctx1=x_sum, ctx2=x_mean, x=ctx)
        gate1 = _sigmoid(_dot(p_sum_s, g1_w[l]) + g1_b[l])
        bias1 = _dot(p_sum_s, b1_w[l])
        gate2 = _sigmoid(_dot(p_mean, g2_w[l]) + g2_b[l])
        bias2 = _dot(p_mean, b2_w[l])
        ctx_new = (_dot(x_global, ctx_w[l]) + ctx_b[l]) * gate1 * gate2 + bias1 + bias2

        # self.layer = ConcatSquashLinear(ctx=ctx_new, x=masked locals)
        gate = _sigmoid(_dot(ctx_new, hg_w[l]) + hg_b[l])     # (B, H)
        hbias = _dot(ctx_new, hb_w[l])                        # (B, H)
        loc = (_dot(xl_m.reshape(B * N, H), loc_w[l]) + loc_b[l]).reshape(B, N, H)
        x_local_new = loc * gate[:, None, :] + hbias[:, None, :]

        # residual connections + activation (outer forward)
        x_global = _leaky(ctx_new + x_global)
        x_local = _leaky(x_local_new + x_local)

    # ---- head -------------------------------------------------------------
    g4 = _leaky(_dot(x_global, wg4) + bg4)
    g5 = _leaky(_dot(g4, wg5) + bg5 + g4)
    return _dot(g5, wout) + bout                    # (B, 1)


# ---------------------------------------------------------------------------
# Pallas kernel (one batch tile per grid step)
# ---------------------------------------------------------------------------
def _epic_kernel(sum_scale, epic_layers, *refs):
    *in_refs, out_ref = refs
    x = in_refs[0][...]
    mask = in_refs[1][...]
    params = tuple(r[...] for r in in_refs[2:])
    res = _forward(x, mask, params, sum_scale, epic_layers)       # (TB, 1)
    # Lane-dense store: replicate the per-event scalar across 128 lanes so the
    # store is an unmasked full-lane vst; the wrapper slices lane 0.
    out_ref[...] = jnp.broadcast_to(res, (res.shape[0], OUT_PAD))


def _cost_estimate(b, n, f, h, lat, epic_layers, params):
    per_b = 2 * n * f * h                        # fc_l1
    per_b += 2 * 2 * f * lat                     # fc_g1, fc_g2
    per_b += 2 * (2 * lat) * lat                 # fc_g3 (split dots)
    per_layer = (4 * 2 * h * lat                 # gates/biases from pooled locals
                 + 2 * lat * lat                 # ctx _layer
                 + 2 * 2 * lat * h               # hyper gate/bias of local layer
                 + 2 * n * h * h)                # local _layer
    per_b += epic_layers * per_layer
    per_b += 2 * lat * h + 2 * h * h + 2 * h     # fc_g4, fc_g5, out
    flops = int(b * per_b)
    transcendentals = int(b * epic_layers * (2 * lat + h))
    param_bytes = sum(int(np.prod(p.shape)) * 4 for p in params)
    bytes_accessed = int((b * n * f + b * n + b * OUT_PAD) * 4 + param_bytes)
    return pl.CostEstimate(flops=flops, transcendentals=transcendentals,
                           bytes_accessed=bytes_accessed)


def epic_discriminator(params, x, mask, *, sum_scale, epic_layers, batch_tile=8):
    B, N, F = x.shape
    H = params[0].shape[1]
    LAT = params[2].shape[1]

    TB = max(8, batch_tile - batch_tile % 8)     # keep second-minor store dim 8-aligned
    n_tiles = pl.cdiv(B, TB)
    B_pad = n_tiles * TB
    if B_pad != B:
        pad = B_pad - B
        x = jnp.concatenate([x, jnp.zeros((pad, N, F), x.dtype)], axis=0)
        # padded events get a full mask so mask.sum() != 0; results are sliced off
        mask = jnp.concatenate([mask, jnp.ones((pad, N, 1), mask.dtype)], axis=0)

    kernel = functools.partial(_epic_kernel, sum_scale, epic_layers)

    def const_map(rank):
        zeros = (0,) * rank
        return lambda i: zeros

    in_specs = [
        pl.BlockSpec((TB, N, F), lambda i: (i, 0, 0)),
        pl.BlockSpec((TB, N, 1), lambda i: (i, 0, 0)),
    ] + [pl.BlockSpec(p.shape, const_map(p.ndim)) for p in params]

    out = pl.pallas_call(
        kernel,
        out_shape=jax.ShapeDtypeStruct((B_pad, OUT_PAD), jnp.float32),
        grid=(n_tiles,),
        in_specs=in_specs,
        out_specs=pl.BlockSpec((TB, OUT_PAD), lambda i: (i, 0)),
        compiler_params=pltpu.CompilerParams(
            dimension_semantics=("parallel",),        # megacore sharding on v7x
            vmem_limit_bytes=32 * 1024 * 1024),
        cost_estimate=_cost_estimate(B_pad, N, F, H, LAT, epic_layers, params),
    )(x, mask, *params)

    return out[:B, :1].reshape(B, 1, 1)              # same shape as torch output


# ---------------------------------------------------------------------------
# Deterministic parameter initialization (weight_norm folded into plain dense)
# ---------------------------------------------------------------------------
def init_params(key, feats, hid_d, latent, epic_layers):
    keys = iter(jax.random.split(key, 128))

    def lin(i, o):
        w = (jax.random.normal(next(keys), (i, o), jnp.float32)
             / jnp.sqrt(jnp.float32(i)))
        b = jax.random.normal(next(keys), (1, o), jnp.float32) * 0.01
        return w, b

    def lin_nb(i, o):
        return (jax.random.normal(next(keys), (i, o), jnp.float32)
                / jnp.sqrt(jnp.float32(i)))

    wl1, bl1 = lin(feats, hid_d)
    wg1, bg1 = lin(feats, latent)          # see NOTE at top (feats == hid_d in torch)
    wg2, bg2 = lin(feats, latent)
    wg3, bg3 = lin(2 * latent, latent)
    wg3a, wg3b = wg3[:latent], wg3[latent:]          # split-weight (no lane concat)
    wg4, bg4 = lin(latent, hid_d)
    wg5, bg5 = lin(hid_d, hid_d)
    wout, bout = lin(hid_d, 1)

    ctx_w, ctx_b = [], []
    g1_w, g1_b, b1_w = [], [], []
    g2_w, g2_b, b2_w = [], [], []
    loc_w, loc_b = [], []
    hg_w, hg_b, hb_w = [], [], []
    for _ in range(epic_layers):
        w, b = lin(latent, latent); ctx_w.append(w); ctx_b.append(b)
        w, b = lin(hid_d, latent);  g1_w.append(w);  g1_b.append(b)
        b1_w.append(lin_nb(hid_d, latent))
        w, b = lin(hid_d, latent);  g2_w.append(w);  g2_b.append(b)
        b2_w.append(lin_nb(hid_d, latent))
        w, b = lin(hid_d, hid_d);   loc_w.append(w); loc_b.append(b)
        w, b = lin(latent, hid_d);  hg_w.append(w);  hg_b.append(b)
        hb_w.append(lin_nb(latent, hid_d))

    st = jnp.stack
    return [wl1, bl1, wg1, bg1, wg2, bg2, wg3a, wg3b, bg3,
            wg4, bg4, wg5, bg5, wout, bout,
            st(ctx_w), st(ctx_b), st(g1_w), st(g1_b), st(b1_w),
            st(g2_w), st(g2_b), st(b2_w),
            st(loc_w), st(loc_b), st(hg_w), st(hg_b), st(hb_w)]


if __name__ == "__main__":
    # Small config consistent with the module's args (feats == hid_d, see NOTE).
    B, N = 12, 32
    FEATS = HID_D = 32
    LATENT = 16
    EPIC_LAYERS = 2
    SUM_SCALE = 1e-2

    key = jax.random.PRNGKey(0)
    kx, km, kp = jax.random.split(key, 3)

    x = jax.random.normal(kx, (B, N, FEATS), jnp.float32)
    # Variable-length point clouds: at least 4 valid points per event.
    lengths = 4 + jax.random.randint(km, (B,), 0, N - 3)
    mask = (jnp.arange(N)[None, :] < lengths[:, None]).astype(jnp.float32)[..., None]

    params = init_params(kp, FEATS, HID_D, LATENT, EPIC_LAYERS)

    out = epic_discriminator(params, x, mask,
                             sum_scale=SUM_SCALE, epic_layers=EPIC_LAYERS,
                             batch_tile=8)
    out = jax.block_until_ready(out)

    # Pure-JAX reference (identical math, outside Pallas) for correctness.
    ref = _forward(x, mask, tuple(params), SUM_SCALE, EPIC_LAYERS)   # (B, 1)
    np.testing.assert_allclose(np.asarray(out).reshape(B, 1), np.asarray(ref),
                               rtol=1e-4, atol=1e-4)

    print("KERNEL_OK")
</pallas_src>

<mosaic_0001>
module attributes {stable_mosaic.version = 11 : i64} {
  func.func @_epic_kernel(%arg0: i32, %arg1: memref<8x32x32xf32, #tpu.memory_space<vmem>>, %arg2: memref<8x32x1xf32, #tpu.memory_space<vmem>>, %arg3: memref<32x32xf32, #tpu.memory_space<vmem>>, %arg4: memref<1x32xf32, #tpu.memory_space<vmem>>, %arg5: memref<32x16xf32, #tpu.memory_space<vmem>>, %arg6: memref<1x16xf32, #tpu.memory_space<vmem>>, %arg7: memref<32x16xf32, #tpu.memory_space<vmem>>, %arg8: memref<1x16xf32, #tpu.memory_space<vmem>>, %arg9: memref<16x16xf32, #tpu.memory_space<vmem>>, %arg10: memref<16x16xf32, #tpu.memory_space<vmem>>, %arg11: memref<1x16xf32, #tpu.memory_space<vmem>>, %arg12: memref<16x32xf32, #tpu.memory_space<vmem>>, %arg13: memref<1x32xf32, #tpu.memory_space<vmem>>, %arg14: memref<32x32xf32, #tpu.memory_space<vmem>>, %arg15: memref<1x32xf32, #tpu.memory_space<vmem>>, %arg16: memref<32x1xf32, #tpu.memory_space<vmem>>, %arg17: memref<1x1xf32, #tpu.memory_space<vmem>>, %arg18: memref<2x16x16xf32, #tpu.memory_space<vmem>>, %arg19: memref<2x1x16xf32, #tpu.memory_space<vmem>>, %arg20: memref<2x32x16xf32, #tpu.memory_space<vmem>>, %arg21: memref<2x1x16xf32, #tpu.memory_space<vmem>>, %arg22: memref<2x32x16xf32, #tpu.memory_space<vmem>>, %arg23: memref<2x32x16xf32, #tpu.memory_space<vmem>>, %arg24: memref<2x1x16xf32, #tpu.memory_space<vmem>>, %arg25: memref<2x32x16xf32, #tpu.memory_space<vmem>>, %arg26: memref<2x32x32xf32, #tpu.memory_space<vmem>>, %arg27: memref<2x1x32xf32, #tpu.memory_space<vmem>>, %arg28: memref<2x16x32xf32, #tpu.memory_space<vmem>>, %arg29: memref<2x1x32xf32, #tpu.memory_space<vmem>>, %arg30: memref<2x16x32xf32, #tpu.memory_space<vmem>>, %arg31: memref<8x128xf32, #tpu.memory_space<vmem>>) attributes {dimension_semantics = [#tpu.dimension_semantics<parallel>], iteration_bounds = array<i64: 2>, scalar_prefetch = 0 : i64, scratch_operands = 0 : i64, tpu.core_type = #tpu.core_type<tc>, window_params = [{transform_indices = @transform_0, window_bounds = array<i64: 8, 32, 32>}, {transform_indices = @transform_1, window_bounds = array<i64: 8, 32, 1>}, {pipeline_mode = #tpu.pipeline_mode<synchronous>, transform_indices = @transform_2, window_bounds = array<i64: 32, 32>}, {pipeline_mode = #tpu.pipeline_mode<synchronous>, transform_indices = @transform_3, window_bounds = array<i64: 1, 32>}, {pipeline_mode = #tpu.pipeline_mode<synchronous>, transform_indices = @transform_4, window_bounds = array<i64: 32, 16>}, {pipeline_mode = #tpu.pipeline_mode<synchronous>, transform_indices = @transform_5, window_bounds = array<i64: 1, 16>}, {pipeline_mode = #tpu.pipeline_mode<synchronous>, transform_indices = @transform_6, window_bounds = array<i64: 32, 16>}, {pipeline_mode = #tpu.pipeline_mode<synchronous>, transform_indices = @transform_7, window_bounds = array<i64: 1, 16>}, {pipeline_mode = #tpu.pipeline_mode<synchronous>, transform_indices = @transform_8, window_bounds = array<i64: 16, 16>}, {pipeline_mode = #tpu.pipeline_mode<synchronous>, transform_indices = @transform_9, window_bounds = array<i64: 16, 16>}, {pipeline_mode = #tpu.pipeline_mode<synchronous>, transform_indices = @transform_10, window_bounds = array<i64: 1, 16>}, {pipeline_mode = #tpu.pipeline_mode<synchronous>, transform_indices = @transform_11, window_bounds = array<i64: 16, 32>}, {pipeline_mode = #tpu.pipeline_mode<synchronous>, transform_indices = @transform_12, window_bounds = array<i64: 1, 32>}, {pipeline_mode = #tpu.pipeline_mode<synchronous>, transform_indices = @transform_13, window_bounds = array<i64: 32, 32>}, {pipeline_mode = #tpu.pipeline_mode<synchronous>, transform_indices = @transform_14, window_bounds = array<i64: 1, 32>}, {pipeline_mode = #tpu.pipeline_mode<synchronous>, transform_indices = @transform_15, window_bounds = array<i64: 32, 1>}, {pipeline_mode = #tpu.pipeline_mode<synchronous>, transform_indices = @transform_16, window_bounds = array<i64: 1, 1>}, {pipeline_mode = #tpu.pipeline_mode<synchronous>, transform_indices = @transform_17, window_bounds = array<i64: 2, 16, 16>}, {pipeline_mode = #tpu.pipeline_mode<synchronous>, transform_indices = @transform_18, window_bounds = array<i64: 2, 1, 16>}, {pipeline_mode = #tpu.pipeline_mode<synchronous>, transform_indices = @transform_19, window_bounds = array<i64: 2, 32, 16>}, {pipeline_mode = #tpu.pipeline_mode<synchronous>, transform_indices = @transform_20, window_bounds = array<i64: 2, 1, 16>}, {pipeline_mode = #tpu.pipeline_mode<synchronous>, transform_indices = @transform_21, window_bounds = array<i64: 2, 32, 16>}, {pipeline_mode = #tpu.pipeline_mode<synchronous>, transform_indices = @transform_22, window_bounds = array<i64: 2, 32, 16>}, {pipeline_mode = #tpu.pipeline_mode<synchronous>, transform_indices = @transform_23, window_bounds = array<i64: 2, 1, 16>}, {pipeline_mode = #tpu.pipeline_mode<synchronous>, transform_indices = @transform_24, window_bounds = array<i64: 2, 32, 16>}, {pipeline_mode = #tpu.pipeline_mode<synchronous>, transform_indices = @transform_25, window_bounds = array<i64: 2, 32, 32>}, {pipeline_mode = #tpu.pipeline_mode<synchronous>, transform_indices = @transform_26, window_bounds = array<i64: 2, 1, 32>}, {pipeline_mode = #tpu.pipeline_mode<synchronous>, transform_indices = @transform_27, window_bounds = array<i64: 2, 16, 32>}, {pipeline_mode = #tpu.pipeline_mode<synchronous>, transform_indices = @transform_28, window_bounds = array<i64: 2, 1, 32>}, {pipeline_mode = #tpu.pipeline_mode<synchronous>, transform_indices = @transform_29, window_bounds = array<i64: 2, 16, 32>}, {transform_indices = @transform_30, window_bounds = array<i64: 8, 128>}]} {
    %c0 = arith.constant 0 : index
    %c0_0 = arith.constant 0 : index
    %c0_1 = arith.constant 0 : index
    %0 = vector.load %arg1[%c0, %c0_0, %c0_1] : memref<8x32x32xf32, #tpu.memory_space<vmem>>, vector<8x32x32xf32>
    %c0_2 = arith.constant 0 : index
    %c0_3 = arith.constant 0 : index
    %c0_4 = arith.constant 0 : index
    %1 = vector.load %arg2[%c0_2, %c0_3, %c0_4] : memref<8x32x1xf32, #tpu.memory_space<vmem>>, vector<8x32x1xf32>
    %c0_5 = arith.constant 0 : index
    %c0_6 = arith.constant 0 : index
    %2 = vector.load %arg3[%c0_5, %c0_6] : memref<32x32xf32, #tpu.memory_space<vmem>>, vector<32x32xf32>
    %c0_7 = arith.constant 0 : index
    %c0_8 = arith.constant 0 : index
    %3 = vector.load %arg4[%c0_7, %c0_8] : memref<1x32xf32, #tpu.memory_space<vmem>>, vector<1x32xf32>
    %c0_9 = arith.constant 0 : index
    %c0_10 = arith.constant 0 : index
    %4 = vector.load %arg5[%c0_9, %c0_10] : memref<32x16xf32, #tpu.memory_space<vmem>>, vector<32x16xf32>
    %c0_11 = arith.constant 0 : index
    %c0_12 = arith.constant 0 : index
    %5 = vector.load %arg6[%c0_11, %c0_12] : memref<1x16xf32, #tpu.memory_space<vmem>>, vector<1x16xf32>
    %c0_13 = arith.constant 0 : index
    %c0_14 = arith.constant 0 : index
    %6 = vector.load %arg7[%c0_13, %c0_14] : memref<32x16xf32, #tpu.memory_space<vmem>>, vector<32x16xf32>
    %c0_15 = arith.constant 0 : index
    %c0_16 = arith.constant 0 : index
    %7 = vector.load %arg8[%c0_15, %c0_16] : memref<1x16xf32, #tpu.memory_space<vmem>>, vector<1x16xf32>
    %c0_17 = arith.constant 0 : index
    %c0_18 = arith.constant 0 : index
    %8 = vector.load %arg9[%c0_17, %c0_18] : memref<16x16xf32, #tpu.memory_space<vmem>>, vector<16x16xf32>
    %c0_19 = arith.constant 0 : index
    %c0_20 = arith.constant 0 : index
    %9 = vector.load %arg10[%c0_19, %c0_20] : memref<16x16xf32, #tpu.memory_space<vmem>>, vector<16x16xf32>
    %c0_21 = arith.constant 0 : index
    %c0_22 = arith.constant 0 : index
    %10 = vector.load %arg11[%c0_21, %c0_22] : memref<1x16xf32, #tpu.memory_space<vmem>>, vector<1x16xf32>
    %c0_23 = arith.constant 0 : index
    %c0_24 = arith.constant 0 : index
    %11 = vector.load %arg12[%c0_23, %c0_24] : memref<16x32xf32, #tpu.memory_space<vmem>>, vector<16x32xf32>
    %c0_25 = arith.constant 0 : index
    %c0_26 = arith.constant 0 : index
    %12 = vector.load %arg13[%c0_25, %c0_26] : memref<1x32xf32, #tpu.memory_space<vmem>>, vector<1x32xf32>
    %c0_27 = arith.constant 0 : index
    %c0_28 = arith.constant 0 : index
    %13 = vector.load %arg14[%c0_27, %c0_28] : memref<32x32xf32, #tpu.memory_space<vmem>>, vector<32x32xf32>
    %c0_29 = arith.constant 0 : index
    %c0_30 = arith.constant 0 : index
    %14 = vector.load %arg15[%c0_29, %c0_30] : memref<1x32xf32, #tpu.memory_space<vmem>>, vector<1x32xf32>
    %c0_31 = arith.constant 0 : index
    %c0_32 = arith.constant 0 : index
    %15 = vector.load %arg16[%c0_31, %c0_32] : memref<32x1xf32, #tpu.memory_space<vmem>>, vector<32x1xf32>
    %c0_33 = arith.constant 0 : index
    %c0_34 = arith.constant 0 : index
    %16 = vector.load %arg17[%c0_33, %c0_34] : memref<1x1xf32, #tpu.memory_space<vmem>>, vector<1x1xf32>
    %c0_35 = arith.constant 0 : index
    %c0_36 = arith.constant 0 : index
    %c0_37 = arith.constant 0 : index
    %17 = vector.load %arg18[%c0_35, %c0_36, %c0_37] : memref<2x16x16xf32, #tpu.memory_space<vmem>>, vector<2x16x16xf32>
    %c0_38 = arith.constant 0 : index
    %c0_39 = arith.constant 0 : index
    %c0_40 = arith.constant 0 : index
    %18 = vector.load %arg19[%c0_38, %c0_39, %c0_40] : memref<2x1x16xf32, #tpu.memory_space<vmem>>, vector<2x1x16xf32>
    %c0_41 = arith.constant 0 : index
    %c0_42 = arith.constant 0 : index
    %c0_43 = arith.constant 0 : index
    %19 = vector.load %arg20[%c0_41, %c0_42, %c0_43] : memref<2x32x16xf32, #tpu.memory_space<vmem>>, vector<2x32x16xf32>
    %c0_44 = arith.constant 0 : index
    %c0_45 = arith.constant 0 : index
    %c0_46 = arith.constant 0 : index
    %20 = vector.load %arg21[%c0_44, %c0_45, %c0_46] : memref<2x1x16xf32, #tpu.memory_space<vmem>>, vector<2x1x16xf32>
    %c0_47 = arith.constant 0 : index
    %c0_48 = arith.constant 0 : index
    %c0_49 = arith.constant 0 : index
    %21 = vector.load %arg22[%c0_47, %c0_48, %c0_49] : memref<2x32x16xf32, #tpu.memory_space<vmem>>, vector<2x32x16xf32>
    %c0_50 = arith.constant 0 : index
    %c0_51 = arith.constant 0 : index
    %c0_52 = arith.constant 0 : index
    %22 = vector.load %arg23[%c0_50, %c0_51, %c0_52] : memref<2x32x16xf32, #tpu.memory_space<vmem>>, vector<2x32x16xf32>
    %c0_53 = arith.constant 0 : index
    %c0_54 = arith.constant 0 : index
    %c0_55 = arith.constant 0 : index
    %23 = vector.load %arg24[%c0_53, %c0_54, %c0_55] : memref<2x1x16xf32, #tpu.memory_space<vmem>>, vector<2x1x16xf32>
    %c0_56 = arith.constant 0 : index
    %c0_57 = arith.constant 0 : index
    %c0_58 = arith.constant 0 : index
    %24 = vector.load %arg25[%c0_56, %c0_57, %c0_58] : memref<2x32x16xf32, #tpu.memory_space<vmem>>, vector<2x32x16xf32>
    %c0_59 = arith.constant 0 : index
    %c0_60 = arith.constant 0 : index
    %c0_61 = arith.constant 0 : index
    %25 = vector.load %arg26[%c0_59, %c0_60, %c0_61] : memref<2x32x32xf32, #tpu.memory_space<vmem>>, vector<2x32x32xf32>
    %c0_62 = arith.constant 0 : index
    %c0_63 = arith.constant 0 : index
    %c0_64 = arith.constant 0 : index
    %26 = vector.load %arg27[%c0_62, %c0_63, %c0_64] : memref<2x1x32xf32, #tpu.memory_space<vmem>>, vector<2x1x32xf32>
    %c0_65 = arith.constant 0 : index
    %c0_66 = arith.constant 0 : index
    %c0_67 = arith.constant 0 : index
    %27 = vector.load %arg28[%c0_65, %c0_66, %c0_67] : memref<2x16x32xf32, #tpu.memory_space<vmem>>, vector<2x16x32xf32>
    %c0_68 = arith.constant 0 : index
    %c0_69 = arith.constant 0 : index
    %c0_70 = arith.constant 0 : index
    %28 = vector.load %arg29[%c0_68, %c0_69, %c0_70] : memref<2x1x32xf32, #tpu.memory_space<vmem>>, vector<2x1x32xf32>
    %c0_71 = arith.constant 0 : index
    %c0_72 = arith.constant 0 : index
    %c0_73 = arith.constant 0 : index
    %29 = vector.load %arg30[%c0_71, %c0_72, %c0_73] : memref<2x16x32xf32, #tpu.memory_space<vmem>>, vector<2x16x32xf32>
    %30 = vector.shape_cast %0 : vector<8x32x32xf32> to vector<256x32xf32>
    %cst = arith.constant dense<0.000000e+00> : vector<256x32xf32>
    %31 = tpu.matmul %30, %2, %cst {dimension_numbers = #tpu.dot_dimension_numbers<[1], [0], [0], [1], [0, 0, 1, 1], [], []>} : vector<256x32xf32>, vector<32x32xf32>, vector<256x32xf32> -> vector<256x32xf32>
    %32 = vector.broadcast %3 : vector<1x32xf32> to vector<256x32xf32>
    %33 = arith.addf %31, %32 : vector<256x32xf32>
    %cst_74 = arith.constant 0.000000e+00 : f32
    %34 = vector.broadcast %cst_74 : f32 to vector<256x32xf32>
    %35 = arith.cmpf oge, %33, %34 : vector<256x32xf32>
    %cst_75 = arith.constant 0.00999999977 : f32
    %36 = vector.broadcast %cst_75 : f32 to vector<256x32xf32>
    %37 = arith.mulf %36, %33 : vector<256x32xf32>
    %38 = arith.select %35, %33, %37 : vector<256x32xi1>, vector<256x32xf32>
    %39 = vector.shape_cast %38 : vector<256x32xf32> to vector<8x32x32xf32>
    %40 = vector.broadcast %1 : vector<8x32x1xf32> to vector<8x32x32xf32>
    %41 = arith.mulf %0, %40 : vector<8x32x32xf32>
    %cst_76 = arith.constant dense<0.000000e+00> : vector<8x1xf32>
    %42 = vector.multi_reduction <add>, %1, %cst_76 [1] : vector<8x32x1xf32> to vector<8x1xf32>
    %cst_77 = arith.constant 1.000000e+00 : f32
    %43 = vector.broadcast %cst_77 : f32 to vector<8x1xf32>
    %44 = arith.divf %43, %42 : vector<8x1xf32>
    %45 = vector.broadcast %1 : vector<8x32x1xf32> to vector<8x32x32xf32>
    %46 = arith.mulf %41, %45 : vector<8x32x32xf32>
    %cst_78 = arith.constant dense<0.000000e+00> : vector<8x32xf32>
    %47 = vector.multi_reduction <add>, %46, %cst_78 [1] : vector<8x32x32xf32> to vector<8x32xf32>
    %48 = vector.broadcast %44 : vector<8x1xf32> to vector<8x32xf32>
    %49 = arith.mulf %47, %48 : vector<8x32xf32>
    %cst_79 = arith.constant 0.00999999977 : f32
    %50 = vector.broadcast %cst_79 : f32 to vector<8x32xf32>
    %51 = arith.mulf %47, %50 : vector<8x32xf32>
    %cst_80 = arith.constant dense<0.000000e+00> : vector<8x16xf32>
    %52 = tpu.matmul %49, %4, %cst_80 {dimension_numbers = #tpu.dot_dimension_numbers<[1], [0], [0], [1], [0, 0, 1, 1], [], []>} : vector<8x32xf32>, vector<32x16xf32>, vector<8x16xf32> -> vector<8x16xf32>
    %53 = vector.broadcast %5 : vector<1x16xf32> to vector<8x16xf32>
    %54 = arith.addf %52, %53 : vector<8x16xf32>
    %cst_81 = arith.constant dense<0.000000e+00> : vector<8x16xf32>
    %55 = tpu.matmul %51, %6, %cst_81 {dimension_numbers = #tpu.dot_dimension_numbers<[1], [0], [0], [1], [0, 0, 1, 1], [], []>} : vector<8x32xf32>, vector<32x16xf32>, vector<8x16xf32> -> vector<8x16xf32>
    %56 = vector.broadcast %7 : vector<1x16xf32> to vector<8x16xf32>
    %57 = arith.addf %55, %56 : vector<8x16xf32>
    %cst_82 = arith.constant dense<0.000000e+00> : vector<8x16xf32>
    %58 = tpu.matmul %54, %8, %cst_82 {dimension_numbers = #tpu.dot_dimension_numbers<[1], [0], [0], [1], [0, 0, 1, 1], [], []>} : vector<8x16xf32>, vector<16x16xf32>, vector<8x16xf32> -> vector<8x16xf32>
    %cst_83 = arith.constant dense<0.000000e+00> : vector<8x16xf32>
    %59 = tpu.matmul %57, %9, %cst_83 {dimension_numbers = #tpu.dot_dimension_numbers<[1], [0], [0], [1], [0, 0, 1, 1], [], []>} : vector<8x16xf32>, vector<16x16xf32>, vector<8x16xf32> -> vector<8x16xf32>
    %60 = arith.addf %58, %59 : vector<8x16xf32>
    %61 = vector.broadcast %10 : vector<1x16xf32> to vector<8x16xf32>
    %62 = arith.addf %60, %61 : vector<8x16xf32>
    %cst_84 = arith.constant 0.000000e+00 : f32
    %63 = vector.broadcast %cst_84 : f32 to vector<8x16xf32>
    %64 = arith.cmpf oge, %62, %63 : vector<8x16xf32>
    %cst_85 = arith.constant 0.00999999977 : f32
    %65 = vector.broadcast %cst_85 : f32 to vector<8x16xf32>
    %66 = arith.mulf %65, %62 : vector<8x16xf32>
    %67 = arith.select %64, %62, %66 : vector<8x16xi1>, vector<8x16xf32>
    %68 = vector.broadcast %1 : vector<8x32x1xf32> to vector<8x32x32xf32>
    %69 = arith.mulf %39, %68 : vector<8x32x32xf32>
    %70 = vector.broadcast %1 : vector<8x32x1xf32> to vector<8x32x32xf32>
    %71 = arith.mulf %69, %70 : vector<8x32x32xf32>
    %cst_86 = arith.constant dense<0.000000e+00> : vector<8x32xf32>
    %72 = vector.multi_reduction <add>, %71, %cst_86 [1] : vector<8x32x32xf32> to vector<8x32xf32>
    %73 = vector.broadcast %44 : vector<8x1xf32> to vector<8x32xf32>
    %74 = arith.mulf %72, %73 : vector<8x32xf32>
    %cst_87 = arith.constant 0.00999999977 : f32
    %75 = vector.broadcast %cst_87 : f32 to vector<8x32xf32>
    %76 = arith.mulf %72, %75 : vector<8x32xf32>
    %77 = vector.extract_strided_slice %19 {offsets = [0, 0, 0], sizes = [1, 32, 16], strides = [1, 1, 1]} : vector<2x32x16xf32> to vector<1x32x16xf32>
    %78 = vector.shape_cast %77 : vector<1x32x16xf32> to vector<32x16xf32>
    %cst_88 = arith.constant dense<0.000000e+00> : vector<8x16xf32>
    %79 = tpu.matmul %76, %78, %cst_88 {dimension_numbers = #tpu.dot_dimension_numbers<[1], [0], [0], [1], [0, 0, 1, 1], [], []>} : vector<8x32xf32>, vector<32x16xf32>, vector<8x16xf32> -> vector<8x16xf32>
    %80 = vector.extract_strided_slice %20 {offsets = [0, 0, 0], sizes = [1, 1, 16], strides = [1, 1, 1]} : vector<2x1x16xf32> to vector<1x1x16xf32>
    %81 = vector.shape_cast %80 : vector<1x1x16xf32> to vector<1x16xf32>
    %82 = vector.broadcast %81 : vector<1x16xf32> to vector<8x16xf32>
    %83 = arith.addf %79, %82 : vector<8x16xf32>
    %cst_89 = arith.constant 0.000000e+00 : f32
    %84 = vector.broadcast %cst_89 : f32 to vector<8x16xf32>
    %85 = arith.subf %84, %83 : vector<8x16xf32>
    %86 = math.exp %85 : vector<8x16xf32>
    %cst_90 = arith.constant 1.000000e+00 : f32
    %87 = vector.broadcast %cst_90 : f32 to vector<8x16xf32>
    %88 = arith.addf %87, %86 : vector<8x16xf32>
    %cst_91 = arith.constant 1.000000e+00 : f32
    %89 = vector.broadcast %cst_91 : f32 to vector<8x16xf32>
    %90 = arith.divf %89, %88 : vector<8x16xf32>
    %91 = vector.extract_strided_slice %21 {offsets = [0, 0, 0], sizes = [1, 32, 16], strides = [1, 1, 1]} : vector<2x32x16xf32> to vector<1x32x16xf32>
    %92 = vector.shape_cast %91 : vector<1x32x16xf32> to vector<32x16xf32>
    %cst_92 = arith.constant dense<0.000000e+00> : vector<8x16xf32>
    %93 = tpu.matmul %76, %92, %cst_92 {dimension_numbers = #tpu.dot_dimension_numbers<[1], [0], [0], [1], [0, 0, 1, 1], [], []>} : vector<8x32xf32>, vector<32x16xf32>, vector<8x16xf32> -> vector<8x16xf32>
    %94 = vector.extract_strided_slice %22 {offsets = [0, 0, 0], sizes = [1, 32, 16], strides = [1, 1, 1]} : vector<2x32x16xf32> to vector<1x32x16xf32>
    %95 = vector.shape_cast %94 : vector<1x32x16xf32> to vector<32x16xf32>
    %cst_93 = arith.constant dense<0.000000e+00> : vector<8x16xf32>
    %96 = tpu.matmul %74, %95, %cst_93 {dimension_numbers = #tpu.dot_dimension_numbers<[1], [0], [0], [1], [0, 0, 1, 1], [], []>} : vector<8x32xf32>, vector<32x16xf32>, vector<8x16xf32> -> vector<8x16xf32>
    %97 = vector.extract_strided_slice %23 {offsets = [0, 0, 0], sizes = [1, 1, 16], strides = [1, 1, 1]} : vector<2x1x16xf32> to vector<1x1x16xf32>
    %98 = vector.shape_cast %97 : vector<1x1x16xf32> to vector<1x16xf32>
    %99 = vector.broadcast %98 : vector<1x16xf32> to vector<8x16xf32>
    %100 = arith.addf %96, %99 : vector<8x16xf32>
    %cst_94 = arith.constant 0.000000e+00 : f32
    %101 = vector.broadcast %cst_94 : f32 to vector<8x16xf32>
    %102 = arith.subf %101, %100 : vector<8x16xf32>
    %103 = math.exp %102 : vector<8x16xf32>
    %cst_95 = arith.constant 1.000000e+00 : f32
    %104 = vector.broadcast %cst_95 : f32 to vector<8x16xf32>
    %105 = arith.addf %104, %103 : vector<8x16xf32>
    %cst_96 = arith.constant 1.000000e+00 : f32
    %106 = vector.broadcast %cst_96 : f32 to vector<8x16xf32>
    %107 = arith.divf %106, %105 : vector<8x16xf32>
    %108 = vector.extract_strided_slice %24 {offsets = [0, 0, 0], sizes = [1, 32, 16], strides = [1, 1, 1]} : vector<2x32x16xf32> to vector<1x32x16xf32>
    %109 = vector.shape_cast %108 : vector<1x32x16xf32> to vector<32x16xf32>
    %cst_97 = arith.constant dense<0.000000e+00> : vector<8x16xf32>
    %110 = tpu.matmul %74, %109, %cst_97 {dimension_numbers = #tpu.dot_dimension_numbers<[1], [0], [0], [1], [0, 0, 1, 1], [], []>} : vector<8x32xf32>, vector<32x16xf32>, vector<8x16xf32> -> vector<8x16xf32>
    %111 = vector.extract_strided_slice %17 {offsets = [0, 0, 0], sizes = [1, 16, 16], strides = [1, 1, 1]} : vector<2x16x16xf32> to vector<1x16x16xf32>
    %112 = vector.shape_cast %111 : vector<1x16x16xf32> to vector<16x16xf32>
    %cst_98 = arith.constant dense<0.000000e+00> : vector<8x16xf32>
    %113 = tpu.matmul %67, %112, %cst_98 {dimension_numbers = #tpu.dot_dimension_numbers<[1], [0], [0], [1], [0, 0, 1, 1], [], []>} : vector<8x16xf32>, vector<16x16xf32>, vector<8x16xf32> -> vector<8x16xf32>
    %114 = vector.extract_strided_slice %18 {offsets = [0, 0, 0], sizes = [1, 1, 16], strides = [1, 1, 1]} : vector<2x1x16xf32> to vector<1x1x16xf32>
    %115 = vector.shape_cast %114 : vector<1x1x16xf32> to vector<1x16xf32>
    %116 = vector.broadcast %115 : vector<1x16xf32> to vector<8x16xf32>
    %117 = arith.addf %113, %116 : vector<8x16xf32>
    %118 = arith.mulf %117, %90 : vector<8x16xf32>
    %119 = arith.mulf %118, %107 : vector<8x16xf32>
    %120 = arith.addf %119, %93 : vector<8x16xf32>
    %121 = arith.addf %120, %110 : vector<8x16xf32>
    %122 = vector.extract_strided_slice %27 {offsets = [0, 0, 0], sizes = [1, 16, 32], strides = [1, 1, 1]} : vector<2x16x32xf32> to vector<1x16x32xf32>
    %123 = vector.shape_cast %122 : vector<1x16x32xf32> to vector<16x32xf32>
    %cst_99 = arith.constant dense<0.000000e+00> : vector<8x32xf32>
    %124 = tpu.matmul %121, %123, %cst_99 {dimension_numbers = #tpu.dot_dimension_numbers<[1], [0], [0], [1], [0, 0, 1, 1], [], []>} : vector<8x16xf32>, vector<16x32xf32>, vector<8x32xf32> -> vector<8x32xf32>
    %125 = vector.extract_strided_slice %28 {offsets = [0, 0, 0], sizes = [1, 1, 32], strides = [1, 1, 1]} : vector<2x1x32xf32> to vector<1x1x32xf32>
    %126 = vector.shape_cast %125 : vector<1x1x32xf32> to vector<1x32xf32>
    %127 = vector.broadcast %126 : vector<1x32xf32> to vector<8x32xf32>
    %128 = arith.addf %124, %127 : vector<8x32xf32>
    %cst_100 = arith.constant 0.000000e+00 : f32
    %129 = vector.broadcast %cst_100 : f32 to vector<8x32xf32>
    %130 = arith.subf %129, %128 : vector<8x32xf32>
    %131 = math.exp %130 : vector<8x32xf32>
    %cst_101 = arith.constant 1.000000e+00 : f32
    %132 = vector.broadcast %cst_101 : f32 to vector<8x32xf32>
    %133 = arith.addf %132, %131 : vector<8x32xf32>
    %cst_102 = arith.constant 1.000000e+00 : f32
    %134 = vector.broadcast %cst_102 : f32 to vector<8x32xf32>
    %135 = arith.divf %134, %133 : vector<8x32xf32>
    %136 = vector.extract_strided_slice %29 {offsets = [0, 0, 0], sizes = [1, 16, 32], strides = [1, 1, 1]} : vector<2x16x32xf32> to vector<1x16x32xf32>
    %137 = vector.shape_cast %136 : vector<1x16x32xf32> to vector<16x32xf32>
    %cst_103 = arith.constant dense<0.000000e+00> : vector<8x32xf32>
    %138 = tpu.matmul %121, %137, %cst_103 {dimension_numbers = #tpu.dot_dimension_numbers<[1], [0], [0], [1], [0, 0, 1, 1], [], []>} : vector<8x16xf32>, vector<16x32xf32>, vector<8x32xf32> -> vector<8x32xf32>
    %139 = vector.shape_cast %69 : vector<8x32x32xf32> to vector<256x32xf32>
    %140 = vector.extract_strided_slice %25 {offsets = [0, 0, 0], sizes = [1, 32, 32], strides = [1, 1, 1]} : vector<2x32x32xf32> to vector<1x32x32xf32>
    %141 = vector.shape_cast %140 : vector<1x32x32xf32> to vector<32x32xf32>
    %cst_104 = arith.constant dense<0.000000e+00> : vector<256x32xf32>
    %142 = tpu.matmul %139, %141, %cst_104 {dimension_numbers = #tpu.dot_dimension_numbers<[1], [0], [0], [1], [0, 0, 1, 1], [], []>} : vector<256x32xf32>, vector<32x32xf32>, vector<256x32xf32> -> vector<256x32xf32>
    %143 = vector.extract_strided_slice %26 {offsets = [0, 0, 0], sizes = [1, 1, 32], strides = [1, 1, 1]} : vector<2x1x32xf32> to vector<1x1x32xf32>
    %144 = vector.shape_cast %143 : vector<1x1x32xf32> to vector<1x32xf32>
    %145 = vector.broadcast %144 : vector<1x32xf32> to vector<256x32xf32>
    %146 = arith.addf %142, %145 : vector<256x32xf32>
    %147 = vector.shape_cast %146 : vector<256x32xf32> to vector<8x32x32xf32>
    %148 = vector.shape_cast %135 : vector<8x32xf32> to vector<8x1x32xf32>
    %149 = vector.broadcast %148 : vector<8x1x32xf32> to vector<8x32x32xf32>
    %150 = arith.mulf %147, %149 : vector<8x32x32xf32>
    %151 = vector.shape_cast %138 : vector<8x32xf32> to vector<8x1x32xf32>
    %152 = vector.broadcast %151 : vector<8x1x32xf32> to vector<8x32x32xf32>
    %153 = arith.addf %150, %152 : vector<8x32x32xf32>
    %154 = arith.addf %121, %67 : vector<8x16xf32>
    %cst_105 = arith.constant 0.000000e+00 : f32
    %155 = vector.broadcast %cst_105 : f32 to vector<8x16xf32>
    %156 = arith.cmpf oge, %154, %155 : vector<8x16xf32>
    %cst_106 = arith.constant 0.00999999977 : f32
    %157 = vector.broadcast %cst_106 : f32 to vector<8x16xf32>
    %158 = arith.mulf %157, %154 : vector<8x16xf32>
    %159 = arith.select %156, %154, %158 : vector<8x16xi1>, vector<8x16xf32>
    %160 = arith.addf %153, %39 : vector<8x32x32xf32>
    %cst_107 = arith.constant 0.000000e+00 : f32
    %161 = vector.broadcast %cst_107 : f32 to vector<8x32x32xf32>
    %162 = arith.cmpf oge, %160, %161 : vector<8x32x32xf32>
    %cst_108 = arith.constant 0.00999999977 : f32
    %163 = vector.broadcast %cst_108 : f32 to vector<8x32x32xf32>
    %164 = arith.mulf %163, %160 : vector<8x32x32xf32>
    %165 = arith.select %162, %160, %164 : vector<8x32x32xi1>, vector<8x32x32xf32>
    %166 = vector.broadcast %1 : vector<8x32x1xf32> to vector<8x32x32xf32>
    %167 = arith.mulf %165, %166 : vector<8x32x32xf32>
    %168 = vector.broadcast %1 : vector<8x32x1xf32> to vector<8x32x32xf32>
    %169 = arith.mulf %167, %168 : vector<8x32x32xf32>
    %cst_109 = arith.constant dense<0.000000e+00> : vector<8x32xf32>
    %170 = vector.multi_reduction <add>, %169, %cst_109 [1] : vector<8x32x32xf32> to vector<8x32xf32>
    %171 = vector.broadcast %44 : vector<8x1xf32> to vector<8x32xf32>
    %172 = arith.mulf %170, %171 : vector<8x32xf32>
    %cst_110 = arith.constant 0.00999999977 : f32
    %173 = vector.broadcast %cst_110 : f32 to vector<8x32xf32>
    %174 = arith.mulf %170, %173 : vector<8x32xf32>
    %175 = vector.extract_strided_slice %19 {offsets = [1, 0, 0], sizes = [1, 32, 16], strides = [1, 1, 1]} : vector<2x32x16xf32> to vector<1x32x16xf32>
    %176 = vector.shape_cast %175 : vector<1x32x16xf32> to vector<32x16xf32>
    %cst_111 = arith.constant dense<0.000000e+00> : vector<8x16xf32>
    %177 = tpu.matmul %174, %176, %cst_111 {dimension_numbers = #tpu.dot_dimension_numbers<[1], [0], [0], [1], [0, 0, 1, 1], [], []>} : vector<8x32xf32>, vector<32x16xf32>, vector<8x16xf32> -> vector<8x16xf32>
    %178 = vector.extract_strided_slice %20 {offsets = [1, 0, 0], sizes = [1, 1, 16], strides = [1, 1, 1]} : vector<2x1x16xf32> to vector<1x1x16xf32>
    %179 = vector.shape_cast %178 : vector<1x1x16xf32> to vector<1x16xf32>
    %180 = vector.broadcast %179 : vector<1x16xf32> to vector<8x16xf32>
    %181 = arith.addf %177, %180 : vector<8x16xf32>
    %cst_112 = arith.constant 0.000000e+00 : f32
    %182 = vector.broadcast %cst_112 : f32 to vector<8x16xf32>
    %183 = arith.subf %182, %181 : vector<8x16xf32>
    %184 = math.exp %183 : vector<8x16xf32>
    %cst_113 = arith.constant 1.000000e+00 : f32
    %185 = vector.broadcast %cst_113 : f32 to vector<8x16xf32>
    %186 = arith.addf %185, %184 : vector<8x16xf32>
    %cst_114 = arith.constant 1.000000e+00 : f32
    %187 = vector.broadcast %cst_114 : f32 to vector<8x16xf32>
    %188 = arith.divf %187, %186 : vector<8x16xf32>
    %189 = vector.extract_strided_slice %21 {offsets = [1, 0, 0], sizes = [1, 32, 16], strides = [1, 1, 1]} : vector<2x32x16xf32> to vector<1x32x16xf32>
    %190 = vector.shape_cast %189 : vector<1x32x16xf32> to vector<32x16xf32>
    %cst_115 = arith.constant dense<0.000000e+00> : vector<8x16xf32>
    %191 = tpu.matmul %174, %190, %cst_115 {dimension_numbers = #tpu.dot_dimension_numbers<[1], [0], [0], [1], [0, 0, 1, 1], [], []>} : vector<8x32xf32>, vector<32x16xf32>, vector<8x16xf32> -> vector<8x16xf32>
    %192 = vector.extract_strided_slice %22 {offsets = [1, 0, 0], sizes = [1, 32, 16], strides = [1, 1, 1]} : vector<2x32x16xf32> to vector<1x32x16xf32>
    %193 = vector.shape_cast %192 : vector<1x32x16xf32> to vector<32x16xf32>
    %cst_116 = arith.constant dense<0.000000e+00> : vector<8x16xf32>
    %194 = tpu.matmul %172, %193, %cst_116 {dimension_numbers = #tpu.dot_dimension_numbers<[1], [0], [0], [1], [0, 0, 1, 1], [], []>} : vector<8x32xf32>, vector<32x16xf32>, vector<8x16xf32> -> vector<8x16xf32>
    %195 = vector.extract_strided_slice %23 {offsets = [1, 0, 0], sizes = [1, 1, 16], strides = [1, 1, 1]} : vector<2x1x16xf32> to vector<1x1x16xf32>
    %196 = vector.shape_cast %195 : vector<1x1x16xf32> to vector<1x16xf32>
    %197 = vector.broadcast %196 : vector<1x16xf32> to vector<8x16xf32>
    %198 = arith.addf %194, %197 : vector<8x16xf32>
    %cst_117 = arith.constant 0.000000e+00 : f32
    %199 = vector.broadcast %cst_117 : f32 to vector<8x16xf32>
    %200 = arith.subf %199, %198 : vector<8x16xf32>
    %201 = math.exp %200 : vector<8x16xf32>
    %cst_118 = arith.constant 1.000000e+00 : f32
    %202 = vector.broadcast %cst_118 : f32 to vector<8x16xf32>
    %203 = arith.addf %202, %201 : vector<8x16xf32>
    %cst_119 = arith.constant 1.000000e+00 : f32
    %204 = vector.broadcast %cst_119 : f32 to vector<8x16xf32>
    %205 = arith.divf %204, %203 : vector<8x16xf32>
    %206 = vector.extract_strided_slice %24 {offsets = [1, 0, 0], sizes = [1, 32, 16], strides = [1, 1, 1]} : vector<2x32x16xf32> to vector<1x32x16xf32>
    %207 = vector.shape_cast %206 : vector<1x32x16xf32> to vector<32x16xf32>
    %cst_120 = arith.constant dense<0.000000e+00> : vector<8x16xf32>
    %208 = tpu.matmul %172, %207, %cst_120 {dimension_numbers = #tpu.dot_dimension_numbers<[1], [0], [0], [1], [0, 0, 1, 1], [], []>} : vector<8x32xf32>, vector<32x16xf32>, vector<8x16xf32> -> vector<8x16xf32>
    %209 = vector.extract_strided_slice %17 {offsets = [1, 0, 0], sizes = [1, 16, 16], strides = [1, 1, 1]} : vector<2x16x16xf32> to vector<1x16x16xf32>
    %210 = vector.shape_cast %209 : vector<1x16x16xf32> to vector<16x16xf32>
    %cst_121 = arith.constant dense<0.000000e+00> : vector<8x16xf32>
    %211 = tpu.matmul %159, %210, %cst_121 {dimension_numbers = #tpu.dot_dimension_numbers<[1], [0], [0], [1], [0, 0, 1, 1], [], []>} : vector<8x16xf32>, vector<16x16xf32>, vector<8x16xf32> -> vector<8x16xf32>
    %212 = vector.extract_strided_slice %18 {offsets = [1, 0, 0], sizes = [1, 1, 16], strides = [1, 1, 1]} : vector<2x1x16xf32> to vector<1x1x16xf32>
    %213 = vector.shape_cast %212 : vector<1x1x16xf32> to vector<1x16xf32>
    %214 = vector.broadcast %213 : vector<1x16xf32> to vector<8x16xf32>
    %215 = arith.addf %211, %214 : vector<8x16xf32>
    %216 = arith.mulf %215, %188 : vector<8x16xf32>
    %217 = arith.mulf %216, %205 : vector<8x16xf32>
    %218 = arith.addf %217, %191 : vector<8x16xf32>
    %219 = arith.addf %218, %208 : vector<8x16xf32>
    %220 = arith.addf %219, %159 : vector<8x16xf32>
    %cst_122 = arith.constant 0.000000e+00 : f32
    %221 = vector.broadcast %cst_122 : f32 to vector<8x16xf32>
    %222 = arith.cmpf oge, %220, %221 : vector<8x16xf32>
    %cst_123 = arith.constant 0.00999999977 : f32
    %223 = vector.broadcast %cst_123 : f32 to vector<8x16xf32>
    %224 = arith.mulf %223, %220 : vector<8x16xf32>
    %225 = arith.select %222, %220, %224 : vector<8x16xi1>, vector<8x16xf32>
    %cst_124 = arith.constant dense<0.000000e+00> : vector<8x32xf32>
    %226 = tpu.matmul %225, %11, %cst_124 {dimension_numbers = #tpu.dot_dimension_numbers<[1], [0], [0], [1], [0, 0, 1, 1], [], []>} : vector<8x16xf32>, vector<16x32xf32>, vector<8x32xf32> -> vector<8x32xf32>
    %227 = vector.broadcast %12 : vector<1x32xf32> to vector<8x32xf32>
    %228 = arith.addf %226, %227 : vector<8x32xf32>
    %cst_125 = arith.constant 0.000000e+00 : f32
    %229 = vector.broadcast %cst_125 : f32 to vector<8x32xf32>
    %230 = arith.cmpf oge, %228, %229 : vector<8x32xf32>
    %cst_126 = arith.constant 0.00999999977 : f32
    %231 = vector.broadcast %cst_126 : f32 to vector<8x32xf32>
    %232 = arith.mulf %231, %228 : vector<8x32xf32>
    %233 = arith.select %230, %228, %232 : vector<8x32xi1>, vector<8x32xf32>
    %cst_127 = arith.constant dense<0.000000e+00> : vector<8x32xf32>
    %234 = tpu.matmul %233, %13, %cst_127 {dimension_numbers = #tpu.dot_dimension_numbers<[1], [0], [0], [1], [0, 0, 1, 1], [], []>} : vector<8x32xf32>, vector<32x32xf32>, vector<8x32xf32> -> vector<8x32xf32>
    %235 = vector.broadcast %14 : vector<1x32xf32> to vector<8x32xf32>
    %236 = arith.addf %234, %235 : vector<8x32xf32>
    %237 = arith.addf %236, %233 : vector<8x32xf32>
    %cst_128 = arith.constant 0.000000e+00 : f32
    %238 = vector.broadcast %cst_128 : f32 to vector<8x32xf32>
    %239 = arith.cmpf oge, %237, %238 : vector<8x32xf32>
    %cst_129 = arith.constant 0.00999999977 : f32
    %240 = vector.broadcast %cst_129 : f32 to vector<8x32xf32>
    %241 = arith.mulf %240, %237 : vector<8x32xf32>
    %242 = arith.select %239, %237, %241 : vector<8x32xi1>, vector<8x32xf32>
    %cst_130 = arith.constant dense<0.000000e+00> : vector<8x1xf32>
    %243 = tpu.matmul %242, %15, %cst_130 {dimension_numbers = #tpu.dot_dimension_numbers<[1], [0], [0], [1], [0, 0, 1, 1], [], []>} : vector<8x32xf32>, vector<32x1xf32>, vector<8x1xf32> -> vector<8x1xf32>
    %244 = vector.broadcast %16 : vector<1x1xf32> to vector<8x1xf32>
    %245 = arith.addf %243, %244 : vector<8x1xf32>
    %246 = vector.shape_cast %245 : vector<8x1xf32> to vector<8x1xf32>
    %247 = vector.broadcast %246 : vector<8x1xf32> to vector<8x128xf32>
    %c0_131 = arith.constant 0 : index
    %c0_132 = arith.constant 0 : index
    %248 = vector.load %arg31[%c0_131, %c0_132] : memref<8x128xf32, #tpu.memory_space<vmem>>, vector<8x128xf32>
    tpu.vector_store %arg31[%c0_131, %c0_132], %247 {strides = array<i32>} : memref<8x128xf32, #tpu.memory_space<vmem>>, vector<8x128xf32>,
    return
  }
  func.func @transform_0(%arg0: i32) -> (i32, i32, i32) {
    %c0_i32 = arith.constant 0 : i32
    %c0_i32_0 = arith.constant 0 : i32
    %c0_i32_1 = arith.constant 0 : i32
    return %arg0, %c0_i32, %c0_i32_0 : i32, i32, i32
  }
  func.func @transform_1(%arg0: i32) -> (i32, i32, i32) {
    %c0_i32 = arith.constant 0 : i32
    %c0_i32_0 = arith.constant 0 : i32
    %c0_i32_1 = arith.constant 0 : i32
    return %arg0, %c0_i32, %c0_i32_0 : i32, i32, i32
  }
  func.func @transform_2(%arg0: i32) -> (i32, i32) {
    %c0_i32 = arith.constant 0 : i32
    %c0_i32_0 = arith.constant 0 : i32
    %c0_i32_1 = arith.constant 0 : i32
    return %c0_i32, %c0_i32_0 : i32, i32
  }
  func.func @transform_3(%arg0: i32) -> (i32, i32) {
    %c0_i32 = arith.constant 0 : i32
    %c0_i32_0 = arith.constant 0 : i32
    %c0_i32_1 = arith.constant 0 : i32
    return %c0_i32, %c0_i32_0 : i32, i32
  }
  func.func @transform_4(%arg0: i32) -> (i32, i32) {
    %c0_i32 = arith.constant 0 : i32
    %c0_i32_0 = arith.constant 0 : i32
    %c0_i32_1 = arith.constant 0 : i32
    return %c0_i32, %c0_i32_0 : i32, i32
  }
  func.func @transform_5(%arg0: i32) -> (i32, i32) {
    %c0_i32 = arith.constant 0 : i32
    %c0_i32_0 = arith.constant 0 : i32
    %c0_i32_1 = arith.constant 0 : i32
    return %c0_i32, %c0_i32_0 : i32, i32
  }
  func.func @transform_6(%arg0: i32) -> (i32, i32) {
    %c0_i32 = arith.constant 0 : i32
    %c0_i32_0 = arith.constant 0 : i32
    %c0_i32_1 = arith.constant 0 : i32
    return %c0_i32, %c0_i32_0 : i32, i32
  }
  func.func @transform_7(%arg0: i32) -> (i32, i32) {
    %c0_i32 = arith.constant 0 : i32
    %c0_i32_0 = arith.constant 0 : i32
    %c0_i32_1 = arith.constant 0 : i32
    return %c0_i32, %c0_i32_0 : i32, i32
  }
  func.func @transform_8(%arg0: i32) -> (i32, i32) {
    %c0_i32 = arith.constant 0 : i32
    %c0_i32_0 = arith.constant 0 : i32
    %c0_i32_1 = arith.constant 0 : i32
    return %c0_i32, %c0_i32_0 : i32, i32
  }
  func.func @transform_9(%arg0: i32) -> (i32, i32) {
    %c0_i32 = arith.constant 0 : i32
    %c0_i32_0 = arith.constant 0 : i32
    %c0_i32_1 = arith.constant 0 : i32
    return %c0_i32, %c0_i32_0 : i32, i32
  }
  func.func @transform_10(%arg0: i32) -> (i32, i32) {
    %c0_i32 = arith.constant 0 : i32
    %c0_i32_0 = arith.constant 0 : i32
    %c0_i32_1 = arith.constant 0 : i32
    return %c0_i32, %c0_i32_0 : i32, i32
  }
  func.func @transform_11(%arg0: i32) -> (i32, i32) {
    %c0_i32 = arith.constant 0 : i32
    %c0_i32_0 = arith.constant 0 : i32
    %c0_i32_1 = arith.constant 0 : i32
    return %c0_i32, %c0_i32_0 : i32, i32
  }
  func.func @transform_12(%arg0: i32) -> (i32, i32) {
    %c0_i32 = arith.constant 0 : i32
    %c0_i32_0 = arith.constant 0 : i32
    %c0_i32_1 = arith.constant 0 : i32
    return %c0_i32, %c0_i32_0 : i32, i32
  }
  func.func @transform_13(%arg0: i32) -> (i32, i32) {
    %c0_i32 = arith.constant 0 : i32
    %c0_i32_0 = arith.constant 0 : i32
    %c0_i32_1 = arith.constant 0 : i32
    return %c0_i32, %c0_i32_0 : i32, i32
  }
  func.func @transform_14(%arg0: i32) -> (i32, i32) {
    %c0_i32 = arith.constant 0 : i32
    %c0_i32_0 = arith.constant 0 : i32
    %c0_i32_1 = arith.constant 0 : i32
    return %c0_i32, %c0_i32_0 : i32, i32
  }
  func.func @transform_15(%arg0: i32) -> (i32, i32) {
    %c0_i32 = arith.constant 0 : i32
    %c0_i32_0 = arith.constant 0 : i32
    %c0_i32_1 = arith.constant 0 : i32
    return %c0_i32, %c0_i32_0 : i32, i32
  }
  func.func @transform_16(%arg0: i32) -> (i32, i32) {
    %c0_i32 = arith.constant 0 : i32
    %c0_i32_0 = arith.constant 0 : i32
    %c0_i32_1 = arith.constant 0 : i32
    return %c0_i32, %c0_i32_0 : i32, i32
  }
  func.func @transform_17(%arg0: i32) -> (i32, i32, i32) {
    %c0_i32 = arith.constant 0 : i32
    %c0_i32_0 = arith.constant 0 : i32
    %c0_i32_1 = arith.constant 0 : i32
    %c0_i32_2 = arith.constant 0 : i32
    return %c0_i32, %c0_i32_0, %c0_i32_1 : i32, i32, i32
  }
  func.func @transform_18(%arg0: i32) -> (i32, i32, i32) {
    %c0_i32 = arith.constant 0 : i32
    %c0_i32_0 = arith.constant 0 : i32
    %c0_i32_1 = arith.constant 0 : i32
    %c0_i32_2 = arith.constant 0 : i32
    return %c0_i32, %c0_i32_0, %c0_i32_1 : i32, i32, i32
  }
  func.func @transform_19(%arg0: i32) -> (i32, i32, i32) {
    %c0_i32 = arith.constant 0 : i32
    %c0_i32_0 = arith.constant 0 : i32
    %c0_i32_1 = arith.constant 0 : i32
    %c0_i32_2 = arith.constant 0 : i32
    return %c0_i32, %c0_i32_0, %c0_i32_1 : i32, i32, i32
  }
  func.func @transform_20(%arg0: i32) -> (i32, i32, i32) {
    %c0_i32 = arith.constant 0 : i32
    %c0_i32_0 = arith.constant 0 : i32
    %c0_i32_1 = arith.constant 0 : i32
    %c0_i32_2 = arith.constant 0 : i32
    return %c0_i32, %c0_i32_0, %c0_i32_1 : i32, i32, i32
  }
  func.func @transform_21(%arg0: i32) -> (i32, i32, i32) {
    %c0_i32 = arith.constant 0 : i32
    %c0_i32_0 = arith.constant 0 : i32
    %c0_i32_1 = arith.constant 0 : i32
    %c0_i32_2 = arith.constant 0 : i32
    return %c0_i32, %c0_i32_0, %c0_i32_1 : i32, i32, i32
  }
  func.func @transform_22(%arg0: i32) -> (i32, i32, i32) {
    %c0_i32 = arith.constant 0 : i32
    %c0_i32_0 = arith.constant 0 : i32
    %c0_i32_1 = arith.constant 0 : i32
    %c0_i32_2 = arith.constant 0 : i32
    return %c0_i32, %c0_i32_0, %c0_i32_1 : i32, i32, i32
  }
  func.func @transform_23(%arg0: i32) -> (i32, i32, i32) {
    %c0_i32 = arith.constant 0 : i32
    %c0_i32_0 = arith.constant 0 : i32
    %c0_i32_1 = arith.constant 0 : i32
    %c0_i32_2 = arith.constant 0 : i32
    return %c0_i32, %c0_i32_0, %c0_i32_1 : i32, i32, i32
  }
  func.func @transform_24(%arg0: i32) -> (i32, i32, i32) {
    %c0_i32 = arith.constant 0 : i32
    %c0_i32_0 = arith.constant 0 : i32
    %c0_i32_1 = arith.constant 0 : i32
    %c0_i32_2 = arith.constant 0 : i32
    return %c0_i32, %c0_i32_0, %c0_i32_1 : i32, i32, i32
  }
  func.func @transform_25(%arg0: i32) -> (i32, i32, i32) {
    %c0_i32 = arith.constant 0 : i32
    %c0_i32_0 = arith.constant 0 : i32
    %c0_i32_1 = arith.constant 0 : i32
    %c0_i32_2 = arith.constant 0 : i32
    return %c0_i32, %c0_i32_0, %c0_i32_1 : i32, i32, i32
  }
  func.func @transform_26(%arg0: i32) -> (i32, i32, i32) {
    %c0_i32 = arith.constant 0 : i32
    %c0_i32_0 = arith.constant 0 : i32
    %c0_i32_1 = arith.constant 0 : i32
    %c0_i32_2 = arith.constant 0 : i32
    return %c0_i32, %c0_i32_0, %c0_i32_1 : i32, i32, i32
  }
  func.func @transform_27(%arg0: i32) -> (i32, i32, i32) {
    %c0_i32 = arith.constant 0 : i32
    %c0_i32_0 = arith.constant 0 : i32
    %c0_i32_1 = arith.constant 0 : i32
    %c0_i32_2 = arith.constant 0 : i32
    return %c0_i32, %c0_i32_0, %c0_i32_1 : i32, i32, i32
  }
  func.func @transform_28(%arg0: i32) -> (i32, i32, i32) {
    %c0_i32 = arith.constant 0 : i32
    %c0_i32_0 = arith.constant 0 : i32
    %c0_i32_1 = arith.constant 0 : i32
    %c0_i32_2 = arith.constant 0 : i32
    return %c0_i32, %c0_i32_0, %c0_i32_1 : i32, i32, i32
  }
  func.func @transform_29(%arg0: i32) -> (i32, i32, i32) {
    %c0_i32 = arith.constant 0 : i32
    %c0_i32_0 = arith.constant 0 : i32
    %c0_i32_1 = arith.constant 0 : i32
    %c0_i32_2 = arith.constant 0 : i32
    return %c0_i32, %c0_i32_0, %c0_i32_1 : i32, i32, i32
  }
  func.func @transform_30(%arg0: i32) -> (i32, i32) {
    %c0_i32 = arith.constant 0 : i32
    %c0_i32_0 = arith.constant 0 : i32
    return %arg0, %c0_i32 : i32, i32
  }
}

</mosaic_0001>

<bundles_post_ra>
// kernel: tpu_custom_call.1
= control target key start
LH: loop header
LB: loop body
LE: loop exit
PB: predicated region body
PF: predicated region fallthrough
CT: control target
= control target key end

     0   :  { %s5675_s6 = smov 1   ;;  %s5676_s10 = smov 2   ;;  %s7606_s0 = inlined_call_operand.smem [shape: u32[31], index: -1, kind: input, shape index: {}] }
   0x1   :  { %s5719_s5 = sld [smem:[%s7606_s0]]   ;;  %s5677_s14 = smov 3  }
   0x2   :  { %s5724_s9 = sld [smem:[%s7606_s0 + %s5675_s6]]   ;;  %s5678_s18 = smov 4  }
   0x3   :  { %s5729_s13 = sld [smem:[%s7606_s0 + %s5676_s10]]   ;;  %s5679_s22 = smov 5  }
   0x4   :  { %s5734_s17 = sld [smem:[%s7606_s0 + %s5677_s14]]   ;;  %s5680_s26 = smov 6  }
   0x5   :  { %s5739_s21 = sld [smem:[%s7606_s0 + %s5678_s18]]   ;;  %s5681_s30 = smov 7  }
   0x6   :  { %s5744_s25 = sld [smem:[%s7606_s0 + %s5679_s22]]   ;;  %s5682_s4 = smov 8  }
   0x7   :  { %7750 = sst [smem:[#allocation6_spill]] %s5719_s5  ;;  %s5683_s10 = smov 9  }
   0x8   :  { %7751 = sst [smem:[#allocation7_spill]] %s5724_s9  ;;  %s5684_s15 = smov 10  }
   0x9   :  { %7752 = sst [smem:[#allocation8_spill]] %s5729_s13  ;;  %s5685_s20 = smov 11  }
   0xa   :  { %s5749_s29 = sld [smem:[%s7606_s0 + %s5680_s26]]   ;;  %s5686_s26 = smov 12  }
   0xb   :  { %s5754_s3 = sld [smem:[%s7606_s0 + %s5681_s30]]   ;;  %s5687_s1 = smov 13  }
   0xc   :  { %s5759_s8 = sld [smem:[%s7606_s0 + %s5682_s4]]   ;;  %s5688_s7 = smov 14  }
   0xd   :  { %s5764_s14 = sld [smem:[%s7606_s0 + %s5683_s10]]   ;;  %s5690_s22 = smov 16  }
   0xe   :  { %s5769_s19 = sld [smem:[%s7606_s0 + %s5684_s15]]   ;;  %s5689_s15 = smov 15  }
   0xf   :  { %s5774_s24 = sld [smem:[%s7606_s0 + %s5685_s20]]   ;;  %s5691_s28 = smov 17  }
  0x10   :  { %s5779_s30 = sld [smem:[%s7606_s0 + %s5686_s26]]   ;;  %s5692_s10 = smov 18  }
  0x11   :  { %7753 = sst [smem:[#allocation9_spill]] %s5754_s3  ;;  %s5693_s16 = smov 19  }
  0x12   :  { %7754 = sst [smem:[#allocation10_spill]] %s5759_s8  ;;  %s5694_s23 = smov 20  }
  0x13   :  { %s5784_s6 = sld [smem:[%s7606_s0 + %s5687_s1]]   ;;  %s5699_s1 = smov 25  }
  0x14   :  { %7755 = sst [smem:[#allocation11_spill]] %s5769_s19 }
  0x15   :  { %7756 = sst [smem:[#allocation12_spill]] %s5774_s24 }
  0x16   :  { %7757 = sst [smem:[#allocation13_spill]] %s5779_s30 }
  0x17   :  { %s5789_s12 = sld [smem:[%s7606_s0 + %s5688_s7]]  }
  0x18   :  { %s5794_s20 = sld [smem:[%s7606_s0 + %s5689_s15]]  }
  0x19   :  { %7758 = sst [smem:[#allocation14_spill]] %s5784_s6 }
  0x1a   :  { %s4810_s27 = sld [smem:[%s7606_s0 + %s5690_s22]]  }
  0x1b   :  { %s5802_s4 = sld [smem:[%s7606_s0 + %s5691_s28]]   ;;  %s5695_s28 = smov 21  }
  0x1c   :  { %s5817_s30 = sld [smem:[%s7606_s0 + %s5694_s23]]   ;;  %s5698_s23 = smov 24  }
  0x1d   :  { %7759 = sst [smem:[#allocation15_spill]] %s5789_s12 }
  0x1e   :  { %7760 = sst [smem:[#allocation16_spill]] %s5794_s20 }
  0x1f   :  { %s5807_s12 = sld [smem:[%s7606_s0 + %s5692_s10]]   ;;  %s5696_s10 = smov 22  }
  0x20   :  { %s5812_s20 = sld [smem:[%s7606_s0 + %s5693_s16]]   ;;  %v66_v0 = vstv %s4810_s27  ;;  %s5697_s16 = smov 23  }
  0x21   :  { %7761 = sst [smem:[#allocation17_spill]] %s5802_s4  ;;  %67 = vst [vmem:[#allocation2] sm:$0x1] %v66_v0  ;;  %s5700_s27 = smov 26  }
  0x22   :  { %7763 = sst [smem:[#allocation19_spill]] %s5817_s30  ;;  %s5703_s30 = smov 29  }
  0x23   :  { %s5822_s6 = sld [smem:[%s7606_s0 + %s5695_s28]]  }
  0x24   :  { %s5827_s24 = sld [smem:[%s7606_s0 + %s5696_s10]]  }
  0x25   :  { %7762 = sst [smem:[#allocation18_spill]] %s5807_s12  ;;  %s5702_s12 = smov 28  }
  0x26   :  { %s5832_s22 = sld [smem:[%s7606_s0 + %s5697_s16]]   ;;  %s5701_s16 = smov 27  }
  0x27   :  { %s5837_s28 = sld [smem:[%s7606_s0 + %s5698_s23]]  }
  0x28   :  { %s5842_s10 = sld [smem:[%s7606_s0 + %s5699_s1]]  }
  0x29   :  { %7764 = sst [smem:[#allocation20_spill]] %s5822_s6 }
  0x2a   :  { %s5847_s15 = sld [smem:[%s7606_s0 + %s5700_s27]]   ;;  %s5704_s27 = smov 30  }
  0x2b   :  { %s5852_s19 = sld [smem:[%s7606_s0 + %s5701_s16]]  }
  0x2c   :  { %7765 = sst [smem:[#allocation21_spill]] %s5832_s22 }
  0x2d   :  { %7766 = sst [smem:[#allocation22_spill]] %s5837_s28 }
  0x2e   :  { %7767 = sst [smem:[#allocation23_spill]] %s5842_s10 }
  0x2f   :  { %s5857_s4 = sld [smem:[%s7606_s0 + %s5702_s12]]  }
  0x30   :  { %7768 = sst [smem:[#allocation24_spill]] %s5847_s15 }
  0x31   :  { %s5862_s28 = sld [smem:[%s7606_s0 + %s5703_s30]]  }
  0x32   :  { %s5867_s15 = sld [smem:[%s7606_s0 + %s5704_s27]]  }
  0x35   :  { %7769 = sst [smem:[#allocation25_spill]] %s5857_s4 }
  0x36   :  { %68 = vsyncpa [#allocation4], 0 }
  0x37   :  { %70 = vsyncpa [#allocation4 + $0x1], 0  ;;  %s5869_s22 = smov 0   ;;  %s5871_s16 = smov 0  }
  0x38   :  { %s5873_s18 = smov 0   ;;  %s5875_s12 = smov 0  }
  0x39 LB: > { %s7770_s13 = sld [smem:[#allocation8_spill]]  ;;  %s7771_s10 = sld [smem:[#allocation23_spill]]  ;;  %s5673_s12 = sphi %s5875_s12, %s8023_s12   ;;  %s5669_s18 = sphi %s5873_s18, %s8022_s18   ;;  %s5665_s16 = sphi %s5871_s16, %s8021_s16   ;;  %s5661_s22 = sphi %s5869_s22, %s8020_s22  }
  0x3a   : > { %s7772_s8 = sld [smem:[#allocation10_spill]]  ;;  %s7773_s6 = sld [smem:[#allocation20_spill]] }
  0x3b   : > { %s5890_s0 = sadd.s32 4294967295, %s5673_s12   ;;  %s4826_s23 = sadd.s32 4294967294, %s5673_s12  }
  0x3c   : > { %s5894_s26 = sadd.s32 1, %s5673_s12   ;;  %s723_s30 = sadd.s32 1, %s5669_s18 }
  0x3d   : > { %s720_s1 = ssub.s32 %s5673_s12, %s5894_s26  ;;  %p733_p0 = scmp.ne.s32.totalorder %s5669_s18, %s5665_s16 }
  0x3e   : > { %p721_p1 = scmp.eq.s32.totalorder %s720_s1, 0  ;;  %p734_p2 = scmp.eq.s32.totalorder %s5890_s0, 1 }
  0x3f   : > { %p739_p3 = scmp.ne.s32.totalorder %s5665_s16, %s5661_s22  ;;  %p740_p4 = scmp.eq.s32.totalorder %s4826_s23, 1 }
  0x40   : > { %s5905_s2 = scalar_select %p721_p1, %s5669_s18, %s723_s30  }
  0x41   : > { %p5907_p5 = por %p734_p2, %p733_p0  ;;  %p5911_p6 = por %p740_p4, %p739_p3 }
  0x42   : > { %p4829_p7 = scmp.ge.s32.totalorder %s5673_s12, 1  ;;  %p862_p8 = scmp.lt.s32.totalorder %s5673_s12, 3 }
  0x44   : > { %p863_p9 = pnand %p4829_p7, %p862_p8 }
  0x46   : > { %866 = sbr.rel (%p863_p9) target bundleno = 2385 (0x951), region = 140 }
  0x4d   : > { %v1025_v1 = vld [vmem:[%s7770_s13] sm:$0xff]  ;;  %s7776_s9 = sld [smem:[#allocation7_spill]]  ;;  %v1026_v2 = vld [vmem:[%s7770_s13 + $0x8] sm:$0xff]  ;;  %s7777_s5 = sld [smem:[#allocation6_spill]]  ;;  %v1027_v3 = vld [vmem:[%s7770_s13 + $0x10] sm:$0xff]  ;;  %v5705_v5 = vmov 0  }
  0x4e   : > { %s4831_s11 = sshll.u32 %s5890_s0, 3  ;;  %v5387_v4 = vpack.c.bf16 %v1026_v2, %v1025_v1  ;;  %5574 = vset.pattern.permute.xlu1 %v5705_v5  ;;  %5573 = vset.pattern.permute.xlu0 %v5705_v5  ;;  %v1028_v6 = vld [vmem:[%s7770_s13 + $0x18] sm:$0xff]  ;;  %vm7739_vm0 = vcmask 261120   ;;  %vm1726_vm1 = vcmask 7168   ;;  %vm7730_vm2 = vmmov 0   ;;  %s7853_s3 = sld [smem:[#allocation9_spill]] }
  0x4f   : > { %p948_p10 = scmp.lt.s32.totalorder %s4831_s11, 15  ;;  %v5391_v7 = vpack.c.bf16 %v1028_v6, %v1027_v3  ;;  %vm7738_vm3 = vcmask 1041409   ;;  %vm7737_vm4 = vcmask 1042434   ;;  %vm7735_vm5 = vcmask 1044484   ;;  %s7863_s4 = sld [smem:[#allocation25_spill]] }
  0x50   : > { %5388 = vmatprep.subr.bf16.mxu0 %v5387_v4  ;;  %vm7736_vm6 = vcmask 1043459   ;;  %vm7734_vm7 = vcmask 1045509   ;;  %vm7733_vm8 = vcmask 1046534   ;;  %vm7732_vm9 = vcmask 1047559  }
  0x51   : > { %s8025_s11 = smov (!%p948_p10, %s4831_s11), 15  ;;  %5390 = vmatpush3.bf16.msra.mxu0 %v5387_v4 }
  0x52   : > { %5392 = vmatprep.subr.bf16.mxu0 %v5391_v7  ;;  %s4939_s23 = sshll.u32 %s8025_s11, 5  ;;  %s7855_s11 = sld [smem:[#allocation22_spill]] }
  0x53   : > { %s5923_s30 = scalar_lea.vmem %s7776_s9, %s4939_s23  ;;  %s5926_s1 = scalar_lea.vmem %s7777_s5, %s4939_s23 }
  0x54   : > { %v997_v8 = vld [vmem:[%s5923_s30 + $0x20] sm:$0xff]  ;;  %v5934_v11 = vld [vmem:[%s5926_s1 + $0x8] sm:$0xff]  ;;  %v5940_v13 = vld [vmem:[%s5926_s1 + $0x10] sm:$0xff]  ;;  %s7856_s23 = sld [smem:[#allocation17_spill]]  ;;  %s7864_s5 = sld [smem:[#allocation24_spill]] }
  0x55   : > { %v993_v9 = vld [vmem:[%s5923_s30] sm:$0xff]  ;;  %5394 = vmatpush3.bf16.msra.mxu0 %v5391_v7  ;;  %1556 = vperm.xlu1 %5574, %v997_v8   ;;  %v998_v12 = vld [vmem:[%s5923_s30 + $0x28] sm:$0xff]  ;;  %v5948_v15 = vld [vmem:[%s5926_s1 + $0x18] sm:$0xff]  ;;  %v1740_v23 = vsel %vm1726_vm1, %v997_v8, 0.0 }
  0x56   : > { %v5931_v10 = vld [vmem:[%s5926_s1] sm:$0xff]  ;;  %1536 = vperm.xlu0 %5573, %v993_v9   ;;  %v994_v14 = vld [vmem:[%s5923_s30 + $0x8] sm:$0xff]  ;;  %v999_v20 = vld [vmem:[%s5923_s30 + $0x30] sm:$0xff]  ;;  %v1727_v24 = vsel %vm1726_vm1, %v993_v9, 0.0  ;;  %v1741_v25 = vsel %vm1726_vm1, %v998_v12, 0.0 }
  0x57   : > { %5102 = vmatprep.mubr.msk.f32.mxu0 %vm7739_vm0, %v5931_v10  ;;  %v1002_v16 = vld [vmem:[%s5923_s30 + $0x48] sm:$0xff]  ;;  %v5952_v17 = vld [vmem:[%s5926_s1 + $0x20] sm:$0xff]  ;;  %v5964_v21 = vld [vmem:[%s5926_s1 + $0x30] sm:$0xff]  ;;  %v1728_v26 = vsel %vm1726_vm1, %v994_v14, 0.0  ;;  %v1742_v30 = vadd.f32 %v1741_v25, %v1740_v23  ;;  %v1743_v35 = vsel %vm1726_vm1, %v999_v20, 0.0 }
  0x58   : > { %5103 = vmatmul.mubr.msk.f32.vlgmr.msra.gmra.mrb[0].mxu0 %vm7739_vm0, %v5934_v11  ;;  %v1001_v18 = vld [vmem:[%s5923_s30 + $0x40] sm:$0xff]  ;;  %v5960_v19 = vld [vmem:[%s5926_s1 + $0x28] sm:$0xff]  ;;  %v995_v22 = vld [vmem:[%s5923_s30 + $0x10] sm:$0xff]  ;;  %v1729_v31 = vadd.f32 %v1728_v26, %v1727_v24  ;;  %v1754_v33 = vsel %vm1726_vm1, %v1002_v16, 0.0 }
  0x59   : > { %1561 = vperm.xlu1 %5574, %v998_v12   ;;  %5105 = vmatprep.mubr.msk.f32.mxu0 %vm7739_vm0, %v5940_v13  ;;  %v5976_v27 = vld [vmem:[%s5926_s1 + $0x38] sm:$0xff]  ;;  %v1006_v28 = vld [vmem:[%s5923_s30 + $0x68] sm:$0xff]  ;;  %v5980_v29 = vld [vmem:[%s5926_s1 + $0x40] sm:$0xff]  ;;  %v1753_v34 = vsel %vm1726_vm1, %v1001_v18, 0.0  ;;  %v1730_v36 = vsel %vm1726_vm1, %v995_v22, 0.0  ;;  %v1744_v44 = vadd.f32 %v1743_v35, %v1742_v30 }
  0x5a   : > { %1541 = vperm.xlu0 %5573, %v994_v14   ;;  %v1005_v32 = vld [vmem:[%s5923_s30 + $0x60] sm:$0xff]  ;;  %v1767_v37 = vsel %vm1726_vm1, %v1006_v28, 0.0  ;;  %v5994_v39 = vld [vmem:[%s5926_s1 + $0x48] sm:$0xff]  ;;  %v1003_v41 = vld [vmem:[%s5923_s30 + $0x50] sm:$0xff]  ;;  %v1755_v43 = vadd.f32 %v1754_v33, %v1753_v34  ;;  %v1731_v45 = vadd.f32 %v1730_v36, %v1729_v31 }
  0x5b   : > { %v1766_v38 = vsel %vm1726_vm1, %v1005_v32, 0.0  ;;  %v1009_v40 = vld [vmem:[%s5923_s30 + $0x80] sm:$0xff]  ;;  %v5999_v42 = vld [vmem:[%s5926_s1 + $0x50] sm:$0xff]  ;;  %v6003_v47 = vld [vmem:[%s5926_s1 + $0x58] sm:$0xff]  ;;  %v1756_v52 = vsel %vm1726_vm1, %v1003_v41, 0.0 }
  0x5c   : > { %5106 = vmatmul.mubr.msk.f32.gmra.mrb[2].mxu0 %vm7739_vm0, %v5948_v15  ;;  %v1779_v46 = vsel %vm1726_vm1, %v1009_v40, 0.0  ;;  %v996_v48 = vld [vmem:[%s5923_s30 + $0x18] sm:$0xff]  ;;  %v1010_v49 = vld [vmem:[%s5923_s30 + $0x88] sm:$0xff]  ;;  %v1768_v51 = vadd.f32 %v1767_v37, %v1766_v38  ;;  %v1007_v54 = vld [vmem:[%s5923_s30 + $0x70] sm:$0xff]  ;;  %v1757_v3 = vadd.f32 %v1756_v52, %v1755_v43 }
  0x5d   : > { %1581 = vperm.xlu1 %5574, %v1002_v16   ;;  %5108 = vmatprep.mubr.msk.f32.mxu0 %vm7739_vm0, %v5952_v17  ;;  %v6008_v50 = vld [vmem:[%s5923_s30 + $0x38] sm:$0xff]  ;;  %v1732_v53 = vsel %vm1726_vm1, %v996_v48, 0.0  ;;  %v6018_v56 = vld [vmem:[%s5923_s30 + $0xa8] sm:$0xff]  ;;  %v6021_v57 = vld [vmem:[%s5923_s30 + $0xa0] sm:$0xff]  ;;  %v1780_v58 = vsel %vm1726_vm1, %v1010_v49, 0.0  ;;  %v1769_v60 = vsel %vm1726_vm1, %v1007_v54, 0.0 }
  0x5e   : > { %1576 = vperm.xlu0 %5573, %v1001_v18   ;;  %v1745_v55 = vsel %vm1726_vm1, %v6008_v50, 0.0  ;;  %v6027_v59 = vld [vmem:[%s5926_s1 + $0x60] sm:$0xff]  ;;  %v1793_v61 = vsel %vm1726_vm1, %v6018_v56, 0.0  ;;  %v1792_v62 = vsel %vm1726_vm1, %v6021_v57, 0.0  ;;  %v6035_v63 = vld [vmem:[%s5923_s30 + $0xb0] sm:$0xff]  ;;  %v6038_v0 = vld [vmem:[%s5923_s30 + $0x78] sm:$0xff]  ;;  %v1733_v4 = vadd.f32 %v1732_v53, %v1731_v45 }
  0x5f   : > { %v6041_v1 = vld [vmem:[%s5923_s30 + $0xe8] sm:$0xff]  ;;  %v6044_v2 = vld [vmem:[%s5923_s30 + $0xe0] sm:$0xff]  ;;  %v1746_v5 = vadd.f32 %v1745_v55, %v1744_v44  ;;  %v6047_v6 = vld [vmem:[%s5923_s30 + $0x90] sm:$0xff]  ;;  %v1781_v7 = vadd.f32 %v1780_v58, %v1779_v46  ;;  %v1770_v9 = vadd.f32 %v1769_v60, %v1768_v51  ;;  %v1794_v12 = vadd.f32 %v1793_v61, %v1792_v62 }
  0x60   : > { %5109 = vmatmul.mubr.msk.f32.gmra.mrb[4].mxu0 %vm7739_vm0, %v5960_v19  ;;  %v6052_v8 = vld [vmem:[%s5926_s1 + $0x68] sm:$0xff]  ;;  %v1782_v14 = vsel %vm1726_vm1, %v6047_v6, 0.0  ;;  %v6057_v16 = vld [vmem:[%s5923_s30 + $0x58] sm:$0xff]  ;;  %v1771_v23 = vsel %vm1726_vm1, %v6038_v0, 0.0  ;;  %v1819_v24 = vsel %vm1726_vm1, %v6041_v1, 0.0  ;;  %v1818_v25 = vsel %vm1726_vm1, %v6044_v2, 0.0 }
  0x61   : > { %1566 = vperm.xlu1 %5574, %v999_v20   ;;  %5111 = vmatprep.mubr.msk.f32.mxu0 %vm7739_vm0, %v5964_v21  ;;  %v6062_v18 = vld [vmem:[%s5923_s30 + $0xc8] sm:$0xff]  ;;  %v6065_v20 = vld [vmem:[%s5923_s30 + $0xc0] sm:$0xff]  ;;  %v6076_v26 = vld [vmem:[%s5926_s1 + $0x70] sm:$0xff]  ;;  %v1734_v34 = vrot.slane %v1733_v4, 4  ;;  %v1747_v35 = vrot.slane %v1746_v5, 4  ;;  %v1783_v38 = vadd.f32 %v1782_v14, %v1781_v7  ;;  %v1820_v43 = vadd.f32 %v1819_v24, %v1818_v25 }
  0x62   : > { %1546 = vperm.xlu0 %5573, %v995_v22   ;;  %v1795_v22 = vsel %vm1726_vm1, %v6035_v63, 0.0  ;;  %v1806_v30 = vsel %vm1726_vm1, %v6062_v18, 0.0  ;;  %v1805_v31 = vsel %vm1726_vm1, %v6065_v20, 0.0  ;;  %v6088_v33 = vld [vmem:[%s5923_s30 + $0xb8] sm:$0xff]  ;;  %v6091_v36 = vld [vmem:[%s5923_s30 + $0xd0] sm:$0xff]  ;;  %v6109_v51 = vld [vmem:[%s5926_s1 + $0x80] sm:$0xff] }
  0x63   : > { %v6094_v37 = vld [vmem:[%s5923_s30 + $0x98] sm:$0xff]  ;;  %v1807_v46 = vadd.f32 %v1806_v30, %v1805_v31  ;;  %v1808_v52 = vsel %vm1726_vm1, %v6091_v36, 0.0  ;;  %v1735_v55 = vadd.f32 %v1734_v34, %v1733_v4  ;;  %v1748_v60 = vadd.f32 %v1747_v35, %v1746_v5  ;;  %v6147_v34 = vld [vmem:[%s5926_s1 + $0xa0] sm:$0xff] }
  0x64   : > { %5112 = vmatmul.mubr.msk.f32.gmra.mrb[6].mxu0 %vm7739_vm0, %v5976_v27  ;;  %v6101_v44 = vld [vmem:[%s5926_s1 + $0x78] sm:$0xff]  ;;  %v1784_v53 = vsel %vm1726_vm1, %v6094_v37, 0.0 }
  0x65   : > { %1601 = vperm.xlu1 %5574, %v1006_v28   ;;  %5114 = vmatprep.mubr.msk.f32.mxu0 %vm7739_vm0, %v5980_v29  ;;  %v1758_v28 = vsel %vm1726_vm1, %v6057_v16, 0.0  ;;  %v6119_v58 = vld [vmem:[%s5923_s30 + $0xd8] sm:$0xff]  ;;  %v1785_v4 = vadd.f32 %v1784_v53, %v1783_v38  ;;  %v1749_v14 = vrot.slane %v1748_v60, 2  ;;  %v1736_v25 = vrot.slane %v1735_v55, 2 }
  0x66   : > { %1596 = vperm.xlu0 %5573, %v1005_v32   ;;  %v6085_v32 = vld [vmem:[%s5923_s30 + $0xf0] sm:$0xff]  ;;  %v1759_v45 = vadd.f32 %v1758_v28, %v1757_v3  ;;  %v6127_v3 = vld [vmem:[%s5926_s1 + $0x88] sm:$0xff] }
  0x67   : > { %v1786_v30 = vrot.slane %v1785_v4, 4  ;;  %v1750_v35 = vadd.f32 %v1749_v14, %v1748_v60  ;;  %v6179_v14 = vld [vmem:[%s5926_s1 + $0xc8] sm:$0xff] }
  0x68   : > { %5115 = vmatmul.mubr.msk.f32.gmra.mrb[8].mxu0 %vm7739_vm0, %v5994_v39  ;;  %v1760_v7 = vrot.slane %v1759_v45, 4 }
  0x69   : > { %1616 = vperm.xlu1 %5574, %v1009_v40   ;;  %5117 = vmatprep.mubr.msk.f32.mxu0 %vm7739_vm0, %v5999_v42  ;;  %v1796_v40 = vadd.f32 %v1795_v22, %v1794_v12  ;;  %v6133_v12 = vld [vmem:[%s5926_s1 + $0x90] sm:$0xff] }
  0x6a   : > { %1586 = vperm.xlu0 %5573, %v1003_v41   ;;  %v1772_v41 = vadd.f32 %v1771_v23, %v1770_v9  ;;  %v1809_v9 = vadd.f32 %v1808_v52, %v1807_v46  ;;  %v1761_v28 = vadd.f32 %v1760_v7, %v1759_v45  ;;  %v6155_v45 = vld [vmem:[%s5926_s1 + $0xa8] sm:$0xff] }
  0x6c   : > { %5118 = vmatmul.mubr.msk.f32.gmra.mrb[10].mxu0 %vm7739_vm0, %v6003_v47  ;;  %v1773_v61 = vrot.slane %v1772_v41, 4 }
  0x6d   : > { %1551 = vperm.xlu1 %5574, %v996_v48   ;;  %5120 = vmatprep.mubr.msk.f32.mxu0 %vm7739_vm0, %v6027_v59  ;;  %v1821_v48 = vsel %vm1726_vm1, %v6085_v32, 0.0 }
  0x6e   : > { %1621 = vperm.xlu0 %5573, %v1010_v49   ;;  %v1797_v49 = vsel %vm1726_vm1, %v6088_v33, 0.0  ;;  %v1774_v22 = vadd.f32 %v1773_v61, %v1772_v41  ;;  %v1737_v41 = vadd.f32 %v1736_v25, %v1735_v55  ;;  %v6167_v61 = vld [vmem:[%s5926_s1 + $0xb8] sm:$0xff] }
  0x6f   : > { %v1798_v62 = vadd.f32 %v1797_v49, %v1796_v40  ;;  %v1751_v49 = vrot.slane %v1750_v35, 1 }
  0x70   : > { %5121 = vmatmul.mubr.msk.f32.gmra.mrb[12].mxu0 %vm7739_vm0, %v6052_v8  ;;  %v1775_v38 = vrot.slane %v1774_v22, 2  ;;  %v1738_v55 = vrot.slane %v1737_v41, 1 }
  0x71   : > { %1606 = vperm.xlu1 %5574, %v1007_v54   ;;  %5123 = vmatprep.mubr.msk.f32.mxu0 %vm7739_vm0, %v6076_v26  ;;  %v6116_v54 = vld [vmem:[%s5923_s30 + $0xf8] sm:$0xff]  ;;  %v1799_v23 = vrot.slane %v1798_v62, 4  ;;  %v1752_v7 = vadd.f32 %v1751_v49, %v1750_v35  ;;  %v6195_v35 = vld [vmem:[%s5926_s1 + $0xe0] sm:$0xff]  ;;  %s7857_s30 = sld [smem:[#allocation11_spill]] }
  0x72   : > { %1571 = vperm.xlu0 %5573, %v6008_v50   ;;  %v1822_v50 = vadd.f32 %v1821_v48, %v1820_v43  ;;  %v1823_v5 = vsel %vm1726_vm1, %v6116_v54, 0.0  ;;  %v1762_v43 = vrot.slane %v1761_v28, 2  ;;  %v6159_v48 = vld [vmem:[%s5926_s1 + $0xb0] sm:$0xff]  ;;  %v1776_v52 = vadd.f32 %v1775_v38, %v1774_v22 }
  0x73   : > { %5575 = vrcp.f32 %v1752_v7  ;;  %v1032_v7 = vld [vmem:[%s5739_s21 + $0x10] sm:$0xff] }
  0x74   : > { %5124 = vmatmul.mubr.msk.f32.gmra.mrb[14].mxu0 %vm7739_vm0, %v6101_v44  ;;  %v1824_v24 = vadd.f32 %v1823_v5, %v1822_v50  ;;  %v1763_v60 = vadd.f32 %v1762_v43, %v1761_v28  ;;  %v1739_v5 = vadd.f32 %v1738_v55, %v1737_v41  ;;  %v1031_v55 = vld [vmem:[%s5739_s21 + $0x8] sm:$0xff] }
  0x75   : > { %1641 = vperm.xlu1 %5574, %v6018_v56   ;;  %5126 = vmatprep.mubr.msk.f32.mxu0 %vm7739_vm0, %v6109_v51  ;;  %v1810_v56 = vsel %vm1726_vm1, %v6119_v58, 0.0 }
  0x76   : > { %1636 = vperm.xlu0 %5573, %v6021_v57   ;;  %v6143_v57 = vld [vmem:[%s5926_s1 + $0x98] sm:$0xff]  ;;  %v1811_v31 = vadd.f32 %v1810_v56, %v1809_v9  ;;  %v1825_v40 = vrot.slane %v1824_v24, 4  ;;  %v1777_v9 = vrot.slane %v1776_v52, 1  ;;  %v1764_v56 = vrot.slane %v1763_v60, 1 }
  0x77   : > { %5577 = vrcp.f32 %v1739_v5  ;;  %v1100_v5 = vld [vmem:[%s7771_s10] sm:$0xff] }
  0x78   : > { %5127 = vmatmul.mubr.msk.f32.gmra.mrb[16].mxu0 %vm7739_vm0, %v6127_v3  ;;  %v1812_v46 = vrot.slane %v1811_v31, 4  ;;  %v1765_v28 = vadd.f32 %v1764_v56, %v1763_v60  ;;  %v1101_v56 = vld [vmem:[%s7771_s10 + $0x8] sm:$0xff] }
  0x79   : > { %1626 = vperm.xlu1 %5574, %v6047_v6   ;;  %5129 = vmatprep.mubr.msk.f32.mxu0 %vm7739_vm0, %v6133_v12  ;;  %v1800_v6 = vadd.f32 %v1799_v23, %v1798_v62  ;;  %v6171_v62 = vld [vmem:[%s5926_s1 + $0xc0] sm:$0xff]  ;;  %v6183_v23 = vld [vmem:[%s5926_s1 + $0xd0] sm:$0xff] }
  0x7a   : > { %1591 = vperm.xlu0 %5573, %v6057_v16   ;;  %v1787_v16 = vadd.f32 %v1786_v30, %v1785_v4  ;;  %v1813_v50 = vadd.f32 %v1812_v46, %v1811_v31 }
  0x7b   : > { %v1801_v53 = vrot.slane %v1800_v6, 2 }
  0x7c   : > { %5130 = vmatmul.mubr.msk.f32.gmra.mrb[18].mxu0 %vm7739_vm0, %v6143_v57  ;;  %v1814_v22 = vrot.slane %v1813_v50, 2 }
  0x7d   : > { %1661 = vperm.xlu1 %5574, %v6062_v18   ;;  %5132 = vmatprep.mubr.msk.f32.mxu0 %vm7739_vm0, %v6147_v34  ;;  %v1826_v18 = vadd.f32 %v1825_v40, %v1824_v24  ;;  %v1802_v4 = vadd.f32 %v1801_v53, %v1800_v6  ;;  %v1778_v24 = vadd.f32 %v1777_v9, %v1776_v52  ;;  %v6203_v40 = vld [vmem:[%s5926_s1 + $0xe8] sm:$0xff]  ;;  %v5576_v46 = vpop.eup %5575  ;;  %v1033_v9 = vld [vmem:[%s5739_s21 + $0x18] sm:$0xff] }
  0x7e   : > { %1656 = vperm.xlu0 %5573, %v6065_v20   ;;  %v1788_v20 = vrot.slane %v1787_v16, 2  ;;  %v1815_v31 = vadd.f32 %v1814_v22, %v1813_v50  ;;  %v7615_v50 = vmov 0.0|0.0   ;;  %v1102_v22 = vld [vmem:[%s7771_s10 + $0x10] sm:$0xff] }
  0x7f   : > { %v1803_v25 = vrot.slane %v1802_v4, 1  ;;  %5579 = vrcp.f32 %v1778_v24  ;;  %5395 = vmatprep.subr.bf16.mxu1 %v7615_v50  ;;  %v1103_v24 = vld [vmem:[%s7771_s10 + $0x18] sm:$0xff] }
  0x80   : > { %5133 = vmatmul.mubr.msk.f32.gmra.mrb[20].mxu0 %vm7739_vm0, %v6155_v45  ;;  %5581 = vrcp.f32 %v1765_v28  ;;  %v1816_v41 = vrot.slane %v1815_v31, 1 }
  0x81   : > { %1646 = vperm.xlu1 %5574, %v6035_v63   ;;  %5135 = vmatprep.mubr.msk.f32.mxu0 %vm7739_vm0, %v6159_v48  ;;  %v1827_v63 = vrot.slane %v1826_v18, 2  ;;  %v1804_v38 = vadd.f32 %v1803_v25, %v1802_v4  ;;  %v5399_v4 = vpack.c.bf16 %v1033_v9, %v1032_v7  ;;  %v5450_v25 = vpack.c.bf16 %v1103_v24, %v1102_v22 }
  0x82   : > { %1611 = vperm.xlu0 %5573, %v6038_v0   ;;  %v1789_v0 = vadd.f32 %v1788_v20, %v1787_v16  ;;  %v1817_v16 = vadd.f32 %v1816_v41, %v1815_v31 }
  0x83   : > { %5583 = vrcp.f32 %v1804_v38 }
  0x84   : > { %5136 = vmatmul.mubr.msk.f32.gmra.mrb[22].mxu0 %vm7739_vm0, %v6167_v61  ;;  %v1790_v30 = vrot.slane %v1789_v0, 1 }
  0x85   : > { %1681 = vperm.xlu1 %5574, %v6041_v1   ;;  %5138 = vmatprep.mubr.msk.f32.mxu0 %vm7739_vm0, %v6171_v62  ;;  %v1828_v1 = vadd.f32 %v1827_v63, %v1826_v18  ;;  %v1030_v18 = vld [vmem:[%s5739_s21] sm:$0xff]  ;;  %v7617_v63 = vmov 0.0  }
  0x86   : > { %1676 = vperm.xlu0 %5573, %v6044_v2   ;;  %v6191_v2 = vld [vmem:[%s5926_s1 + $0xd8] sm:$0xff]  ;;  %v5396_v20 = vpack.c.bf16 %v1031_v55, %v1030_v18  ;;  %5158 = vmatprep.mubr.msk.f32.mxu1 %vm7730_vm2, %v7617_v63 }
  0x87   : > { %v1829_v6 = vrot.slane %v1828_v1, 1 }
  0x88   : > { %5139 = vmatmul.mubr.msk.f32.gmra.mrb[24].mxu0 %vm7739_vm0, %v6179_v14  ;;  %5397 = vmatpush3.bf16.msra.mxu1 %v5396_v20 }
  0x89   : > { %1666 = vperm.xlu1 %5574, %v6091_v36   ;;  %5141 = vmatprep.mubr.msk.f32.mxu0 %vm7739_vm0, %v6183_v23  ;;  %v1791_v36 = vadd.f32 %v1790_v30, %v1789_v0  ;;  %v1830_v43 = vadd.f32 %v1829_v6, %v1828_v1  ;;  %v5446_v0 = vpack.c.bf16 %v1101_v56, %v1100_v5 }
  0x8a   : > { %1631 = vperm.xlu0 %5573, %v6094_v37   ;;  %v6207_v37 = vld [vmem:[%s5926_s1 + $0xf0] sm:$0xff]  ;;  %5398 = vmatprep.subr.bf16.mxu1 %v7615_v50 }
  0x8b   : > { %5585 = vrcp.f32 %v1791_v36  ;;  %5447 = vmatprep.subr.bf16.mxu0 %v5446_v0 }
  0x8c   : > { %5142 = vmatmul.mubr.msk.f32.gmra.mrb[26].mxu0 %vm7739_vm0, %v6191_v2  ;;  %5587 = vrcp.f32 %v1830_v43  ;;  %5400 = vmatpush3.bf16.msra.mxu1 %v5399_v4 }
  0x8d   : > { %1686 = vperm.xlu1 %5574, %v6085_v32   ;;  %5144 = vmatprep.mubr.msk.f32.mxu0 %vm7739_vm0, %v6195_v35  ;;  %v6215_v32 = vld [vmem:[%s5926_s1 + $0xf8] sm:$0xff]  ;;  %5589 = vrcp.f32 %v1817_v16  ;;  %s7858_s1 = sld [smem:[#allocation19_spill]] }
  0x8e   : > { %1651 = vperm.xlu0 %5573, %v6088_v33   ;;  %v5578_v33 = vpop.eup %5577  ;;  %5401 = vmatprep.subr.bf16.mxu1 %v7615_v50 }
  0x8f   : > { %v5580_v49 = vpop.eup %5579  ;;  %5449 = vmatpush3.bf16.msra.mxu0 %v5446_v0 }
  0x90   : > { %5145 = vmatmul.mubr.msk.f32.gmra.mrb[28].mxu0 %vm7739_vm0, %v6203_v40  ;;  %5451 = vmatprep.subr.bf16.mxu0 %v5450_v25 }
  0x91   : > { %1691 = vperm.xlu1 %5574, %v6116_v54   ;;  %5147 = vmatprep.mubr.msk.f32.mxu0 %vm7739_vm0, %v6207_v37  ;;  %v5582_v54 = vpop.eup %5581 }
  0x92   : > { %1671 = vperm.xlu0 %5573, %v6119_v58   ;;  %v5584_v52 = vpop.eup %5583 }
  0x93   : > { %5453 = vmatpush3.bf16.msra.mxu0 %v5450_v25 }
  0x94   : > { %5148 = vmatmul.mubr.msk.f32.gmra.mrb[30].mxu0 %vm7739_vm0, %v6215_v32 }
  0x95   : > { %1990 = vperm.xlu1 %5574, %v5576_v46   ;;  %v5586_v53 = vpop.eup %5585 }
  0x96   : > { %1985 = vperm.xlu0 %5573, %v5578_v33   ;;  %v5588_v58 = vpop.eup %5587 }
  0x97   : > { %v5590_v60 = vpop.eup %5589 }
  0x99   : > { %2000 = vperm.xlu1 %5574, %v5580_v49  }
  0x9a   : > { %1995 = vperm.xlu0 %5573, %v5582_v54  }
  0x9d   : > { %2010 = vperm.xlu1 %5574, %v5584_v52  }
  0x9e   : > { %2005 = vperm.xlu0 %5573, %v5586_v53  }
  0xa1   : > { %2020 = vperm.xlu1 %5574, %v5588_v58  }
  0xa2   : > { %2015 = vperm.xlu0 %5573, %v5590_v60  }
  0xd4   : > { %v6233_v1 = vpop.permute.xlu1 %1556 }
  0xd5   : > { %7778 = vst [vmem:[#allocation26_spill] sm:$0xff] %v6233_v1  ;;  %v6235_v28 = vpop.permute.xlu0 %1536 }
  0xd6   : > { %7779 = vst [vmem:[#allocation27_spill] sm:$0xff] %v6235_v28  ;;  %v1694_v53 = vmul.f32 %v6235_v28, %v5931_v10 }
  0xd8   : > { %v6237_v30 = vpop.permute.xlu1 %1561  ;;  %v1847_v10 = vmul.f32 %v1694_v53, %v6235_v28 }
  0xd9   : > { %7780 = vst [vmem:[#allocation28_spill] sm:$0xff] %v6237_v30  ;;  %v6239_v31 = vpop.permute.xlu0 %1541  ;;  %v1699_v18 = vmul.f32 %v6237_v30, %v5960_v19 }
  0xda   : > { %7781 = vst [vmem:[#allocation29_spill] sm:$0xff] %v6239_v31  ;;  %v1695_v49 = vmul.f32 %v6239_v31, %v5934_v11  ;;  %v1698_v11 = vmul.f32 %v6233_v1, %v5952_v17  ;;  %v1879_v24 = vsel %vm7739_vm0, %v1847_v10, 0.0 }
  0xdb   : > { %v1852_v19 = vmul.f32 %v1699_v18, %v6237_v30 }
  0xdc   : > { %v6241_v38 = vpop.permute.xlu1 %1581  ;;  %v1848_v55 = vmul.f32 %v1695_v49, %v6239_v31 }
  0xdd   : > { %7782 = vst [vmem:[#allocation30_spill] sm:$0xff] %v6241_v38  ;;  %v6243_v6 = vpop.permute.xlu0 %1576  ;;  %v1703_v4 = vmul.f32 %v6241_v38, %v5994_v39  ;;  %v1893_v49 = vsel %vm7739_vm0, %v1852_v19, 0.0 }
  0xde   : > { %7783 = vst [vmem:[#allocation31_spill] sm:$0xff] %v6243_v6  ;;  %v1880_v5 = vsel %vm7739_vm0, %v1848_v55, 0.0 }
  0xdf   : > { %v1881_v53 = vadd.f32 %v1880_v5, %v1879_v24 }
  0xe0   : > { %v6245_v36 = vpop.permute.xlu1 %1566 }
  0xe1   : > { %7784 = vst [vmem:[#allocation32_spill] sm:$0xff] %v6245_v36  ;;  %v6247_v41 = vpop.permute.xlu0 %1546 }
  0xe2   : > { %7785 = vst [vmem:[#allocation33_spill] sm:$0xff] %v6247_v41  ;;  %v1696_v58 = vmul.f32 %v6247_v41, %v5940_v13  ;;  %v1700_v13 = vmul.f32 %v6245_v36, %v5964_v21  ;;  %v1851_v21 = vmul.f32 %v1698_v11, %v6233_v1 }
  0xe4   : > { %v6249_v43 = vpop.permute.xlu1 %1601  ;;  %v1849_v9 = vmul.f32 %v1696_v58, %v6247_v41  ;;  %v1853_v39 = vmul.f32 %v1700_v13, %v6245_v36 }
  0xe5   : > { %7786 = vst [vmem:[#allocation34_spill] sm:$0xff] %v6249_v43  ;;  %v6251_v16 = vpop.permute.xlu0 %1596  ;;  %v1707_v18 = vmul.f32 %v6249_v43, %v6052_v8 }
  0xe6   : > { %7787 = vst [vmem:[#allocation35_spill] sm:$0xff] %v6251_v16  ;;  %v1882_v25 = vsel %vm7739_vm0, %v1849_v9, 0.0  ;;  %v1706_v55 = vmul.f32 %v6251_v16, %v6027_v59  ;;  %v1895_v19 = vsel %vm7739_vm0, %v1853_v39, 0.0 }
  0xe7   : > { %v1883_v9 = vadd.f32 %v1882_v25, %v1881_v53 }
  0xe8   : > { %v6253_v46 = vpop.permute.xlu1 %1616  ;;  %v1859_v24 = vmul.f32 %v1706_v55, %v6251_v16 }
  0xe9   : > { %7788 = vst [vmem:[#allocation36_spill] sm:$0xff] %v6253_v46  ;;  %v6255_v33 = vpop.permute.xlu0 %1586 }
  0xea   : > { %7789 = vst [vmem:[#allocation37_spill] sm:$0xff] %v6255_v33 }
  0xec   : > { %v6259_v54 = vpop.permute.xlu1 %1551 }
  0xed   : > { %7790 = vst [vmem:[#allocation38_spill] sm:$0xff] %v6259_v54  ;;  %v6261_v52 = vpop.permute.xlu0 %1621  ;;  %v1697_v60 = vmul.f32 %v6259_v54, %v5948_v15  ;;  %v1702_v15 = vmul.f32 %v6243_v6, %v5980_v29  ;;  %v1704_v29 = vmul.f32 %v6255_v33, %v5999_v42  ;;  %v1892_v42 = vsel %vm7739_vm0, %v1851_v21, 0.0 }
  0xee   : > { %7791 = vst [vmem:[#allocation39_spill] sm:$0xff] %v6261_v52  ;;  %v1860_v21 = vmul.f32 %v1707_v18, %v6249_v43 }
  0xef   : > { %v1850_v17 = vmul.f32 %v1697_v60, %v6259_v54  ;;  %v1855_v58 = vmul.f32 %v1702_v15, %v6243_v6  ;;  %v1894_v15 = vadd.f32 %v1893_v49, %v1892_v42  ;;  %v1918_v42 = vsel %vm7739_vm0, %v1859_v24, 0.0 }
  0xf0   : > { %v6272_v20 = vpop.permute.xlu1 %1606 }
  0xf1   : > { %7792 = vst [vmem:[#allocation40_spill] sm:$0xff] %v6272_v20  ;;  %v6276_v7 = vpop.permute.xlu0 %1571  ;;  %v1884_v10 = vsel %vm7739_vm0, %v1850_v17, 0.0  ;;  %v1708_v8 = vmul.f32 %v6272_v20, %v6076_v26  ;;  %v1905_v17 = vsel %vm7739_vm0, %v1855_v58, 0.0  ;;  %v1710_v26 = vmul.f32 %v6253_v46, %v6109_v51 }
  0xf2   : > { %7793 = vst [vmem:[#allocation41_spill] sm:$0xff] %v6276_v7  ;;  %v1701_v56 = vmul.f32 %v6276_v7, %v5976_v27  ;;  %v1856_v27 = vmul.f32 %v1703_v4, %v6241_v38  ;;  %v1857_v4 = vmul.f32 %v1704_v29, %v6255_v33  ;;  %v1896_v49 = vadd.f32 %v1895_v19, %v1894_v15 }
  0xf3   : > { %v1861_v58 = vmul.f32 %v1708_v8, %v6272_v20  ;;  %v1919_v51 = vsel %vm7739_vm0, %v1860_v21, 0.0 }
  0xf4   : > { %v6291_v0 = vpop.permute.xlu1 %1641  ;;  %v1854_v60 = vmul.f32 %v1701_v56, %v6276_v7  ;;  %v1906_v5 = vsel %vm7739_vm0, %v1856_v27, 0.0  ;;  %v1885_v56 = vadd.f32 %v1884_v10, %v1883_v9  ;;  %v1908_v53 = vsel %vm7739_vm0, %v1857_v4, 0.0 }
  0xf5   : > { %7794 = vst [vmem:[#allocation42_spill] sm:$0xff] %v6291_v0  ;;  %v6294_v22 = vpop.permute.xlu0 %1636  ;;  %v1711_v27 = vmul.f32 %v6261_v52, %v6127_v3  ;;  %v1907_v18 = vadd.f32 %v1906_v5, %v1905_v17  ;;  %v1715_v55 = vmul.f32 %v6291_v0, %v6155_v45  ;;  %v1863_v4 = vmul.f32 %v1710_v26, %v6253_v46 }
  0xf6   : > { %7795 = vst [vmem:[#allocation43_spill] sm:$0xff] %v6294_v22  ;;  %v1897_v39 = vsel %vm7739_vm0, %v1854_v60, 0.0  ;;  %v1886_v10 = vrot.slane %v1885_v56, 4  ;;  %v1714_v9 = vmul.f32 %v6294_v22, %v6147_v34  ;;  %v1921_v15 = vsel %vm7739_vm0, %v1861_v58, 0.0 }
  0xf7   : > { %v1898_v60 = vadd.f32 %v1897_v39, %v1896_v49  ;;  %v1909_v8 = vadd.f32 %v1908_v53, %v1907_v18  ;;  %v1864_v45 = vmul.f32 %v1711_v27, %v6261_v52  ;;  %v1920_v34 = vadd.f32 %v1919_v51, %v1918_v42 }
  0xf8   : > { %v6309_v11 = vpop.permute.xlu1 %1626  ;;  %v1868_v21 = vmul.f32 %v1715_v55, %v6291_v0  ;;  %v1887_v39 = vadd.f32 %v1886_v10, %v1885_v56  ;;  %v1867_v26 = vmul.f32 %v1714_v9, %v6294_v22  ;;  %v1931_v27 = vsel %vm7739_vm0, %v1863_v4, 0.0 }
  0xf9   : > { %7796 = vst [vmem:[#allocation44_spill] sm:$0xff] %v6309_v11  ;;  %v6313_v13 = vpop.permute.xlu0 %1591  ;;  %v1712_v5 = vmul.f32 %v6309_v11, %v6133_v12  ;;  %v1899_v24 = vrot.slane %v1898_v60, 4  ;;  %v1922_v18 = vadd.f32 %v1921_v15, %v1920_v34  ;;  %v1932_v56 = vsel %vm7739_vm0, %v1864_v45, 0.0 }
  0xfa   : > { %7797 = vst [vmem:[#allocation45_spill] sm:$0xff] %v6313_v13  ;;  %v1705_v59 = vmul.f32 %v6313_v13, %v6003_v47  ;;  %v1945_v42 = vsel %vm7739_vm0, %v1868_v21, 0.0  ;;  %v1888_v4 = vrot.slane %v1887_v39, 2 }
  0xfb   : > { %v1865_v55 = vmul.f32 %v1712_v5, %v6309_v11  ;;  %v1900_v9 = vadd.f32 %v1899_v24, %v1898_v60  ;;  %v1933_v5 = vadd.f32 %v1932_v56, %v1931_v27 }
  0xfc   : > { %v6325_v25 = vpop.permute.xlu1 %1661  ;;  %v1858_v29 = vmul.f32 %v1705_v59, %v6313_v13 }
  0xfd   : > { %7798 = vst [vmem:[#allocation46_spill] sm:$0xff] %v6325_v25  ;;  %v6331_v47 = vpop.permute.xlu0 %1656  ;;  %v1934_v60 = vsel %vm7739_vm0, %v1865_v55, 0.0 }
  0xfe   : > { %7799 = vst [vmem:[#allocation47_spill] sm:$0xff] %v6331_v47  ;;  %v1910_v59 = vsel %vm7739_vm0, %v1858_v29, 0.0 }
  0xff   : > { %v1911_v53 = vadd.f32 %v1910_v59, %v1909_v8  ;;  %v1944_v8 = vsel %vm7739_vm0, %v1867_v26, 0.0  ;;  %v1718_v59 = vmul.f32 %v6331_v47, %v6171_v62  ;;  %v1901_v26 = vrot.slane %v1900_v9, 2 }
 0x100   : > { %v6343_v19 = vpop.permute.xlu1 %1646  ;;  %v1946_v24 = vadd.f32 %v1945_v42, %v1944_v8 }
 0x101   : > { %7800 = vst [vmem:[#allocation48_spill] sm:$0xff] %v6343_v19  ;;  %v6346_v3 = vpop.permute.xlu0 %1611  ;;  %v1716_v12 = vmul.f32 %v6343_v19, %v6159_v48  ;;  %v1912_v15 = vrot.slane %v1911_v53, 4 }
 0x102   : > { %7801 = vst [vmem:[#allocation49_spill] sm:$0xff] %v6346_v3  ;;  %v1709_v17 = vmul.f32 %v6346_v3, %v6101_v44 }
 0x103   : > { %v1913_v55 = vadd.f32 %v1912_v15, %v1911_v53 }
 0x104   : > { %v1862_v49 = vmul.f32 %v1709_v17, %v6346_v3  ;;  %v6358_v29 = vpop.permute.xlu1 %1681 }
 0x105   : > { %7802 = vst [vmem:[#allocation50_spill] sm:$0xff] %v6358_v29  ;;  %v1723_v44 = vmul.f32 %v6358_v29, %v6203_v40  ;;  %v6365_v58 = vpop.permute.xlu0 %1676  ;;  %v1719_v40 = vmul.f32 %v6325_v25, %v6179_v14 }
 0x106   : > { %7803 = vst [vmem:[#allocation51_spill] sm:$0xff] %v6365_v58  ;;  %v1722_v10 = vmul.f32 %v6365_v58, %v6195_v35  ;;  %v1923_v51 = vsel %vm7739_vm0, %v1862_v49, 0.0  ;;  %v1869_v35 = vmul.f32 %v1716_v12, %v6343_v19  ;;  %v1889_v49 = vadd.f32 %v1888_v4, %v1887_v39 }
 0x107   : > { %v1924_v48 = vadd.f32 %v1923_v51, %v1922_v18  ;;  %v1876_v17 = vmul.f32 %v1723_v44, %v6358_v29  ;;  %v1872_v12 = vmul.f32 %v1719_v40, %v6325_v25  ;;  %v1871_v44 = vmul.f32 %v1718_v59, %v6331_v47 }
 0x108   : > { %v6378_v45 = vpop.permute.xlu1 %1666  ;;  %v1875_v21 = vmul.f32 %v1722_v10, %v6365_v58  ;;  %v1947_v10 = vsel %vm7739_vm0, %v1869_v35, 0.0  ;;  %v1935_v39 = vadd.f32 %v1934_v60, %v1933_v5  ;;  %v1902_v59 = vadd.f32 %v1901_v26, %v1900_v9 }
 0x109   : > { %7804 = vst [vmem:[#allocation52_spill] sm:$0xff] %v6378_v45  ;;  %v6382_v34 = vpop.permute.xlu0 %1631  ;;  %v1720_v14 = vmul.f32 %v6378_v45, %v6183_v23  ;;  %v1925_v27 = vrot.slane %v1924_v48, 4  ;;  %v1971_v23 = vsel %vm7739_vm0, %v1876_v17, 0.0  ;;  %v1958_v17 = vsel %vm7739_vm0, %v1872_v12, 0.0 }
 0x10a   : > { %7805 = vst [vmem:[#allocation53_spill] sm:$0xff] %v6382_v34  ;;  %v1713_v62 = vmul.f32 %v6382_v34, %v6143_v57  ;;  %v1970_v42 = vsel %vm7739_vm0, %v1875_v21, 0.0  ;;  %v1914_v21 = vrot.slane %v1913_v55, 2 }
 0x10b   : > { %v1873_v4 = vmul.f32 %v1720_v14, %v6378_v45  ;;  %v1926_v15 = vadd.f32 %v1925_v27, %v1924_v48 }
 0x10c   : > { %v1866_v18 = vmul.f32 %v1713_v62, %v6382_v34  ;;  %v6393_v56 = vpop.permute.xlu1 %1686  ;;  %v1948_v62 = vadd.f32 %v1947_v10, %v1946_v24  ;;  %v1915_v10 = vadd.f32 %v1914_v21, %v1913_v55 }
 0x10d   : > { %7806 = vst [vmem:[#allocation54_spill] sm:$0xff] %v6393_v56  ;;  %v1724_v57 = vmul.f32 %v6393_v56, %v6207_v37  ;;  %v6399_v51 = vpop.permute.xlu0 %1651  ;;  %v1957_v37 = vsel %vm7739_vm0, %v1871_v44, 0.0  ;;  %v1960_v9 = vsel %vm7739_vm0, %v1873_v4, 0.0  ;;  %v1927_v44 = vrot.slane %v1926_v15, 2 }
 0x10e   : > { %7807 = vst [vmem:[#allocation55_spill] sm:$0xff] %v6399_v51  ;;  %v1717_v8 = vmul.f32 %v6399_v51, %v6167_v61  ;;  %v1936_v40 = vsel %vm7739_vm0, %v1866_v18, 0.0 }
 0x10f   : > { %v1877_v53 = vmul.f32 %v1724_v57, %v6393_v56  ;;  %v1937_v35 = vadd.f32 %v1936_v40, %v1935_v39  ;;  %v1972_v57 = vadd.f32 %v1971_v23, %v1970_v42  ;;  %v1890_v42 = vrot.slane %v1889_v49, 1 }
 0x110   : > { %v1870_v5 = vmul.f32 %v1717_v8, %v6399_v51  ;;  %v6410_v60 = vpop.permute.xlu1 %1691 }
 0x111   : > { %7808 = vst [vmem:[#allocation56_spill] sm:$0xff] %v6410_v60  ;;  %v1725_v14 = vmul.f32 %v6410_v60, %v6215_v32  ;;  %v6414_v61 = vpop.permute.xlu0 %1671  ;;  %v1938_v18 = vrot.slane %v1937_v35, 4  ;;  %v1973_v27 = vsel %vm7739_vm0, %v1877_v53, 0.0  ;;  %v1959_v32 = vadd.f32 %v1958_v17, %v1957_v37 }
 0x112   : > { %7809 = vst [vmem:[#allocation57_spill] sm:$0xff] %v6414_v61  ;;  %v1721_v48 = vmul.f32 %v6414_v61, %v6191_v2  ;;  %v1949_v26 = vsel %vm7739_vm0, %v1870_v5, 0.0  ;;  %v1974_v50 = vadd.f32 %v1973_v27, %v1972_v57  ;;  %v1903_v5 = vrot.slane %v1902_v59, 1 }
 0x113   : > { %v1878_v12 = vmul.f32 %v1725_v14, %v6410_v60  ;;  %v1950_v39 = vadd.f32 %v1949_v26, %v1948_v62  ;;  %v1939_v8 = vadd.f32 %v1938_v18, %v1937_v35  ;;  %v1961_v63 = vadd.f32 %v1960_v9, %v1959_v32 }
 0x114   : > { %v1874_v40 = vmul.f32 %v1721_v48, %v6414_v61  ;;  %v6423_v24 = vpop.permute.xlu1 %1990  ;;  %v1928_v62 = vadd.f32 %v1927_v44, %v1926_v15  ;;  %v1916_v48 = vrot.slane %v1915_v10, 1  ;;  %v1891_v60 = vadd.f32 %v1890_v42, %v1889_v49 }
 0x115   : > { %7810 = vst [vmem:[#allocation58_spill] sm:$0xff] %v6423_v24  ;;  %v6425_v23 = vpop.permute.xlu0 %1985  ;;  %v1951_v4 = vrot.slane %v1950_v39, 4  ;;  %v1940_v2 = vrot.slane %v1939_v8, 2  ;;  %v1975_v53 = vsel %vm7739_vm0, %v1878_v12, 0.0  ;;  %v1904_v58 = vadd.f32 %v1903_v5, %v1902_v59 }
 0x116   : > { %7811 = vst [vmem:[#allocation59_spill] sm:$0xff] %v6425_v23  ;;  %v1962_v14 = vsel %vm7739_vm0, %v1874_v40, 0.0  ;;  %v1976_v37 = vadd.f32 %v1975_v53, %v1974_v50  ;;  %v1929_v12 = vrot.slane %v1928_v62, 1  ;;  %v1917_v40 = vadd.f32 %v1916_v48, %v1915_v10 }
 0x117   : > { %v1952_v35 = vadd.f32 %v1951_v4, %v1950_v39  ;;  %v1941_v17 = vadd.f32 %v1940_v2, %v1939_v8  ;;  %v1963_v55 = vadd.f32 %v1962_v14, %v1961_v63  ;;  %v2024_v44 = vmul.f32 %v6423_v24, %v1904_v58 }
 0x118   : > { %v6429_v18 = vpop.permute.xlu1 %2000  ;;  %v1977_v56 = vrot.slane %v1976_v37, 4  ;;  %v2023_v50 = vmul.f32 %v6425_v23, %v1891_v60  ;;  %v1930_v42 = vadd.f32 %v1929_v12, %v1928_v62  ;;  %v1036_v12 = vld [vmem:[%s5749_s29 + $0x8] sm:$0xff] }
 0x119   : > { %7812 = vst [vmem:[#allocation60_spill] sm:$0xff] %v6429_v18  ;;  %v6431_v21 = vpop.permute.xlu0 %1995  ;;  %v1953_v26 = vrot.slane %v1952_v35, 2  ;;  %v1942_v57 = vrot.slane %v1941_v17, 1  ;;  %v1964_v27 = vrot.slane %v1963_v55, 4 }
 0x11a   : > { %7813 = vst [vmem:[#allocation61_spill] sm:$0xff] %v6431_v21  ;;  %v1978_v32 = vadd.f32 %v1977_v56, %v1976_v37  ;;  %v2025_v63 = vmul.f32 %v6431_v21, %v1917_v40  ;;  %v2054_v10 = vsel %vm7738_vm3, %v2024_v44, %v2023_v50  ;;  %v2026_v14 = vmul.f32 %v6429_v18, %v1930_v42 }
 0x11b   : > { %v1954_v9 = vadd.f32 %v1953_v26, %v1952_v35  ;;  %v1965_v15 = vadd.f32 %v1964_v27, %v1963_v55  ;;  %v1943_v2 = vadd.f32 %v1942_v57, %v1941_v17  ;;  %v1035_v27 = vld [vmem:[%s5749_s29] sm:$0xff]  ;;  %v2033_v50 = vmul.f32 0.01, %v1917_v40 }
 0x11c   : > { %v1979_v8 = vrot.slane %v1978_v32, 2  ;;  %v6436_v4 = vpop.permute.xlu1 %2010  ;;  %v2056_v37 = vsel %vm7737_vm4, %v2025_v63, %v2054_v10  ;;  %v2031_v63 = vmul.f32 0.01, %v1891_v60 }
 0x11d   : > { %v1955_v39 = vrot.slane %v1954_v9, 1  ;;  %7814 = vst [vmem:[#allocation62_spill] sm:$0xff] %v6436_v4  ;;  %v1966_v49 = vrot.slane %v1965_v15, 2  ;;  %v6438_v59 = vpop.permute.xlu0 %2005 }
 0x11e   : > { %7815 = vst [vmem:[#allocation63_spill] sm:$0xff] %v6438_v59  ;;  %v1980_v5 = vadd.f32 %v1979_v8, %v1978_v32  ;;  %v2027_v17 = vmul.f32 %v6438_v59, %v1943_v2  ;;  %v2058_v32 = vsel %vm7736_vm6, %v2026_v14, %v2056_v37  ;;  %v1037_v14 = vld [vmem:[%s5749_s29 + $0x10] sm:$0xff] }
 0x11f   : > { %v1956_v53 = vadd.f32 %v1955_v39, %v1954_v9  ;;  %v1967_v56 = vadd.f32 %v1966_v49, %v1965_v15  ;;  %v2032_v9 = vmul.f32 0.01, %v1904_v58  ;;  %v2034_v49 = vmul.f32 0.01, %v1930_v42 }
 0x120   : > { %v1981_v35 = vrot.slane %v1980_v5, 1  ;;  %v6445_v26 = vpop.permute.xlu1 %2020  ;;  %v2060_v39 = vsel %vm7735_vm5, %v2027_v17, %v2058_v32  ;;  %v5402_v58 = vpack.c.bf16 %v1036_v12, %v1035_v27  ;;  %v7819_v12 = vmov 0.0|0.0  }
 0x121   : > { %v1968_v48 = vrot.slane %v1967_v56, 1  ;;  %v2028_v62 = vmul.f32 %v6436_v4, %v1956_v53  ;;  %7816 = vst [vmem:[#allocation64_spill] sm:$0xff] %v6445_v26  ;;  %v6451_v44 = vpop.permute.xlu0 %2015  ;;  %v2153_v37 = vsel %vm7738_vm3, %v2032_v9, %v2031_v63 }
 0x122   : > { %v1982_v55 = vadd.f32 %v1981_v35, %v1980_v5  ;;  %7817 = vst [vmem:[#allocation65_spill] sm:$0xff] %v6451_v44  ;;  %v1038_v35 = vld [vmem:[%s5749_s29 + $0x18] sm:$0xff]  ;;  %v2154_v17 = vsel %vm7737_vm4, %v2033_v50, %v2153_v37 }
 0x123   : > { %v1969_v57 = vadd.f32 %v1968_v48, %v1967_v56  ;;  %v2062_v5 = vsel %vm7734_vm7, %v2028_v62, %v2060_v39  ;;  %v2035_v56 = vmul.f32 0.01, %v1943_v2  ;;  %v2036_v48 = vmul.f32 0.01, %v1956_v53 }
 0x124   : > { %v2030_v15 = vmul.f32 %v6445_v26, %v1982_v55  ;;  %v6462_v26 = vld [vmem:[%s5734_s17] ss:$0 sm:$0xff]  ;;  %v2155_v60 = vsel %vm7736_vm6, %v2034_v49, %v2154_v17  ;;  %v5405_v42 = vpack.c.bf16 %v1038_v35, %v1037_v14  ;;  %v7818_v62 = vmov 0.0  }
 0x125   : > { %v2029_v8 = vmul.f32 %v6451_v44, %v1969_v57  ;;  %v2037_v32 = vmul.f32 0.01, %v1969_v57  ;;  %v2156_v27 = vsel %vm7735_vm5, %v2035_v56, %v2155_v60 }
 0x126   : > { %v2157_v50 = vsel %vm7734_vm7, %v2036_v48, %v2156_v27 }
 0x127   : > { %v2064_v10 = vsel %vm7733_vm8, %v2029_v8, %v2062_v5  ;;  %v2158_v8 = vsel %vm7733_vm8, %v2037_v32, %v2157_v50 }
 0x128   : > { %v2066_v40 = vsel %vm7732_vm9, %v2030_v15, %v2064_v10  ;;  %v2038_v15 = vmul.f32 0.01, %v1982_v55 }
 0x129   : > { %5159 = vmatmul.mubr.msk.f32.vlgmr.msra.gmra.mrb[0].mxu1 %vm7739_vm0, %v2066_v40 }
 0x12a   : > { %5403 = vmatpush3.bf16.msra.mxu1 %v5402_v58  ;;  %5169 = vmatprep.mubr.msk.f32.mxu1 %vm7730_vm2, %v7818_v62  ;;  %v2159_v14 = vsel %vm7732_vm9, %v2038_v15, %v2158_v8 }
 0x12b   : > { %v5104_v2 = vpop.f32.mrb[0].mxu0  ;;  %5404 = vmatprep.subr.bf16.mxu1 %v7819_v12 }
 0x12c   : > { %v1285_v53 = vadd.f32 %v5104_v2, %v6462_v26  ;;  %v1279_v9 = vpop.f32.mrb[1].mxu0 }
 0x12d   : > { %v1280_v57 = vadd.f32 %v6462_v26, %v1279_v9 }
 0x12e   : > { %vm1439_vm10 = vcmp.ge.f32.partialorder %v1285_v53, 0.0  ;;  %v1471_v39 = vmul.f32 0.01, %v1285_v53  ;;  %5406 = vmatpush3.bf16.msra.mxu1 %v5405_v42 }
 0x12f   : > { %vm1438_vm11 = vcmp.ge.f32.partialorder %v1280_v57, 0.0  ;;  %v1470_v63 = vmul.f32 0.01, %v1280_v57  ;;  %v5107_v49 = vpop.f32.mrb[2].mxu0  ;;  %5407 = vmatprep.subr.bf16.mxu1 %v7819_v12 }
 0x130   : > { %v6475_v5 = vsel %vm1439_vm10, %v1285_v53, %v1471_v39  ;;  %v1295_v58 = vadd.f32 %v5107_v49, %v6462_v26  ;;  %v1289_v56 = vpop.f32.mrb[3].mxu0 }
 0x131   : > { %v2390_v55 = vmul.f32 %v6239_v31, %v6475_v5  ;;  %v6481_v10 = vsel %vm1438_vm11, %v1280_v57, %v1470_v63  ;;  %v1290_v35 = vadd.f32 %v6462_v26, %v1289_v56  ;;  %5170 = vmatmul.mubr.msk.f32.vlgmr.msra.gmra.mrb[2].mxu1 %vm7739_vm0, %v2159_v14 }
 0x132   : > { %v2389_v37 = vmul.f32 %v6235_v28, %v6481_v10  ;;  %vm1441_vm12 = vcmp.ge.f32.partialorder %v1295_v58, 0.0  ;;  %v1473_v48 = vmul.f32 0.01, %v1295_v58  ;;  %5176 = vmatprep.mubr.msk.f32.mxu1 %vm7730_vm2, %v7818_v62 }
 0x133   : > { %v2422_v40 = vmul.f32 %v2390_v55, %v6239_v31  ;;  %vm1440_vm13 = vcmp.ge.f32.partialorder %v1290_v35, 0.0  ;;  %v1472_v17 = vmul.f32 0.01, %v1290_v35  ;;  %v5110_v32 = vpop.f32.mrb[4].mxu0 }
 0x134   : > { %v2421_v60 = vmul.f32 %v2389_v37, %v6235_v28  ;;  %v6492_v2 = vsel %vm1441_vm12, %v1295_v58, %v1473_v48  ;;  %v1305_v42 = vadd.f32 %v5110_v32, %v6462_v26  ;;  %v1299_v27 = vpop.f32.mrb[5].mxu0  ;;  %5259 = vmatprep.mubr.msk.f32.mxu0 %vm7739_vm0, %v2389_v37 }
 0x135   : > { %7820 = vst [vmem:[#allocation66_spill] sm:$0xff] %v6492_v2  ;;  %v2454_v53 = vsel %vm7739_vm0, %v2422_v40, 0.0  ;;  %v2392_v9 = vmul.f32 %v6259_v54, %v6492_v2  ;;  %v6499_v15 = vsel %vm1440_vm13, %v1290_v35, %v1472_v17  ;;  %v1300_v57 = vadd.f32 %v6462_v26, %v1299_v27  ;;  %5260 = vmatmul.mubr.msk.f32.vlgmr.msra.gmra.mrb[32].mxu0 %vm7739_vm0, %v2390_v55 }
 0x136   : > { %7821 = vst [vmem:[#allocation67_spill] sm:$0xff] %v6499_v15  ;;  %v2453_v50 = vsel %vm7739_vm0, %v2421_v60, 0.0  ;;  %v2391_v39 = vmul.f32 %v6247_v41, %v6499_v15  ;;  %vm1443_vm14 = vcmp.ge.f32.partialorder %v1305_v42, 0.0  ;;  %v1475_v8 = vmul.f32 0.01, %v1305_v42 }
 0x137   : > { %v2455_v63 = vadd.f32 %v2454_v53, %v2453_v50  ;;  %vm1442_vm15 = vcmp.ge.f32.partialorder %v1300_v57, 0.0  ;;  %v1474_v49 = vmul.f32 0.01, %v1300_v57  ;;  %v5113_v58 = vpop.f32.mrb[6].mxu0  ;;  %v2424_v56 = vmul.f32 %v2392_v9, %v6259_v54 }
 0x138   : > { %v2423_v14 = vmul.f32 %v2391_v39, %v6247_v41  ;;  %v6508_v35 = vsel %vm1443_vm14, %v1305_v42, %v1475_v8  ;;  %v1315_v37 = vadd.f32 %v5113_v58, %v6462_v26  ;;  %v1309_v55 = vpop.f32.mrb[7].mxu0  ;;  %5262 = vmatprep.mubr.msk.f32.mxu0 %vm7739_vm0, %v2391_v39 }
 0x139   : > { %7822 = vst [vmem:[#allocation68_spill] sm:$0xff] %v6508_v35  ;;  %v2394_v48 = vmul.f32 %v6237_v30, %v6508_v35  ;;  %v6514_v40 = vsel %vm1442_vm15, %v1300_v57, %v1474_v49  ;;  %v1310_v17 = vadd.f32 %v6462_v26, %v1309_v55  ;;  %5263 = vmatmul.mubr.msk.f32.gmra.mrb[34].mxu0 %vm7739_vm0, %v2392_v9  ;;  %v2458_v57 = vsel %vm7739_vm0, %v2424_v56, 0.0 }
 0x13a   : > { %7823 = vst [vmem:[#allocation69_spill] sm:$0xff] %v6514_v40  ;;  %v2456_v32 = vsel %vm7739_vm0, %v2423_v14, 0.0  ;;  %v2393_v60 = vmul.f32 %v6233_v1, %v6514_v40  ;;  %vm1445_vm1 = vcmp.ge.f32.partialorder %v1315_v37, 0.0  ;;  %v1477_v42 = vmul.f32 0.01, %v1315_v37 }
 0x13b   : > { %v2457_v27 = vadd.f32 %v2456_v32, %v2455_v63  ;;  %v2426_v53 = vmul.f32 %v2394_v48, %v6237_v30  ;;  %vm1444_vm10 = vcmp.ge.f32.partialorder %v1310_v17, 0.0  ;;  %v1476_v50 = vmul.f32 0.01, %v1310_v17  ;;  %v5116_v39 = vpop.f32.mrb[8].mxu0 }
 0x13c   : > { %v2425_v8 = vmul.f32 %v2393_v60, %v6233_v1  ;;  %v6524_v49 = vsel %vm1445_vm1, %v1315_v37, %v1477_v42  ;;  %v1325_v9 = vadd.f32 %v5116_v39, %v6462_v26  ;;  %v1319_v58 = vpop.f32.mrb[9].mxu0  ;;  %5265 = vmatprep.mubr.msk.f32.mxu0 %vm7739_vm0, %v2393_v60 }
 0x13d   : > { %7824 = vst [vmem:[#allocation70_spill] sm:$0xff] %v6524_v49  ;;  %v2459_v14 = vadd.f32 %v2458_v57, %v2457_v27  ;;  %v2467_v55 = vsel %vm7739_vm0, %v2426_v53, 0.0  ;;  %v2396_v63 = vmul.f32 %v6276_v7, %v6524_v49  ;;  %v6531_v32 = vsel %vm1444_vm10, %v1310_v17, %v1476_v50  ;;  %5266 = vmatmul.mubr.msk.f32.gmra.mrb[36].mxu0 %vm7739_vm0, %v2394_v48 }
 0x13e   : > { %7825 = vst [vmem:[#allocation71_spill] sm:$0xff] %v6531_v32  ;;  %v2466_v56 = vsel %vm7739_vm0, %v2425_v8, 0.0  ;;  %v2395_v37 = vmul.f32 %v6245_v36, %v6531_v32  ;;  %vm1447_vm11 = vcmp.ge.f32.partialorder %v1325_v9, 0.0  ;;  %v1479_v42 = vmul.f32 0.01, %v1325_v9 }
 0x13f   : > { %v2460_v39 = vrot.slane %v2459_v14, 4  ;;  %v2468_v30 = vadd.f32 %v2467_v55, %v2466_v56  ;;  %v1320_v60 = vadd.f32 %v6462_v26, %v1319_v58  ;;  %v5119_v27 = vpop.f32.mrb[10].mxu0  ;;  %v2428_v53 = vmul.f32 %v2396_v63, %v6276_v7 }
 0x140   : > { %v2427_v57 = vmul.f32 %v2395_v37, %v6245_v36  ;;  %v6540_v17 = vsel %vm1447_vm11, %v1325_v9, %v1479_v42  ;;  %v1335_v48 = vadd.f32 %v5119_v27, %v6462_v26  ;;  %v1329_v50 = vpop.f32.mrb[11].mxu0  ;;  %5268 = vmatprep.mubr.msk.f32.mxu0 %vm7739_vm0, %v2395_v37 }
 0x141   : > { %7826 = vst [vmem:[#allocation72_spill] sm:$0xff] %v6540_v17  ;;  %v2461_v8 = vadd.f32 %v2460_v39, %v2459_v14  ;;  %v2398_v1 = vmul.f32 %v6241_v38, %v6540_v17  ;;  %vm1446_vm12 = vcmp.ge.f32.partialorder %v1320_v60, 0.0  ;;  %5269 = vmatmul.mubr.msk.f32.gmra.mrb[38].mxu0 %vm7739_vm0, %v2396_v63  ;;  %v1478_v55 = vmul.f32 0.01, %v1320_v60 }
 0x142   : > { %v2469_v58 = vsel %vm7739_vm0, %v2427_v57, 0.0  ;;  %vm1449_vm13 = vcmp.ge.f32.partialorder %v1335_v48, 0.0  ;;  %v1481_v56 = vmul.f32 0.01, %v1335_v48  ;;  %v1330_v27 = vadd.f32 %v6462_v26, %v1329_v50 }
 0x143   : > { %v2462_v7 = vrot.slane %v2461_v8, 2  ;;  %v2470_v9 = vadd.f32 %v2469_v58, %v2468_v30  ;;  %v2430_v42 = vmul.f32 %v2398_v1, %v6241_v38  ;;  %v5122_v36 = vpop.f32.mrb[12].mxu0  ;;  %v2471_v14 = vsel %vm7739_vm0, %v2428_v53, 0.0 }
 0x144   : > { %v6551_v37 = vsel %vm1446_vm12, %v1320_v60, %v1478_v55  ;;  %v6553_v39 = vsel %vm1449_vm13, %v1335_v48, %v1481_v56  ;;  %v1345_v63 = vadd.f32 %v5122_v36, %v6462_v26  ;;  %v1339_v54 = vpop.f32.mrb[13].mxu0  ;;  %vm1448_vm14 = vcmp.ge.f32.partialorder %v1330_v27, 0.0 }
 0x145   : > { %7827 = vst [vmem:[#allocation73_spill] sm:$0xff] %v6551_v37  ;;  %7828 = vst [vmem:[#allocation74_spill] sm:$0xff] %v6553_v39  ;;  %v2463_v57 = vadd.f32 %v2462_v7, %v2461_v8  ;;  %v2472_v41 = vadd.f32 %v2471_v14, %v2470_v9  ;;  %v2480_v31 = vsel %vm7739_vm0, %v2430_v42, 0.0  ;;  %v2397_v30 = vmul.f32 %v6243_v6, %v6551_v37 }
 0x146   : > { %v2400_v50 = vmul.f32 %v6313_v13, %v6553_v39  ;;  %v1480_v58 = vmul.f32 0.01, %v1330_v27  ;;  %vm1451_vm15 = vcmp.ge.f32.partialorder %v1345_v63, 0.0  ;;  %v1483_v55 = vmul.f32 0.01, %v1345_v63 }
 0x147   : > { %v2464_v60 = vrot.slane %v2463_v57, 1  ;;  %v2473_v53 = vrot.slane %v2472_v41, 4  ;;  %v2429_v48 = vmul.f32 %v2397_v30, %v6243_v6  ;;  %5271 = vmatprep.mubr.msk.f32.mxu0 %vm7739_vm0, %v2397_v30  ;;  %v5125_v36 = vpop.f32.mrb[14].mxu0  ;;  %v1340_v56 = vadd.f32 %v6462_v26, %v1339_v54 }
 0x148   : > { %v2432_v7 = vmul.f32 %v2400_v50, %v6313_v13  ;;  %v6564_v8 = vsel %vm1448_vm14, %v1330_v27, %v1480_v58  ;;  %5272 = vmatmul.mubr.msk.f32.gmra.mrb[40].mxu0 %vm7739_vm0, %v2398_v1  ;;  %v1355_v9 = vadd.f32 %v5125_v36, %v6462_v26  ;;  %v1349_v42 = vpop.f32.mrb[15].mxu0  ;;  %v6573_v39 = vsel %vm1451_vm15, %v1345_v63, %v1483_v55 }
 0x149   : > { %7829 = vst [vmem:[#allocation75_spill] sm:$0xff] %v6564_v8  ;;  %v2474_v14 = vadd.f32 %v2473_v53, %v2472_v41  ;;  %v2479_v38 = vsel %vm7739_vm0, %v2429_v48, 0.0  ;;  %v2399_v6 = vmul.f32 %v6255_v33, %v6564_v8  ;;  %v2465_v28 = vadd.f32 %v2464_v60, %v2463_v57  ;;  %7830 = vst [vmem:[#allocation76_spill] sm:$0xff] %v6573_v39 }
 0x14a   : > { %v2481_v30 = vadd.f32 %v2480_v31, %v2479_v38  ;;  %v2484_v58 = vsel %vm7739_vm0, %v2432_v7, 0.0  ;;  %vm1450_vm1 = vcmp.ge.f32.partialorder %v1340_v56, 0.0  ;;  %v2402_v41 = vmul.f32 %v6249_v43, %v6573_v39 }
 0x14b   : > { %v2475_v27 = vrot.slane %v2474_v14, 2  ;;  %v2431_v54 = vmul.f32 %v2399_v6, %v6255_v33  ;;  %5274 = vmatprep.mubr.msk.f32.mxu0 %vm7739_vm0, %v2399_v6  ;;  %v5128_v1 = vpop.f32.mrb[16].mxu0  ;;  %v1482_v53 = vmul.f32 0.01, %v1340_v56  ;;  %vm1453_vm10 = vcmp.ge.f32.partialorder %v1355_v9, 0.0 }
 0x14c   : > { %v1485_v48 = vmul.f32 0.01, %v1355_v9  ;;  %5275 = vmatmul.mubr.msk.f32.gmra.mrb[42].mxu0 %vm7739_vm0, %v2400_v50  ;;  %v1359_v31 = vpop.f32.mrb[17].mxu0  ;;  %v1350_v57 = vadd.f32 %v6462_v26, %v1349_v42  ;;  %v1365_v60 = vadd.f32 %v5128_v1, %v6462_v26  ;;  %v2434_v6 = vmul.f32 %v2402_v41, %v6249_v43 }
 0x14d   : > { %v2476_v38 = vadd.f32 %v2475_v27, %v2474_v14  ;;  %v2482_v63 = vsel %vm7739_vm0, %v2431_v54, 0.0  ;;  %v6585_v36 = vsel %vm1450_vm1, %v1340_v56, %v1482_v53  ;;  %v6594_v42 = vmul.f32 %v2465_v28, %v6425_v23 }
 0x14e   : > { %v2483_v55 = vadd.f32 %v2482_v63, %v2481_v30  ;;  %7831 = vst [vmem:[#allocation77_spill] sm:$0xff] %v6585_v36  ;;  %v6587_v7 = vsel %vm1453_vm10, %v1355_v9, %v1485_v48  ;;  %v2401_v33 = vmul.f32 %v6251_v16, %v6585_v36  ;;  %vm1452_vm11 = vcmp.ge.f32.partialorder %v1350_v57, 0.0 }
 0x14f   : > { %7832 = vst [vmem:[#allocation78_spill] sm:$0xff] %v6587_v7  ;;  %v2477_v13 = vrot.slane %v2476_v38, 1  ;;  %v2404_v50 = vmul.f32 %v6346_v3, %v6587_v7  ;;  %v5131_v14 = vpop.f32.mrb[18].mxu0  ;;  %v2493_v30 = vsel %vm7739_vm0, %v2434_v6, 0.0  ;;  %v1484_v54 = vmul.f32 0.01, %v1350_v57 }
 0x150   : > { %v2485_v27 = vadd.f32 %v2484_v58, %v2483_v55  ;;  %v1369_v56 = vpop.f32.mrb[19].mxu0  ;;  %v2433_v9 = vmul.f32 %v2401_v33, %v6251_v16  ;;  %vm1455_vm12 = vcmp.ge.f32.partialorder %v1365_v60, 0.0  ;;  %v1487_v53 = vmul.f32 0.01, %v1365_v60  ;;  %5277 = vmatprep.mubr.msk.f32.mxu0 %vm7739_vm0, %v2401_v33 }
 0x151   : > { %v2436_v1 = vmul.f32 %v2404_v50, %v6346_v3  ;;  %v6600_v63 = vsel %vm1452_vm11, %v1350_v57, %v1484_v54  ;;  %v1360_v43 = vadd.f32 %v6462_v26, %v1359_v31  ;;  %5278 = vmatmul.mubr.msk.f32.gmra.mrb[44].mxu0 %vm7739_vm0, %v2402_v41  ;;  %v1375_v58 = vadd.f32 %v5131_v14, %v6462_v26 }
 0x152   : > { %v2486_v48 = vrot.slane %v2485_v27, 4  ;;  %7833 = vst [vmem:[#allocation79_spill] sm:$0xff] %v6600_v63  ;;  %v6605_v55 = vmul.f32 0.01, %v2465_v28  ;;  %v2478_v6 = vadd.f32 %v2477_v13, %v2476_v38  ;;  %v2492_v23 = vsel %vm7739_vm0, %v2433_v9, 0.0 }
 0x153   : > { %v2497_v3 = vsel %vm7739_vm0, %v2436_v1, 0.0  ;;  %v5134_v16 = vpop.f32.mrb[20].mxu0  ;;  %v2494_v39 = vadd.f32 %v2493_v30, %v2492_v23  ;;  %v2403_v33 = vmul.f32 %v6272_v20, %v6600_v63  ;;  %v6612_v57 = vsel %vm1455_vm12, %v1365_v60, %v1487_v53 }
 0x154   : > { %v2487_v7 = vadd.f32 %v2486_v48, %v2485_v27  ;;  %7834 = vst [vmem:[#allocation80_spill] sm:$0xff] %v6612_v57  ;;  %v1379_v31 = vpop.f32.mrb[21].mxu0  ;;  %v2406_v41 = vmul.f32 %v6261_v52, %v6612_v57  ;;  %vm1454_vm13 = vcmp.ge.f32.partialorder %v1360_v43, 0.0  ;;  %v1486_v28 = vmul.f32 0.01, %v1360_v43 }
 0x155   : > { %vm1457_vm14 = vcmp.ge.f32.partialorder %v1375_v58, 0.0  ;;  %v2435_v38 = vmul.f32 %v2403_v33, %v6272_v20  ;;  %v1489_v14 = vmul.f32 0.01, %v1375_v58  ;;  %v1370_v27 = vadd.f32 %v6462_v26, %v1369_v56  ;;  %5280 = vmatprep.mubr.msk.f32.mxu0 %vm7739_vm0, %v2403_v33 }
 0x156   : > { %v2488_v13 = vrot.slane %v2487_v7, 2  ;;  %v2438_v23 = vmul.f32 %v2406_v41, %v6261_v52  ;;  %v6620_v30 = vsel %vm1454_vm13, %v1360_v43, %v1486_v28  ;;  %5281 = vmatmul.mubr.msk.f32.gmra.mrb[46].mxu0 %vm7739_vm0, %v2404_v50  ;;  %v1385_v60 = vadd.f32 %v5134_v16, %v6462_v26 }
 0x157   : > { %7835 = vst [vmem:[#allocation81_spill] sm:$0xff] %v6620_v30  ;;  %v1380_v54 = vadd.f32 %v6462_v26, %v1379_v31  ;;  %v5137_v9 = vpop.f32.mrb[22].mxu0  ;;  %v2495_v53 = vsel %vm7739_vm0, %v2435_v38, 0.0  ;;  %v2405_v48 = vmul.f32 %v6253_v46, %v6620_v30  ;;  %v6628_v56 = vsel %vm1457_vm14, %v1375_v58, %v1489_v14 }
 0x158   : > { %v2489_v1 = vadd.f32 %v2488_v13, %v2487_v7  ;;  %7836 = vst [vmem:[#allocation82_spill] sm:$0xff] %v6628_v56  ;;  %v1389_v33 = vpop.f32.mrb[23].mxu0  ;;  %v2496_v20 = vadd.f32 %v2495_v53, %v2494_v39  ;;  %v2506_v43 = vsel %vm7739_vm0, %v2438_v23, 0.0  ;;  %v2408_v50 = vmul.f32 %v6382_v34, %v6628_v56 }
 0x159   : > { %vm1456_vm15 = vcmp.ge.f32.partialorder %v1370_v27, 0.0  ;;  %v2437_v31 = vmul.f32 %v2405_v48, %v6253_v46  ;;  %v1488_v28 = vmul.f32 0.01, %v1370_v27  ;;  %vm1459_vm1 = vcmp.ge.f32.partialorder %v1385_v60, 0.0  ;;  %5283 = vmatprep.mubr.msk.f32.mxu0 %vm7739_vm0, %v2405_v48 }
 0x15a   : > { %v2490_v16 = vrot.slane %v2489_v1, 1  ;;  %v2498_v7 = vadd.f32 %v2497_v3, %v2496_v20  ;;  %v2440_v13 = vmul.f32 %v2408_v50, %v6382_v34  ;;  %v1491_v58 = vmul.f32 0.01, %v1385_v60  ;;  %5284 = vmatmul.mubr.msk.f32.gmra.mrb[48].mxu0 %vm7739_vm0, %v2406_v41 }
 0x15b   : > { %vm1458_vm10 = vcmp.ge.f32.partialorder %v1380_v54, 0.0  ;;  %v5140_v39 = vpop.f32.mrb[24].mxu0  ;;  %v6638_v38 = vmul.f32 %v2478_v6, %v6423_v24  ;;  %v2505_v14 = vsel %vm7739_vm0, %v2437_v31, 0.0  ;;  %v6641_v23 = vsel %vm1456_vm15, %v1370_v27, %v1488_v28 }
 0x15c   : > { %7837 = vst [vmem:[#allocation83_spill] sm:$0xff] %v6641_v23  ;;  %v1490_v53 = vmul.f32 0.01, %v1380_v54  ;;  %v1399_v52 = vpop.f32.mrb[25].mxu0  ;;  %v6643_v46 = vmul.f32 0.01, %v2478_v6  ;;  %v2507_v20 = vadd.f32 %v2506_v43, %v2505_v14  ;;  %v2407_v3 = vmul.f32 %v6309_v11, %v6641_v23 }
 0x15d   : > { %v2499_v48 = vrot.slane %v2498_v7, 4  ;;  %v6647_v34 = vadd.f32 %v2490_v16, %v2489_v1  ;;  %v2510_v41 = vsel %vm7739_vm0, %v2440_v13, 0.0  ;;  %v6651_v24 = vsel %vm1459_vm1, %v1385_v60, %v1491_v58 }
 0x15e   : > { %7838 = vst [vmem:[#allocation84_spill] sm:$0xff] %v6651_v24  ;;  %v6653_v56 = vsel %vm1458_vm10, %v1380_v54, %v1490_v53  ;;  %v2439_v31 = vmul.f32 %v2407_v3, %v6309_v11  ;;  %v2410_v6 = vmul.f32 %v6291_v0, %v6651_v24  ;;  %5286 = vmatprep.mubr.msk.f32.mxu0 %vm7739_vm0, %v2407_v3 }
 0x15f   : > { %7839 = vst [vmem:[#allocation85_spill] sm:$0xff] %v6653_v56  ;;  %v2500_v27 = vadd.f32 %v2499_v48, %v2498_v7  ;;  %v2409_v43 = vmul.f32 %v6294_v22, %v6653_v56  ;;  %v5143_v1 = vpop.f32.mrb[26].mxu0  ;;  %v1395_v16 = vadd.f32 %v5137_v9, %v6462_v26  ;;  %v1390_v28 = vadd.f32 %v6462_v26, %v1389_v33 }
 0x160   : > { %5287 = vmatmul.mubr.msk.f32.gmra.mrb[50].mxu0 %vm7739_vm0, %v2408_v50  ;;  %v1405_v60 = vadd.f32 %v5140_v39, %v6462_v26  ;;  %v1400_v54 = vadd.f32 %v6462_v26, %v1399_v52  ;;  %v1409_v7 = vpop.f32.mrb[27].mxu0  ;;  %v2508_v58 = vsel %vm7739_vm0, %v2439_v31, 0.0  ;;  %v2442_v14 = vmul.f32 %v2410_v6, %v6291_v0 }
 0x161   : > { %v2501_v13 = vrot.slane %v2500_v27, 2  ;;  %v2441_v53 = vmul.f32 %v2409_v43, %v6294_v22  ;;  %5289 = vmatprep.mubr.msk.f32.mxu0 %vm7739_vm0, %v2409_v43  ;;  %v2509_v48 = vadd.f32 %v2508_v58, %v2507_v20  ;;  %vm1461_vm11 = vcmp.ge.f32.partialorder %v1395_v16, 0.0 }
 0x162   : > { %v1493_v9 = vmul.f32 0.01, %v1395_v16  ;;  %vm1460_vm12 = vcmp.ge.f32.partialorder %v1390_v28, 0.0  ;;  %v2519_v50 = vsel %vm7739_vm0, %v2442_v14, 0.0  ;;  %v1492_v52 = vmul.f32 0.01, %v1390_v28 }
 0x163   : > { %v2502_v33 = vadd.f32 %v2501_v13, %v2500_v27  ;;  %v2518_v39 = vsel %vm7739_vm0, %v2441_v53, 0.0  ;;  %v5146_v3 = vpop.f32.mrb[28].mxu0  ;;  %v2511_v11 = vadd.f32 %v2510_v41, %v2509_v48  ;;  %vm1463_vm13 = vcmp.ge.f32.partialorder %v1405_v60, 0.0 }
 0x164   : > { %v2520_v24 = vadd.f32 %v2519_v50, %v2518_v39  ;;  %v6672_v31 = vsel %vm1461_vm11, %v1395_v16, %v1493_v9  ;;  %5290 = vmatmul.mubr.msk.f32.gmra.mrb[52].mxu0 %vm7739_vm0, %v2410_v6  ;;  %v1419_v0 = vpop.f32.mrb[29].mxu0  ;;  %v6677_v20 = vmul.f32 %v6647_v34, %v6431_v21  ;;  %v6681_v43 = vsel %vm1460_vm12, %v1390_v28, %v1492_v52 }
 0x165   : > { %7840 = vst [vmem:[#allocation86_spill] sm:$0xff] %v6672_v31  ;;  %v2412_v27 = vmul.f32 %v6399_v51, %v6672_v31  ;;  %7841 = vst [vmem:[#allocation87_spill] sm:$0xff] %v6681_v43  ;;  %v1495_v13 = vmul.f32 0.01, %v1405_v60  ;;  %v2512_v58 = vrot.slane %v2511_v11, 4  ;;  %v2411_v41 = vmul.f32 %v6343_v19, %v6681_v43 }
 0x166   : > { %vm1462_vm14 = vcmp.ge.f32.partialorder %v1400_v54, 0.0  ;;  %v1494_v16 = vmul.f32 0.01, %v1400_v54  ;;  %v2503_v14 = vrot.slane %v2502_v33, 1  ;;  %v1415_v48 = vadd.f32 %v5143_v1, %v6462_v26 }
 0x167   : > { %v2444_v6 = vmul.f32 %v2412_v27, %v6399_v51  ;;  %v6686_v53 = vsel %vm1463_vm13, %v1405_v60, %v1495_v13  ;;  %v5149_v9 = vpop.f32.mrb[30].mxu0  ;;  %v2513_v50 = vadd.f32 %v2512_v58, %v2511_v11  ;;  %v2443_v39 = vmul.f32 %v2411_v41, %v6343_v19  ;;  %5292 = vmatprep.mubr.msk.f32.mxu0 %vm7739_vm0, %v2411_v41 }
 0x168   : > { %7842 = vst [vmem:[#allocation88_spill] sm:$0xff] %v6686_v53  ;;  %v2414_v28 = vmul.f32 %v6325_v25, %v6686_v53  ;;  %v6692_v52 = vsel %vm1462_vm14, %v1400_v54, %v1494_v16  ;;  %v1429_v21 = vpop.f32.mrb[31].mxu0  ;;  %vm1465_vm15 = vcmp.ge.f32.partialorder %v1415_v48, 0.0  ;;  %v1497_v13 = vmul.f32 0.01, %v1415_v48  ;;  %5293 = vmatmul.mubr.msk.f32.gmra.mrb[54].mxu0 %vm7739_vm0, %v2412_v27 }
 0x169   : > { %7843 = vst [vmem:[#allocation89_spill] sm:$0xff] %v6692_v52  ;;  %v2523_v22 = vsel %vm7739_vm0, %v2444_v6, 0.0  ;;  %v2413_v60 = vmul.f32 %v6331_v47, %v6692_v52  ;;  %v2514_v11 = vrot.slane %v2513_v50, 2  ;;  %v2521_v1 = vsel %vm7739_vm0, %v2443_v39, 0.0 }
 0x16a   : > { %v2446_v58 = vmul.f32 %v2414_v28, %v6325_v25  ;;  %v1410_v54 = vadd.f32 %v6462_v26, %v1409_v7  ;;  %v2522_v16 = vadd.f32 %v2521_v1, %v2520_v24  ;;  %v6703_v51 = vsel %vm1465_vm15, %v1415_v48, %v1497_v13 }
 0x16b   : > { %v2445_v41 = vmul.f32 %v2413_v60, %v6331_v47  ;;  %7844 = vst [vmem:[#allocation90_spill] sm:$0xff] %v6703_v51  ;;  %v1425_v6 = vadd.f32 %v5146_v3, %v6462_v26  ;;  %5295 = vmatprep.mubr.msk.f32.mxu0 %vm7739_vm0, %v2413_v60  ;;  %v2515_v19 = vadd.f32 %v2514_v11, %v2513_v50  ;;  %vm7729_vm14 = vcmask 130048  }
 0x16c   : > { %v2532_v53 = vsel %vm7739_vm0, %v2446_v58, 0.0  ;;  %v2416_v27 = vmul.f32 %v6414_v61, %v6703_v51  ;;  %vm1464_vm1 = vcmp.ge.f32.partialorder %v1410_v54, 0.0  ;;  %v2524_v39 = vadd.f32 %v2523_v22, %v2522_v16  ;;  %5296 = vmatmul.mubr.msk.f32.gmra.mrb[56].mxu0 %vm7739_vm0, %v2414_v28 }
 0x16d   : > { %v2531_v25 = vsel %vm7739_vm0, %v2445_v41, 0.0  ;;  %v1496_v7 = vmul.f32 0.01, %v1410_v54  ;;  %vm1467_vm10 = vcmp.ge.f32.partialorder %v1425_v6, 0.0  ;;  %v2504_v24 = vadd.f32 %v2503_v14, %v2502_v33 }
 0x16e   : > { %v2516_v48 = vrot.slane %v2515_v19, 1  ;;  %v2533_v13 = vadd.f32 %v2532_v53, %v2531_v25  ;;  %v1499_v3 = vmul.f32 0.01, %v1425_v6  ;;  %v2525_v1 = vrot.slane %v2524_v39, 4 }
 0x16f   : > { %v6712_v60 = vsel %vm1464_vm1, %v1410_v54, %v1496_v7  ;;  %v1420_v50 = vadd.f32 %v6462_v26, %v1419_v0  ;;  %v1435_v11 = vadd.f32 %v5149_v9, %v6462_v26  ;;  %v2448_v58 = vmul.f32 %v2416_v27, %v6414_v61 }
 0x170   : > { %7845 = vst [vmem:[#allocation91_spill] sm:$0xff] %v6712_v60  ;;  %v2415_v22 = vmul.f32 %v6378_v45, %v6712_v60  ;;  %v6719_v16 = vsel %vm1467_vm10, %v1425_v6, %v1499_v3  ;;  %v1430_v28 = vadd.f32 %v6462_v26, %v1429_v21  ;;  %v2526_v33 = vadd.f32 %v2525_v1, %v2524_v39  ;;  %v7848_v26 = vld [vmem:[#allocation51_spill] sm:$0xff] }
 0x171   : > { %7846 = vst [vmem:[#allocation92_spill] sm:$0xff] %v6719_v16  ;;  %v2418_v25 = vmul.f32 %v6358_v29, %v6719_v16  ;;  %vm1466_vm11 = vcmp.ge.f32.partialorder %v1420_v50, 0.0  ;;  %v1498_v14 = vmul.f32 0.01, %v1420_v50  ;;  %vm1469_vm12 = vcmp.ge.f32.partialorder %v1435_v11, 0.0 }
 0x172   : > { %v2447_v53 = vmul.f32 %v2415_v22, %v6378_v45  ;;  %v1501_v0 = vmul.f32 0.01, %v1435_v11  ;;  %vm1468_vm13 = vcmp.ge.f32.partialorder %v1430_v28, 0.0  ;;  %5298 = vmatprep.mubr.msk.f32.mxu0 %vm7739_vm0, %v2415_v22  ;;  %v2527_v9 = vrot.slane %v2526_v33, 2  ;;  %v7850_v45 = vld [vmem:[#allocation56_spill] sm:$0xff] }
 0x173   : > { %v2450_v54 = vmul.f32 %v2418_v25, %v6358_v29  ;;  %v6727_v41 = vsel %vm1466_vm11, %v1420_v50, %v1498_v14  ;;  %v1500_v6 = vmul.f32 0.01, %v1430_v28  ;;  %5299 = vmatmul.mubr.msk.f32.gmra.mrb[58].mxu0 %vm7739_vm0, %v2416_v27  ;;  %v2517_v3 = vadd.f32 %v2516_v48, %v2515_v19  ;;  %v7852_v19 = vld [vmem:[#allocation54_spill] sm:$0xff] }
 0x174   : > { %7847 = vst [vmem:[#allocation93_spill] sm:$0xff] %v6727_v41  ;;  %v2534_v21 = vsel %vm7739_vm0, %v2447_v53, 0.0  ;;  %v2417_v39 = vmul.f32 %v7848_v26, %v6727_v41  ;;  %v6733_v7 = vsel %vm1469_vm12, %v1435_v11, %v1501_v0  ;;  %v2567_v1 = vmul.f32 0.01, %v6647_v34 }
 0x175   : > { %7849 = vst [vmem:[#allocation94_spill] sm:$0xff] %v6733_v7  ;;  %v2528_v61 = vadd.f32 %v2527_v9, %v2526_v33  ;;  %v2535_v22 = vadd.f32 %v2534_v21, %v2533_v13  ;;  %v2420_v29 = vmul.f32 %v7850_v45, %v6733_v7  ;;  %v2536_v50 = vsel %vm7739_vm0, %v2448_v58, 0.0 }
 0x176   : > { %v2545_v14 = vsel %vm7739_vm0, %v2450_v54, 0.0  ;;  %v2449_v27 = vmul.f32 %v2417_v39, %v7848_v26  ;;  %v6742_v53 = vsel %vm1468_vm13, %v1430_v28, %v1500_v6  ;;  %5301 = vmatprep.mubr.msk.f32.mxu0 %vm7739_vm0, %v2417_v39  ;;  %v2568_v13 = vmul.f32 0.01, %v2504_v24 }
 0x177   : > { %7851 = vst [vmem:[#allocation95_spill] sm:$0xff] %v6742_v53  ;;  %v2537_v11 = vadd.f32 %v2536_v50, %v2535_v22  ;;  %v2419_v34 = vmul.f32 %v7852_v19, %v6742_v53  ;;  %5302 = vmatmul.mubr.msk.f32.gmra.mrb[60].mxu0 %vm7739_vm0, %v2418_v25  ;;  %v2529_v48 = vrot.slane %v2528_v61, 1  ;;  %v2452_v58 = vmul.f32 %v2420_v29, %v7850_v45  ;;  %v1058_v45 = vld [vmem:[%s7856_s23] sm:$0xff] }
 0x178   : > { %v2544_v33 = vsel %vm7739_vm0, %v2449_v27, 0.0  ;;  %v2569_v0 = vmul.f32 0.01, %v2517_v3  ;;  %v2587_v28 = vsel %vm7738_vm3, %v6643_v46, %v6605_v55  ;;  %v2560_v21 = vmul.f32 %v2504_v24, %v6429_v18  ;;  %v4876_v53 = vld [vmem:[%s7857_s30] ss:$0 sm:$0xff]  ;;  %s7861_s30 = sld [smem:[#allocation18_spill]] }
 0x179   : > { %v2538_v9 = vrot.slane %v2537_v11, 4  ;;  %v2546_v54 = vadd.f32 %v2545_v14, %v2544_v33  ;;  %v2451_v6 = vmul.f32 %v2419_v34, %v7852_v19  ;;  %5304 = vmatprep.mubr.msk.f32.mxu0 %vm7739_vm0, %v2419_v34  ;;  %v2530_v25 = vadd.f32 %v2529_v48, %v2528_v61  ;;  %v1043_v33 = vld [vmem:[%s5764_s14 + $0x8] sm:$0xff] }
 0x17a   : > { %v2588_v39 = vsel %vm7737_vm4, %v2567_v1, %v2587_v28  ;;  %v2561_v22 = vmul.f32 %v2517_v3, %v6438_v59  ;;  %v2756_v50 = vsel %vm7738_vm3, %v6638_v38, %v6594_v42  ;;  %v2549_v48 = vsel %vm7739_vm0, %v2452_v58, 0.0  ;;  %v1059_v19 = vld [vmem:[%s7856_s23 + $0x8] sm:$0xff] }
 0x17b   : > { %v2539_v46 = vadd.f32 %v2538_v9, %v2537_v11  ;;  %v2547_v55 = vsel %vm7739_vm0, %v2451_v6, 0.0  ;;  %5305 = vmatmul.mubr.msk.f32.gmra.mrb[62].mxu0 %vm7739_vm0, %v2420_v29  ;;  %v2589_v14 = vsel %vm7736_vm6, %v2568_v13, %v2588_v39  ;;  %v2757_v61 = vsel %vm7737_vm4, %v6677_v20, %v2756_v50  ;;  %v1042_v11 = vld [vmem:[%s5764_s14] sm:$0xff] }
 0x17c   : > { %v2548_v24 = vadd.f32 %v2547_v55, %v2546_v54  ;;  %v2570_v1 = vmul.f32 0.01, %v2530_v25  ;;  %v2590_v27 = vsel %vm7735_vm5, %v2569_v0, %v2589_v14  ;;  %v2562_v3 = vmul.f32 %v2530_v25, %v6436_v4 }
 0x17d   : > { %v2540_v34 = vrot.slane %v2539_v46, 2  ;;  %v2758_v42 = vsel %vm7736_vm6, %v2560_v21, %v2757_v61  ;;  %v5408_v28 = vpack.c.bf16 %v1043_v33, %v1042_v11  ;;  %v4872_v11 = vld [vmem:[%s7853_s3] ss:$0 sm:$0xff]  ;;  %v5438_v26 = vpack.c.bf16 %v1059_v19, %v1058_v45  ;;  %s7859_s3 = sld [smem:[#allocation21_spill]] }
 0x17e   : > { %v2550_v38 = vadd.f32 %v2549_v48, %v2548_v24  ;;  %v2591_v29 = vsel %vm7734_vm7, %v2570_v1, %v2590_v27  ;;  %v2759_v13 = vsel %vm7735_vm5, %v2561_v22, %v2758_v42  ;;  %v7854_v24 = vld [vmem:[#allocation64_spill] sm:$0xff] }
 0x17f   : > { %v2541_v20 = vadd.f32 %v2540_v34, %v2539_v46  ;;  %v2760_v9 = vsel %vm7734_vm7, %v2562_v3, %v2759_v13  ;;  %5409 = vmatpush3.bf16.msra.mxu1 %v5408_v28  ;;  %v1040_v42 = vld [vmem:[%s7772_s8] sm:$0xff] }
 0x180   : > { %v2551_v54 = vrot.slane %v2550_v38, 4  ;;  %5410 = vmatprep.subr.bf16.mxu1 %v7819_v12 }
 0x181   : > { %v2542_v0 = vrot.slane %v2541_v20, 1 }
 0x182   : > { %v2552_v6 = vadd.f32 %v2551_v54, %v2550_v38  ;;  %v1041_v38 = vld [vmem:[%s7772_s8 + $0x8] sm:$0xff]  ;;  %v4870_v54 = vld [vmem:[%s5744_s25] ss:$0 sm:$0xff] }
 0x183   : > { %v2543_v58 = vadd.f32 %v2542_v0, %v2541_v20  ;;  %v1064_v20 = vld [vmem:[%s5812_s20] sm:$0xff] }
 0x184   : > { %v2553_v21 = vrot.slane %v2552_v6, 2 }
 0x185   : > { %v2571_v25 = vmul.f32 0.01, %v2543_v58  ;;  %v2563_v39 = vmul.f32 %v2543_v58, %v6451_v44 }
 0x186   : > { %v2554_v50 = vadd.f32 %v2553_v21, %v2552_v6 }
 0x187   : > { %v2592_v22 = vsel %vm7733_vm8, %v2571_v25, %v2591_v29  ;;  %v2761_v46 = vsel %vm7733_vm8, %v2563_v39, %v2760_v9  ;;  %v5411_v29 = vpack.c.bf16 %v1041_v38, %v1040_v42  ;;  %v1065_v9 = vld [vmem:[%s5812_s20 + $0x8] sm:$0xff]  ;;  %v1066_v25 = vld [vmem:[%s5812_s20 + $0x10] sm:$0xff]  ;;  %v1067_v39 = vld [vmem:[%s5812_s20 + $0x18] sm:$0xff] }
 0x188   : > { %v2555_v55 = vrot.slane %v2554_v50, 1  ;;  %v5414_v6 = vpack.c.bf16 %v1065_v9, %v1064_v20  ;;  %v1077_v42 = vld [vmem:[%s7773_s6 + $0x18] sm:$0xff]  ;;  %v1084_v20 = vld [vmem:[%s5827_s24 + $0x10] sm:$0xff] }
 0x189   : > { %v1085_v9 = vld [vmem:[%s5827_s24 + $0x18] sm:$0xff] }
 0x18a   : > { %v2556_v14 = vadd.f32 %v2555_v55, %v2554_v50  ;;  %v1074_v55 = vld [vmem:[%s7773_s6] sm:$0xff] }
 0x18c   : > { %v2572_v61 = vmul.f32 0.01, %v2556_v14  ;;  %v2564_v1 = vmul.f32 %v2556_v14, %v7854_v24  ;;  %v1075_v14 = vld [vmem:[%s7773_s6 + $0x8] sm:$0xff] }
 0x18e   : > { %v2593_v27 = vsel %vm7732_vm9, %v2572_v61, %v2592_v22  ;;  %v6782_v3 = vsel %vm7732_vm9, %v2564_v1, %v2761_v46  ;;  %v5417_v22 = vpack.c.bf16 %v1067_v39, %v1066_v25  ;;  %v5420_v1 = vpack.c.bf16 %v1075_v14, %v1074_v55  ;;  %v1092_v25 = vld [vmem:[%s7855_s11] sm:$0xff]  ;;  %v1093_v39 = vld [vmem:[%s7855_s11 + $0x8] sm:$0xff] }
 0x18f   : > { %v5432_v14 = vpack.c.bf16 %v1093_v39, %v1092_v25 }
 0x1fc   : > { %v2135_v34 = vpop.f32.mrb[0].mxu1 }
 0x1fd   : > { %v5160_v48 = vpop.f32.mrb[1].mxu1  ;;  %v2136_v21 = vadd.f32 %v4870_v54, %v2135_v34 }
 0x1fe   : > { %v1076_v48 = vld [vmem:[%s7773_s6 + $0x10] sm:$0xff] }
 0x204   : > { %v2228_v33 = vpop.f32.mrb[2].mxu1 }
 0x205   : > { %v2229_v13 = vadd.f32 %v4872_v11, %v2228_v33  ;;  %v5171_v28 = vpop.f32.mrb[3].mxu1  ;;  %v5423_v11 = vpack.c.bf16 %v1077_v42, %v1076_v48 }
 0x207   : > { %5177 = vmatmul.mubr.msk.f32.vlgmr.msra.gmra.mrb[4].mxu1 %vm7729_vm14, %v2229_v13  ;;  %v1083_v13 = vld [vmem:[%s5827_s24 + $0x8] sm:$0xff] }
 0x208   : > { %v6791_v0 = vpop.f32.mrb[32].mxu0  ;;  %5412 = vmatpush3.bf16.msra.mxu1 %v5411_v29  ;;  %5183 = vmatprep.mubr.msk.f32.mxu1 %vm7730_vm2, %v7818_v62  ;;  %v1082_v29 = vld [vmem:[%s5827_s24] sm:$0xff] }
 0x209   : > { %v6795_v58 = vpop.f32.mrb[33].mxu0  ;;  %5413 = vmatprep.subr.bf16.mxu1 %v7819_v12  ;;  %v5426_v28 = vpack.c.bf16 %v1083_v13, %v1082_v29 }
 0x20b   : > { %5184 = vmatmul.mubr.msk.f32.vlgmr.msra.gmra.mrb[6].mxu1 %vm7729_vm14, %v2136_v21  ;;  %v5429_v21 = vpack.c.bf16 %v1085_v9, %v1084_v20 }
 0x20c   : > { %v6801_v50 = vpop.f32.mrb[34].mxu0  ;;  %5415 = vmatpush3.bf16.msra.mxu1 %v5414_v6  ;;  %5194 = vmatprep.mubr.msk.f32.mxu1 %vm7730_vm2, %v7818_v62 }
 0x20d   : > { %v6803_v46 = vpop.f32.mrb[35].mxu0  ;;  %5416 = vmatprep.subr.bf16.mxu1 %v7819_v12 }
 0x210   : > { %v6810_v61 = vpop.f32.mrb[36].mxu0  ;;  %5418 = vmatpush3.bf16.msra.mxu1 %v5417_v22 }
 0x211   : > { %v6812_v34 = vpop.f32.mrb[37].mxu0  ;;  %5419 = vmatprep.subr.bf16.mxu1 %v7819_v12 }
 0x213   : > { %5195 = vmatmul.mubr.msk.f32.vlgmr.msra.gmra.mrb[8].mxu1 %vm7739_vm0, %v2593_v27 }
 0x214   : > { %v6818_v38 = vpop.f32.mrb[38].mxu0  ;;  %5421 = vmatpush3.bf16.msra.mxu1 %v5420_v1  ;;  %5205 = vmatprep.mubr.msk.f32.mxu1 %vm7730_vm2, %v7818_v62  ;;  %v1095_v1 = vld [vmem:[%s7855_s11 + $0x18] sm:$0xff] }
 0x215   : > { %v6820_v33 = vpop.f32.mrb[39].mxu0  ;;  %5422 = vmatprep.subr.bf16.mxu1 %v7819_v12 }
 0x218   : > { %5424 = vmatpush3.bf16.msra.mxu1 %v5423_v11 }
 0x219   : > { %5425 = vmatprep.subr.bf16.mxu1 %v7819_v12 }
 0x21b   : > { %v6830_v54 = vpop.f32.mrb[40].mxu0  ;;  %5206 = vmatmul.mubr.msk.f32.vlgmr.msra.gmra.mrb[10].mxu1 %vm7739_vm0, %v2593_v27  ;;  %v1094_v27 = vld [vmem:[%s7855_s11 + $0x10] sm:$0xff] }
 0x21c   : > { %v6833_v6 = vpop.f32.mrb[41].mxu0  ;;  %5427 = vmatpush3.bf16.msra.mxu1 %v5426_v28  ;;  %5216 = vmatprep.mubr.msk.f32.mxu1 %vm7730_vm2, %v7818_v62  ;;  %v5435_v42 = vpack.c.bf16 %v1095_v1, %v1094_v27 }
 0x21d   : > { %5428 = vmatprep.subr.bf16.mxu1 %v7819_v12 }
 0x21f   : > { %v6840_v22 = vpop.f32.mrb[42].mxu0 }
 0x220   : > { %v6842_v55 = vpop.f32.mrb[43].mxu0  ;;  %5430 = vmatpush3.bf16.msra.mxu1 %v5429_v21 }
 0x221   : > { %5431 = vmatprep.subr.bf16.mxu1 %v7819_v12 }
 0x223   : > { %5217 = vmatmul.mubr.msk.f32.vlgmr.msra.gmra.mrb[12].mxu1 %vm7739_vm0, %v6782_v3 }
 0x224   : > { %v6849_v48 = vpop.f32.mrb[44].mxu0  ;;  %5433 = vmatpush3.bf16.msra.mxu1 %v5432_v14  ;;  %5227 = vmatprep.mubr.msk.f32.mxu1 %vm7730_vm2, %v7818_v62 }
 0x225   : > { %v6853_v11 = vpop.f32.mrb[45].mxu0  ;;  %5434 = vmatprep.subr.bf16.mxu1 %v7819_v12 }
 0x228   : > { %5436 = vmatpush3.bf16.msra.mxu1 %v5435_v42 }
 0x229   : > { %v6856_v29 = vpop.f32.mrb[46].mxu0  ;;  %5437 = vmatprep.subr.bf16.mxu1 %v7819_v12 }
 0x22a   : > { %v6859_v13 = vpop.f32.mrb[47].mxu0 }
 0x22b   : > { %5228 = vmatmul.mubr.msk.f32.vlgmr.msra.gmra.mrb[10].mxu1 %vm7739_vm0, %v6782_v3 }
 0x22c   : > { %5234 = vmatprep.mubr.msk.f32.mxu1 %vm7730_vm2, %v7818_v62  ;;  %5439 = vmatpush3.bf16.msra.mxu1 %v5438_v26 }
 0x22d   : > { %v6865_v28 = vpop.f32.mrb[48].mxu0  ;;  %5440 = vmatprep.subr.bf16.mxu1 %v7819_v12 }
 0x22e   : > { %v6867_v20 = vpop.f32.mrb[49].mxu0 }
 0x233   : > { %v6869_v9 = vpop.f32.mrb[50].mxu0 }
 0x234   : > { %v6871_v21 = vpop.f32.mrb[51].mxu0 }
 0x237   : > { %v6873_v25 = vpop.f32.mrb[52].mxu0 }
 0x238   : > { %v6875_v39 = vpop.f32.mrb[53].mxu0 }
 0x23b   : > { %v6877_v14 = vpop.f32.mrb[54].mxu0 }
 0x23c   : > { %v6879_v3 = vpop.f32.mrb[55].mxu0 }
 0x23f   : > { %v6881_v27 = vpop.f32.mrb[56].mxu0 }
 0x240   : > { %v6883_v1 = vpop.f32.mrb[57].mxu0 }
 0x246   : > { %v6885_v42 = vpop.f32.mrb[58].mxu0 }
 0x247   : > { %v6887_v24 = vpop.f32.mrb[59].mxu0 }
 0x24a   : > { %v6889_v44 = vpop.f32.mrb[60].mxu0 }
 0x24b   : > { %v6891_v4 = vpop.f32.mrb[61].mxu0 }
 0x24e   : > { %v6893_v59 = vpop.f32.mrb[62].mxu0 }
 0x24f   : > { %v6895_v18 = vpop.f32.mrb[63].mxu0 }
 0x2da   : > { %v2302_v47 = vpop.f32.mrb[4].mxu1 }
 0x2db   : > { %v5178_v7 = vpop.f32.mrb[5].mxu1 }
 0x2de   : > { %v2375_v16 = vpop.f32.mrb[6].mxu1 }
 0x2df   : > { %v2376_v41 = vadd.f32 %v2375_v16, %v2302_v47  ;;  %v5185_v51 = vpop.f32.mrb[7].mxu1  ;;  %v1106_v16 = vld [vmem:[%s5852_s19 + $0x8] sm:$0xff] }
 0x2e0   : > { %v1105_v51 = vld [vmem:[%s5852_s19] sm:$0xff] }
 0x2e1   : > { %v2385_v60 = vadd.f32 %v4876_v53, %v2376_v41  ;;  %v5441_v41 = vpack.c.bf16 %v1106_v16, %v1105_v51  ;;  %v4883_v16 = vld [vmem:[%s7861_s30] ss:$0 sm:$0xff] }
 0x2e3   : > { %vm2386_vm15 = vcmp.ge.f32.partialorder %v2385_v60, 0.0  ;;  %v2387_v52 = vmul.f32 0.01, %v2385_v60 }
 0x2e5   : > { %v6901_v31 = vsel %vm2386_vm15, %v2385_v60, %v2387_v52  ;;  %v4877_v52 = vld [vmem:[%s7858_s1] ss:$0 sm:$0xff] }
 0x2e6   : > { %7860 = vst [vmem:[#allocation96_spill] sm:$0xff] %v6901_v31  ;;  %v2662_v43 = vpop.f32.mrb[8].mxu1  ;;  %5235 = vmatmul.mubr.msk.f32.vlgmr.msra.gmra.mrb[14].mxu1 %vm7729_vm14, %v6901_v31  ;;  %v4880_v60 = vld [vmem:[%s7859_s3] ss:$0 sm:$0xff] }
 0x2e7   : > { %v5196_v45 = vpop.f32.mrb[9].mxu1  ;;  %5241 = vmatprep.mubr.msk.f32.mxu1 %vm7730_vm2, %v7818_v62  ;;  %5442 = vmatpush3.bf16.msra.mxu1 %v5441_v41  ;;  %v2663_v53 = vadd.f32 %v4877_v52, %v2662_v43  ;;  %v1109_v52 = vld [vmem:[%s5862_s28 + $0x8] sm:$0xff] }
 0x2e8   : > { %5443 = vmatprep.subr.bf16.mxu1 %v7819_v12 }
 0x2e9   : > { %v2666_v31 = vsub.f32 0.0, %v2663_v53 }
 0x2eb   : > { %v2667_v23 = vmul.f32 1.442695, %v2666_v31  ;;  %v1108_v31 = vld [vmem:[%s5862_s28] sm:$0xff] }
 0x2ed   : > { %5591 = vpow2.f32 %v2667_v23 }
 0x2f6   : > { %v2831_v26 = vpop.f32.mrb[12].mxu1 }
 0x2f7   : > { %v5218_v7 = vpop.f32.mrb[13].mxu1  ;;  %v2832_v56 = vadd.f32 %v4880_v60, %v2831_v26  ;;  %v5444_v60 = vpack.c.bf16 %v1109_v52, %v1108_v31 }
 0x2f8   : > { %v5592_v7 = vpop.eup %5591 }
 0x2f9   : > { %v2835_v45 = vsub.f32 0.0, %v2832_v56  ;;  %v2669_v30 = vadd.f32 1.0, %v5592_v7  ;;  %v1071_v7 = vld [vmem:[%s5812_s20 + $0x38] sm:$0xff] }
 0x2fb   : > { %v2836_v57 = vmul.f32 1.442695, %v2835_v45 }
 0x2fd   : > { %5593 = vpow2.f32 %v2836_v57 }
 0x2fe   : > { %v2907_v19 = vpop.f32.mrb[10].mxu1  ;;  %5595 = vrcp.f32 %v2669_v30  ;;  %v1069_v30 = vld [vmem:[%s5812_s20 + $0x28] sm:$0xff] }
 0x2ff   : > { %v5229_v47 = vpop.f32.mrb[11].mxu1 }
 0x307   : > { %v5594_v47 = vpop.eup %5593 }
 0x308   : > { %v2838_v51 = vadd.f32 1.0, %v5594_v47  ;;  %v5596_v26 = vpop.eup %5595 }
 0x30a   : > { %5597 = vrcp.f32 %v2838_v51  ;;  %v4885_v51 = vld [vmem:[%s7863_s4] ss:$0 sm:$0xff]  ;;  %s8016_s4 = sld [smem:[#allocation16_spill]] }
 0x314   : > { %v5598_v23 = vpop.eup %5597 }
 0x3b9   : > { %v2986_v41 = vpop.f32.mrb[14].mxu1 }
 0x3ba   : > { %v2987_v63 = vadd.f32 %v4883_v16, %v2986_v41  ;;  %v5236_v43 = vpop.f32.mrb[15].mxu1 }
 0x3bc   : > { %v2990_v56 = vmul.f32 %v5596_v26, %v2987_v63  ;;  %v1068_v63 = vld [vmem:[%s5812_s20 + $0x20] sm:$0xff] }
 0x3bd   : > { %v5455_v45 = vpack.c.bf16 %v1069_v30, %v1068_v63 }
 0x3be   : > { %v2991_v57 = vmul.f32 %v5598_v23, %v2990_v56  ;;  %v5709_v23 = vmov 1966171168  }
 0x3c0   : > { %v6915_v53 = vadd.f32 %v2991_v57, %v2907_v19  ;;  %v1070_v19 = vld [vmem:[%s5812_s20 + $0x30] sm:$0xff]  ;;  %v3479_v57 = vunpack.c.l.s4 %v5709_v23 }
 0x3c1   : > { %v5458_v47 = vpack.c.bf16 %v1071_v7, %v1070_v19 }
 0x3c2   : > { %7862 = vst [vmem:[#allocation97_spill] sm:$0xff] %v6915_v53  ;;  %5242 = vmatmul.mubr.msk.f32.vlgmr.msra.gmra.mrb[16].mxu1 %vm7729_vm14, %v6915_v53  ;;  %v3480_v63 = vunpack.c.0.s8 %v3479_v57 }
 0x3c3   : > { %5445 = vmatpush3.bf16.msra.mxu1 %v5444_v60  ;;  %5248 = vmatprep.mubr.msk.f32.mxu1 %vm7730_vm2, %v7818_v62  ;;  %v3481_v60 = vlaneseq }
 0x3c4   : > { %5454 = vmatprep.subr.bf16.mxu1 %v7819_v12 }
 0x3c5   : > { %v3482_v30 = vshrl.u32 %v3481_v60, 7 }
 0x3c6   : > { %5249 = vmatmul.mubr.msk.f32.vlgmr.msra.gmra.mrb[18].mxu1 %vm7729_vm14, %v6915_v53 }
 0x3c7   : > { %5315 = vmatprep.mubr.msk.f32.mxu1 %vm7730_vm2, %v7818_v62  ;;  %5456 = vmatpush3.bf16.msra.mxu1 %v5455_v45  ;;  %v6933_v19 = vsub.s32 %v3480_v63, %v3482_v30 }
 0x3c8   : > { %5457 = vmatprep.subr.bf16.mxu1 %v7819_v12 }
 0x3cb   : > { %5459 = vmatpush3.bf16.msra.mxu1 %v5458_v47  ;;  %v4888_v47 = vld [vmem:[%s7864_s5] ss:$0 sm:$0xff]  ;;  %s8008_s5 = sld [smem:[#allocation12_spill]] }
 0x3cc   : > { %5460 = vmatprep.subr.bf16.mxu1 %v7819_v12  ;;  %v6972_v23 = vadd.f32 %v4888_v47, %v6842_v55  ;;  %v6992_v57 = vadd.f32 %v4888_v47, %v6867_v20  ;;  %v7012_v60 = vadd.f32 %v4888_v47, %v6879_v3  ;;  %v3458_v3 = vadd.f32 %v4888_v47, %v6891_v4 }
 0x495   : > { %v3069_v16 = vpop.f32.mrb[16].mxu1 }
 0x496   : > { %v3070_v41 = vadd.f32 %v4885_v51, %v3069_v16  ;;  %v5243_v43 = vpop.f32.mrb[17].mxu1  ;;  %v6939_v16 = vadd.f32 %v6791_v0, %v4888_v47  ;;  %v6960_v0 = vadd.f32 %v4888_v47, %v6820_v33  ;;  %v6981_v33 = vadd.f32 %v6856_v29, %v4888_v47 }
 0x497   : > { %v6945_v43 = vadd.f32 %v6801_v50, %v4888_v47  ;;  %v6966_v50 = vadd.f32 %v4888_v47, %v6833_v6  ;;  %v6987_v6 = vadd.f32 %v6865_v28, %v4888_v47  ;;  %v7001_v29 = vadd.f32 %v6873_v25, %v4888_v47 }
 0x498   : > { %v3073_v26 = vsub.f32 0.0, %v3070_v41  ;;  %v6942_v41 = vadd.f32 %v4888_v47, %v6795_v58  ;;  %v6963_v58 = vadd.f32 %v6830_v54, %v4888_v47  ;;  %v6984_v54 = vadd.f32 %v4888_v47, %v6859_v13 }
 0x499   : > { %v3145_v56 = vpop.f32.mrb[18].mxu1  ;;  %v7004_v13 = vadd.f32 %v4888_v47, %v6875_v39  ;;  %v7007_v28 = vadd.f32 %v6877_v14, %v4888_v47  ;;  %v3528_v25 = vsub.s32 0, %v3482_v30  ;;  %v7021_v39 = vadd.f32 %v6885_v42, %v4888_v47 }
 0x49a   : > { %v3074_v31 = vmul.f32 1.442695, %v3073_v26  ;;  %v5250_v52 = vpop.f32.mrb[19].mxu1  ;;  %v3599_v45 = vcombine.high %v3145_v56, %v3145_v56  ;;  %v3606_v12 = vrot.slane %v3145_v56, %v6933_v19  ;;  %v6948_v26 = vadd.f32 %v4888_v47, %v6803_v46 }
 0x49b   : > { %v6951_v52 = vadd.f32 %v6810_v61, %v4888_v47  ;;  %v6957_v56 = vadd.f32 %v6818_v38, %v4888_v47  ;;  %v6969_v46 = vadd.f32 %v6840_v22, %v4888_v47  ;;  %v6978_v38 = vadd.f32 %v4888_v47, %v6853_v11 }
 0x49c   : > { %5599 = vpow2.f32 %v3074_v31  ;;  %v3613_v51 = vrot.slane %v3599_v45, %v6933_v19  ;;  %v3614_v31 = vcombine.high %v3606_v12, %v3606_v12  ;;  %v3622_v22 = vrot.slane %v3606_v12, %v6933_v19 }
 0x49d   : > { %v6998_v11 = vadd.f32 %v4888_v47, %v6871_v21  ;;  %v7018_v21 = vadd.f32 %v4888_v47, %v6883_v1  ;;  %v7024_v14 = vadd.f32 %v4888_v47, %v6887_v24  ;;  %v3473_v1 = vadd.f32 %v6893_v59, %v4888_v47 }
 0x49e   : > { %v3615_v61 = vcombine.high %v3613_v51, %v3613_v51  ;;  %v3636_v55 = vrot.slane %v3614_v31, %v6933_v19  ;;  %v3629_v12 = vrot.slane %v3613_v51, %v6933_v19  ;;  %v3644_v45 = vcombine.high %v3622_v22, %v3622_v22 }
 0x49f   : > { %v7027_v51 = vadd.f32 %v6889_v44, %v4888_v47  ;;  %v3468_v30 = vadd.f32 %v4888_v47, %v6895_v18  ;;  %v3651_v8 = vrot.slane %v3622_v22, %v3528_v25 }
 0x4a0   : > { %v3643_v20 = vrot.slane %v3615_v61, %v6933_v19  ;;  %v3645_v61 = vcombine.high %v3629_v12, %v3629_v12  ;;  %v3655_v17 = vrot.slane %v3636_v55, %v3528_v25  ;;  %v7035_v44 = vrot.slane %v3644_v45, %v3528_v25 }
 0x4a1   : > { %v7039_v4 = vrot.slane %v3629_v12, %v3528_v25 }
 0x4a2   : > { %v3647_v42 = vcombine.high %v3643_v20, %v3643_v20  ;;  %v7043_v32 = vrot.slane %v3643_v20, %v3528_v25 }
 0x4a6   : > { %v5600_v7 = vpop.eup %5599 }
 0x4a7   : > { %v3076_v53 = vadd.f32 1.0, %v5600_v7  ;;  %v3646_v7 = vcombine.high %v3636_v55, %v3636_v55 }
 0x4a9   : > { %5601 = vrcp.f32 %v3076_v53  ;;  %v6954_v53 = vadd.f32 %v4888_v47, %v6812_v34  ;;  %v6975_v34 = vadd.f32 %v6849_v48, %v4888_v47  ;;  %v6995_v48 = vadd.f32 %v6869_v9, %v4888_v47 }
 0x4aa   : > { %v7015_v9 = vadd.f32 %v6881_v27, %v4888_v47  ;;  %v7037_v37 = vrot.slane %v3646_v7, %v3528_v25 }
 0x4b3   : > { %v5602_v63 = vpop.eup %5601 }
 0x4b4   : > { %v3477_v27 = vcombine.high %v5602_v63, %v5602_v63  ;;  %v3484_v31 = vrot.slane %v5602_v63, %v6933_v19 }
 0x4b6   : > { %v3491_v62 = vrot.slane %v3477_v27, %v6933_v19  ;;  %v3492_v24 = vcombine.high %v3484_v31, %v3484_v31  ;;  %v3500_v36 = vrot.slane %v3484_v31, %v6933_v19  ;;  %v7045_v27 = vrot.slane %v3645_v61, %v3528_v25 }
 0x4b7   : > { %v7047_v31 = vrot.slane %v3647_v42, %v3528_v25 }
 0x4b8   : > { %v3493_v63 = vcombine.high %v3491_v62, %v3491_v62  ;;  %v3507_v59 = vrot.slane %v3491_v62, %v6933_v19  ;;  %v3514_v18 = vrot.slane %v3492_v24, %v6933_v19  ;;  %v3522_v47 = vcombine.high %v3500_v36, %v3500_v36 }
 0x4b9   : > { %v3529_v49 = vrot.slane %v3500_v36, %v3528_v25 }
 0x4ba   : > { %v3521_v22 = vrot.slane %v3493_v63, %v6933_v19  ;;  %v3523_v55 = vcombine.high %v3507_v59, %v3507_v59  ;;  %v3524_v45 = vcombine.high %v3514_v18, %v3514_v18  ;;  %v3533_v7 = vrot.slane %v3514_v18, %v3528_v25 }
 0x4bb   : > { %v3537_v12 = vrot.slane %v3522_v47, %v3528_v25  ;;  %v3545_v35 = vrot.slane %v3507_v59, %v3528_v25  ;;  %v3566_v40 = vmul.f32 %v3529_v49, %v6942_v41  ;;  %v3567_v62 = vmul.f32 %v3529_v49, %v6939_v16 }
 0x4bc   : > { %v3525_v24 = vcombine.high %v3521_v22, %v3521_v22  ;;  %v3541_v2 = vrot.slane %v3524_v45, %v3528_v25  ;;  %v3549_v36 = vrot.slane %v3521_v22, %v3528_v25  ;;  %v3553_v20 = vrot.slane %v3523_v55, %v3528_v25 }
 0x4bd   : > { %v3568_v61 = vmul.f32 %v3529_v49, %v6948_v26  ;;  %v3569_v42 = vmul.f32 %v3529_v49, %v6945_v43  ;;  %v3570_v15 = vmul.f32 %v3533_v7, %v6954_v53  ;;  %v3571_v19 = vmul.f32 %v3533_v7, %v6951_v52 }
 0x4be   : > { %v3557_v63 = vrot.slane %v3525_v24, %v3528_v25  ;;  %v3572_v18 = vmul.f32 %v3533_v7, %v6960_v0  ;;  %v3573_v59 = vmul.f32 %v3533_v7, %v6957_v56  ;;  %v3574_v41 = vmul.f32 %v3537_v12, %v6966_v50 }
 0x4bf   : > { %v3575_v16 = vmul.f32 %v3537_v12, %v6963_v58  ;;  %v3576_v47 = vmul.f32 %v3537_v12, %v6972_v23  ;;  %v3577_v22 = vmul.f32 %v3537_v12, %v6969_v46  ;;  %v3578_v26 = vmul.f32 %v3541_v2, %v6978_v38 }
 0x4c0   : > { %v3579_v49 = vmul.f32 %v3541_v2, %v6975_v34  ;;  %v3580_v43 = vmul.f32 %v3541_v2, %v6984_v54  ;;  %v3581_v52 = vmul.f32 %v3541_v2, %v6981_v33  ;;  %v3582_v53 = vmul.f32 %v3545_v35, %v6992_v57 }
 0x4c1   : > { %v3583_v56 = vmul.f32 %v3545_v35, %v6987_v6  ;;  %v3584_v0 = vmul.f32 %v3545_v35, %v6998_v11  ;;  %v3585_v58 = vmul.f32 %v3545_v35, %v6995_v48  ;;  %v3586_v50 = vmul.f32 %v3549_v36, %v7004_v13 }
 0x4c2   : > { %v3587_v46 = vmul.f32 %v3549_v36, %v7001_v29  ;;  %v3588_v23 = vmul.f32 %v3549_v36, %v7012_v60  ;;  %v3589_v34 = vmul.f32 %v3549_v36, %v7007_v28  ;;  %v3590_v38 = vmul.f32 %v3553_v20, %v7018_v21 }
 0x4c3   : > { %v3591_v2 = vmul.f32 %v3553_v20, %v7015_v9  ;;  %v3592_v33 = vmul.f32 %v3553_v20, %v7024_v14  ;;  %v3593_v54 = vmul.f32 %v3553_v20, %v7021_v39  ;;  %v3594_v6 = vmul.f32 %v3557_v63, %v3458_v3 }
 0x4c4   : > { %v3595_v57 = vmul.f32 %v3557_v63, %v7027_v51  ;;  %v3596_v35 = vmul.f32 %v3557_v63, %v3468_v30  ;;  %v3597_v48 = vmul.f32 %v3557_v63, %v3473_v1  ;;  %v3688_v11 = vadd.f32 %v3651_v8, %v3566_v40 }
 0x4c5   : > { %v3689_v13 = vadd.f32 %v3651_v8, %v3567_v62  ;;  %v3690_v29 = vadd.f32 %v3651_v8, %v3568_v61  ;;  %v3691_v25 = vadd.f32 %v3651_v8, %v3569_v42  ;;  %v3692_v60 = vadd.f32 %v3655_v17, %v3570_v15 }
 0x4c6   : > { %v3693_v55 = vadd.f32 %v3655_v17, %v3571_v19  ;;  %v3694_v28 = vadd.f32 %v3655_v17, %v3572_v18  ;;  %v3695_v45 = vadd.f32 %v3655_v17, %v3573_v59  ;;  %v3696_v21 = vadd.f32 %v7035_v44, %v3574_v41  ;;  %v7865_v18 = vld [vmem:[#allocation67_spill] sm:$0xff]  ;;  %v7866_v41 = vld [vmem:[#allocation66_spill] sm:$0xff] }
 0x4c7   : > { %v3697_v9 = vadd.f32 %v7035_v44, %v3575_v16  ;;  %v3698_v14 = vadd.f32 %v7035_v44, %v3576_v47  ;;  %v3699_v39 = vadd.f32 %v7035_v44, %v3577_v22  ;;  %v3700_v51 = vadd.f32 %v7037_v37, %v3578_v26  ;;  %v7868_v22 = vld [vmem:[#allocation68_spill] sm:$0xff] }
 0x4c8   : > { %v3701_v3 = vadd.f32 %v7037_v37, %v3579_v49  ;;  %v3702_v40 = vadd.f32 %v7037_v37, %v3580_v43  ;;  %v3703_v8 = vadd.f32 %v7037_v37, %v3581_v52  ;;  %v3704_v15 = vadd.f32 %v7039_v4, %v3582_v53  ;;  %v7869_v49 = vld [vmem:[#allocation71_spill] sm:$0xff]  ;;  %v7872_v53 = vld [vmem:[#allocation72_spill] sm:$0xff] }
 0x4c9   : > { %v3705_v17 = vadd.f32 %v7039_v4, %v3583_v56  ;;  %v3706_v1 = vadd.f32 %v7039_v4, %v3584_v0  ;;  %v3707_v30 = vadd.f32 %v7039_v4, %v3585_v58  ;;  %v3708_v7 = vadd.f32 %v7043_v32, %v3586_v50  ;;  %v7873_v0 = vld [vmem:[#allocation75_spill] sm:$0xff]  ;;  %v7874_v50 = vld [vmem:[#allocation74_spill] sm:$0xff] }
 0x4ca   : > { %v3709_v44 = vadd.f32 %v7043_v32, %v3587_v46  ;;  %v3710_v12 = vadd.f32 %v7043_v32, %v3588_v23  ;;  %v3711_v62 = vadd.f32 %v7043_v32, %v3589_v34  ;;  %v3712_v24 = vadd.f32 %v7045_v27, %v3590_v38  ;;  %v7875_v23 = vld [vmem:[#allocation77_spill] sm:$0xff]  ;;  %v7876_v38 = vld [vmem:[#allocation76_spill] sm:$0xff] }
 0x4cb   : > { %v3713_v37 = vadd.f32 %v7045_v27, %v3591_v2  ;;  %v3714_v36 = vadd.f32 %v7045_v27, %v3592_v33  ;;  %v3715_v20 = vadd.f32 %v7045_v27, %v3593_v54  ;;  %v3716_v61 = vadd.f32 %v7047_v31, %v3594_v6  ;;  %v7867_v27 = vld [vmem:[#allocation69_spill] sm:$0xff]  ;;  %v7877_v33 = vld [vmem:[#allocation79_spill] sm:$0xff]  ;;  %v7878_v6 = vld [vmem:[#allocation78_spill] sm:$0xff] }
 0x4cc   : > { %v3717_v4 = vadd.f32 %v7047_v31, %v3595_v57  ;;  %v3718_v42 = vadd.f32 %v7047_v31, %v3596_v35  ;;  %v3719_v19 = vadd.f32 %v7047_v31, %v3597_v48  ;;  %v3724_v63 = vadd.f32 %v3688_v11, %v6481_v10  ;;  %v7870_v31 = vld [vmem:[#allocation70_spill] sm:$0xff]  ;;  %v7879_v35 = vld [vmem:[#allocation81_spill] sm:$0xff]  ;;  %v7880_v11 = vld [vmem:[#allocation80_spill] sm:$0xff] }
 0x4cd   : > { %v7105_v32 = vadd.f32 %v3689_v13, %v6475_v5  ;;  %v7108_v59 = vadd.f32 %v3690_v29, %v7865_v18  ;;  %v7111_v16 = vadd.f32 %v3691_v25, %v7866_v41  ;;  %v7114_v47 = vadd.f32 %v3692_v60, %v7867_v27  ;;  %v7871_v5 = vld [vmem:[#allocation73_spill] sm:$0xff]  ;;  %v7881_v29 = vld [vmem:[#allocation83_spill] sm:$0xff]  ;;  %v7882_v60 = vld [vmem:[#allocation82_spill] sm:$0xff] }
 0x4ce   : > { %v7117_v26 = vadd.f32 %v3693_v55, %v7868_v22  ;;  %v7120_v43 = vadd.f32 %v3694_v28, %v7869_v49  ;;  %v7123_v10 = vadd.f32 %v3695_v45, %v7870_v31  ;;  %v7126_v52 = vadd.f32 %v3696_v21, %v7871_v5  ;;  %v7883_v28 = vld [vmem:[#allocation85_spill] sm:$0xff]  ;;  %v7884_v21 = vld [vmem:[#allocation84_spill] sm:$0xff] }
 0x4cf   : > { %v7129_v56 = vadd.f32 %v3697_v9, %v7872_v53  ;;  %v7132_v58 = vadd.f32 %v3698_v14, %v7873_v0  ;;  %v7135_v46 = vadd.f32 %v3699_v39, %v7874_v50  ;;  %v7138_v34 = vadd.f32 %v3700_v51, %v7875_v23  ;;  %v7885_v14 = vld [vmem:[#allocation87_spill] sm:$0xff]  ;;  %v7886_v51 = vld [vmem:[#allocation86_spill] sm:$0xff] }
 0x4d0   : > { %v7141_v2 = vadd.f32 %v3701_v3, %v7876_v38  ;;  %v7144_v54 = vadd.f32 %v3702_v40, %v7877_v33  ;;  %v7147_v57 = vadd.f32 %v3703_v8, %v7878_v6  ;;  %v7150_v48 = vadd.f32 %v3704_v15, %v7879_v35  ;;  %v7887_v40 = vld [vmem:[#allocation89_spill] sm:$0xff]  ;;  %v7888_v15 = vld [vmem:[#allocation88_spill] sm:$0xff] }
 0x4d1   : > { %v7153_v13 = vadd.f32 %v3705_v17, %v7880_v11  ;;  %v7156_v25 = vadd.f32 %v3706_v1, %v7881_v29  ;;  %v7159_v55 = vadd.f32 %v3707_v30, %v7882_v60  ;;  %v7162_v45 = vadd.f32 %v3708_v7, %v7883_v28  ;;  %v7889_v1 = vld [vmem:[#allocation91_spill] sm:$0xff]  ;;  %v7890_v7 = vld [vmem:[#allocation90_spill] sm:$0xff] }
 0x4d2   : > { %v7165_v9 = vadd.f32 %v3709_v44, %v7884_v21  ;;  %v7168_v39 = vadd.f32 %v3710_v12, %v7885_v14  ;;  %v7171_v3 = vadd.f32 %v3711_v62, %v7886_v51  ;;  %v7174_v8 = vadd.f32 %v3712_v24, %v7887_v40  ;;  %v7891_v44 = vld [vmem:[#allocation93_spill] sm:$0xff]  ;;  %v7892_v12 = vld [vmem:[#allocation92_spill] sm:$0xff]  ;;  %v7893_v62 = vld [vmem:[#allocation95_spill] sm:$0xff] }
 0x4d3   : > { %v7177_v17 = vadd.f32 %v3713_v37, %v7888_v15  ;;  %v7180_v30 = vadd.f32 %v3714_v36, %v7889_v1  ;;  %v7183_v18 = vadd.f32 %v3715_v20, %v7890_v7  ;;  %v7186_v41 = vadd.f32 %v3716_v61, %v7891_v44  ;;  %v7894_v37 = vld [vmem:[#allocation94_spill] sm:$0xff] }
 0x4d4   : > { %v7189_v27 = vadd.f32 %v3717_v4, %v7892_v12  ;;  %v7192_v22 = vadd.f32 %v3718_v42, %v7893_v62  ;;  %vm3756_vm1 = vcmp.ge.f32.partialorder %v3724_v63, 0.0  ;;  %vm3757_vm10 = vcmp.ge.f32.partialorder %v7105_v32, 0.0 }
 0x4d5   : > { %vm3758_vm11 = vcmp.ge.f32.partialorder %v7108_v59, 0.0  ;;  %vm3759_vm12 = vcmp.ge.f32.partialorder %v7111_v16, 0.0  ;;  %vm3760_vm13 = vcmp.ge.f32.partialorder %v7114_v47, 0.0  ;;  %vm3761_vm15 = vcmp.ge.f32.partialorder %v7117_v26, 0.0 }
 0x4d6   : > { %vm3762_vm14 = vcmp.ge.f32.partialorder %v7120_v43, 0.0  ;;  %vm3763_vm2 = vcmp.ge.f32.partialorder %v7123_v10, 0.0  ;;  %vm3764_vm9 = vcmp.ge.f32.partialorder %v7126_v52, 0.0  ;;  %v3788_v24 = vmul.f32 0.01, %v3724_v63 }
 0x4d7   : > { %v7206_v36 = vadd.f32 %v3719_v19, %v7894_v37  ;;  %vm3769_vm4 = vcmp.ge.f32.partialorder %v7141_v2, 0.0  ;;  %v3789_v20 = vmul.f32 0.01, %v7105_v32  ;;  %v3790_v61 = vmul.f32 0.01, %v7108_v59 }
 0x4d8   : > { %v3791_v4 = vmul.f32 0.01, %v7111_v16  ;;  %vm3774_vm8 = vcmp.ge.f32.partialorder %v7156_v25, 0.0  ;;  %vm3775_vm6 = vcmp.ge.f32.partialorder %v7159_v55, 0.0  ;;  %v3792_v42 = vmul.f32 0.01, %v7114_v47 }
 0x4d9   : > { %v3793_v19 = vmul.f32 0.01, %v7117_v26  ;;  %v3794_v49 = vmul.f32 0.01, %v7120_v43  ;;  %v7223_v31 = vsel %vm3756_vm1, %v3724_v63, %v3788_v24  ;;  %vm3779_vm7 = vcmp.ge.f32.partialorder %v7171_v3, 0.0 }
 0x4da   : > { %v3795_v5 = vmul.f32 0.01, %v7123_v10  ;;  %v3796_v53 = vmul.f32 0.01, %v7126_v52  ;;  %v3797_v0 = vmul.f32 0.01, %v7129_v56  ;;  %v3821_v50 = vsel %vm3757_vm10, %v7105_v32, %v3789_v20 }
 0x4db   : > { %vm3781_vm0 = vcmp.ge.f32.partialorder %v7177_v17, 0.0  ;;  %vm3782_vm3 = vcmp.ge.f32.partialorder %v7180_v30, 0.0  ;;  %vm3783_vm5 = vcmp.ge.f32.partialorder %v7183_v18, 0.0  ;;  %v3798_v63 = vmul.f32 0.01, %v7132_v58 }
 0x4dc   : > { %v3799_v23 = vmul.f32 0.01, %v7135_v46  ;;  %v3800_v38 = vmul.f32 0.01, %v7138_v34  ;;  %v3822_v33 = vsel %vm3758_vm11, %v7108_v59, %v3790_v61  ;;  %vm3784_vm10 = vcmp.ge.f32.partialorder %v7186_v41, 0.0 }
 0x4dd   : > { %vm3785_vm1 = vcmp.ge.f32.partialorder %v7189_v27, 0.0  ;;  %v3801_v32 = vmul.f32 0.01, %v7141_v2  ;;  %v3802_v6 = vmul.f32 0.01, %v7144_v54  ;;  %v3823_v11 = vsel %vm3759_vm12, %v7111_v16, %v3791_v4 }
 0x4de   : > { %v3803_v35 = vmul.f32 0.01, %v7147_v57  ;;  %v3804_v29 = vmul.f32 0.01, %v7150_v48  ;;  %v3805_v60 = vmul.f32 0.01, %v7153_v13  ;;  %v3824_v28 = vsel %vm3760_vm13, %v7114_v47, %v3792_v42 }
 0x4df   : > { %v3806_v59 = vmul.f32 0.01, %v7156_v25  ;;  %v3807_v21 = vmul.f32 0.01, %v7159_v55  ;;  %v3808_v14 = vmul.f32 0.01, %v7162_v45  ;;  %v3825_v16 = vsel %vm3761_vm15, %v7117_v26, %v3793_v19 }
 0x4e0   : > { %v3809_v51 = vmul.f32 0.01, %v7165_v9  ;;  %v3810_v40 = vmul.f32 0.01, %v7168_v39  ;;  %v3811_v15 = vmul.f32 0.01, %v7171_v3  ;;  %v3826_v47 = vsel %vm3762_vm14, %v7120_v43, %v3794_v49 }
 0x4e1   : > { %v3812_v1 = vmul.f32 0.01, %v7174_v8  ;;  %v3813_v7 = vmul.f32 0.01, %v7177_v17  ;;  %v3814_v44 = vmul.f32 0.01, %v7180_v30  ;;  %v3827_v26 = vsel %vm3763_vm2, %v7123_v10, %v3795_v5 }
 0x4e2   : > { %v3815_v12 = vmul.f32 0.01, %v7183_v18  ;;  %v3816_v62 = vmul.f32 0.01, %v7186_v41  ;;  %v3817_v24 = vmul.f32 0.01, %v7189_v27  ;;  %v3828_v43 = vsel %vm3764_vm9, %v7126_v52, %v3796_v53 }
 0x4e3   : > { %v7280_v37 = vmul.f32 0.01, %v7192_v22  ;;  %v7286_v20 = vmul.f32 0.01, %v7206_v36  ;;  %vm7897_vm14 = vcmp.ge.f32.partialorder %v7129_v56, 0.0  ;;  %vm7898_vm2 = vcmp.ge.f32.partialorder %v7132_v58, 0.0 }
 0x4e4   : > { %v3829_v61 = vsel %vm7897_vm14, %v7129_v56, %v3797_v0  ;;  %v3830_v10 = vsel %vm7898_vm2, %v7132_v58, %v3798_v63  ;;  %vm7899_vm11 = vcmp.ge.f32.partialorder %v7135_v46, 0.0  ;;  %vm7900_vm12 = vcmp.ge.f32.partialorder %v7138_v34, 0.0  ;;  %v7911_v19 = vld [vmem:[#allocation27_spill] sm:$0xff]  ;;  %v7912_v49 = vld [vmem:[#allocation29_spill] sm:$0xff]  ;;  %v7914_v0 = vld [vmem:[#allocation38_spill] sm:$0xff] }
 0x4e5   : > { %7895 = vst [vmem:[#allocation67_spill] sm:$0xff] %v7280_v37  ;;  %7896 = vst [vmem:[#allocation66_spill] sm:$0xff] %v7286_v20  ;;  %v3831_v4 = vsel %vm7899_vm11, %v7135_v46, %v3799_v23  ;;  %v3832_v42 = vsel %vm7900_vm12, %v7138_v34, %v3800_v38  ;;  %v3833_v52 = vsel %vm3769_vm4, %v7141_v2, %v3801_v32  ;;  %vm7901_vm9 = vcmp.ge.f32.partialorder %v7144_v54, 0.0  ;;  %v7916_v38 = vld [vmem:[#allocation28_spill] sm:$0xff]  ;;  %v7934_v37 = vld [vmem:[#allocation55_spill] sm:$0xff] }
 0x4e6   : > { %v3834_v56 = vsel %vm7901_vm9, %v7144_v54, %v3802_v6  ;;  %vm7902_vm13 = vcmp.ge.f32.partialorder %v7147_v57, 0.0  ;;  %vm7903_vm15 = vcmp.ge.f32.partialorder %v7150_v48, 0.0  ;;  %vm7904_vm14 = vcmp.ge.f32.partialorder %v7153_v13, 0.0  ;;  %v7933_v20 = vld [vmem:[#allocation48_spill] sm:$0xff] }
 0x4e7   : > { %v3835_v58 = vsel %vm7902_vm13, %v7147_v57, %v3803_v35  ;;  %v3836_v46 = vsel %vm7903_vm15, %v7150_v48, %v3804_v29  ;;  %v3837_v34 = vsel %vm7904_vm14, %v7153_v13, %v3805_v60  ;;  %v3838_v2 = vsel %vm3774_vm8, %v7156_v25, %v3806_v59  ;;  %v7918_v35 = vld [vmem:[#allocation41_spill] sm:$0xff]  ;;  %v7919_v60 = vld [vmem:[#allocation31_spill] sm:$0xff]  ;;  %v7920_v59 = vld [vmem:[#allocation30_spill] sm:$0xff] }
 0x4e8   : > { %v3839_v54 = vsel %vm3775_vm6, %v7159_v55, %v3807_v21  ;;  %vm7905_vm4 = vcmp.ge.f32.partialorder %v7162_v45, 0.0  ;;  %vm7906_vm2 = vcmp.ge.f32.partialorder %v7165_v9, 0.0  ;;  %vm7907_vm11 = vcmp.ge.f32.partialorder %v7168_v39, 0.0 }
 0x4e9   : > { %v3840_v57 = vsel %vm7905_vm4, %v7162_v45, %v3808_v14  ;;  %v3841_v48 = vsel %vm7906_vm2, %v7165_v9, %v3809_v51  ;;  %v3842_v13 = vsel %vm7907_vm11, %v7168_v39, %v3810_v40  ;;  %v3843_v25 = vsel %vm3779_vm7, %v7171_v3, %v3811_v15  ;;  %v7921_v14 = vld [vmem:[#allocation37_spill] sm:$0xff]  ;;  %v7923_v40 = vld [vmem:[#allocation35_spill] sm:$0xff]  ;;  %v7924_v15 = vld [vmem:[#allocation34_spill] sm:$0xff] }
 0x4ea   : > { %vm7908_vm8 = vcmp.ge.f32.partialorder %v7174_v8, 0.0  ;;  %v3845_v45 = vsel %vm3781_vm0, %v7177_v17, %v3813_v7  ;;  %v3846_v9 = vsel %vm3782_vm3, %v7180_v30, %v3814_v44  ;;  %v3847_v39 = vsel %vm3783_vm5, %v7183_v18, %v3815_v12  ;;  %v7913_v30 = vld [vmem:[#allocation33_spill] sm:$0xff]  ;;  %v7915_v18 = vld [vmem:[#allocation26_spill] sm:$0xff]  ;;  %v7927_v44 = vld [vmem:[#allocation36_spill] sm:$0xff] }
 0x4eb   : > { %v3844_v55 = vsel %vm7908_vm8, %v7174_v8, %v3812_v1  ;;  %v7348_v3 = vsel %vm3784_vm10, %v7186_v41, %v3816_v62  ;;  %v7353_v8 = vsel %vm3785_vm1, %v7189_v27, %v3817_v24  ;;  %v3852_v17 = vmul.f32 %v7223_v31, %v7911_v19  ;;  %v7917_v41 = vld [vmem:[#allocation32_spill] sm:$0xff]  ;;  %v7922_v51 = vld [vmem:[#allocation45_spill] sm:$0xff]  ;;  %v7928_v12 = vld [vmem:[#allocation39_spill] sm:$0xff] }
 0x4ec   : > { %7909 = vst [vmem:[#allocation69_spill] sm:$0xff] %v7348_v3  ;;  %7910 = vst [vmem:[#allocation68_spill] sm:$0xff] %v7353_v8  ;;  %v3853_v5 = vmul.f32 %v3821_v50, %v7912_v49  ;;  %v3854_v53 = vmul.f32 %v3822_v33, %v7913_v30  ;;  %v3855_v63 = vmul.f32 %v3823_v11, %v7914_v0  ;;  %v7925_v1 = vld [vmem:[#allocation40_spill] sm:$0xff]  ;;  %v7926_v7 = vld [vmem:[#allocation49_spill] sm:$0xff]  ;;  %vm3786_vm0 = vcmp.ge.f32.partialorder %v7192_v22, 0.0 }
 0x4ed   : > { %v3856_v23 = vmul.f32 %v3824_v28, %v7915_v18  ;;  %v3857_v32 = vmul.f32 %v3825_v16, %v7916_v38  ;;  %v3858_v6 = vmul.f32 %v3826_v47, %v7917_v41  ;;  %v3859_v29 = vmul.f32 %v3827_v26, %v7918_v35  ;;  %v7929_v62 = vld [vmem:[#allocation44_spill] sm:$0xff]  ;;  %v7931_v8 = vld [vmem:[#allocation43_spill] sm:$0xff]  ;;  %v7932_v3 = vld [vmem:[#allocation42_spill] sm:$0xff] }
 0x4ee   : > { %v3860_v27 = vmul.f32 %v3828_v43, %v7919_v60  ;;  %v3861_v21 = vmul.f32 %v3829_v61, %v7920_v59  ;;  %v3862_v31 = vmul.f32 %v3830_v10, %v7921_v14  ;;  %v3863_v50 = vmul.f32 %v3831_v4, %v7922_v51  ;;  %v7930_v43 = vld [vmem:[#allocation53_spill] sm:$0xff] }
 0x4ef   : > { %v3864_v33 = vmul.f32 %v3832_v42, %v7923_v40  ;;  %v3865_v11 = vmul.f32 %v3833_v52, %v7924_v15  ;;  %v3866_v28 = vmul.f32 %v3834_v56, %v7925_v1  ;;  %v3867_v16 = vmul.f32 %v3835_v58, %v7926_v7  ;;  %v7935_v56 = vld [vmem:[#allocation47_spill] sm:$0xff]  ;;  %v7936_v58 = vld [vmem:[#allocation46_spill] sm:$0xff] }
 0x4f0   : > { %v3868_v47 = vmul.f32 %v3836_v46, %v7927_v44  ;;  %v3869_v26 = vmul.f32 %v3837_v34, %v7928_v12  ;;  %v3870_v24 = vmul.f32 %v3838_v2, %v7929_v62  ;;  %v3871_v61 = vmul.f32 %v3839_v54, %v7930_v43  ;;  %v7937_v46 = vld [vmem:[#allocation52_spill] sm:$0xff]  ;;  %v7938_v34 = vld [vmem:[#allocation57_spill] sm:$0xff] }
 0x4f1   : > { %v3872_v10 = vmul.f32 %v3840_v57, %v7931_v8  ;;  %v3873_v4 = vmul.f32 %v3841_v48, %v7932_v3  ;;  %v3874_v42 = vmul.f32 %v3842_v13, %v7933_v20  ;;  %v7380_v52 = vmul.f32 %v3843_v25, %v7934_v37 }
 0x4f2   : > { %v3876_v1 = vmul.f32 %v3844_v55, %v7935_v56  ;;  %v3877_v7 = vmul.f32 %v3845_v45, %v7936_v58  ;;  %v7385_v44 = vmul.f32 %v3846_v9, %v7937_v46  ;;  %v7388_v2 = vmul.f32 %v3847_v39, %v7938_v34 }
 0x4f3   : > { %v3884_v54 = vmul.f32 %v3852_v17, %v7911_v19  ;;  %v3885_v57 = vmul.f32 %v3853_v5, %v7912_v49  ;;  %v3886_v48 = vmul.f32 %v3854_v53, %v7913_v30  ;;  %v3887_v13 = vmul.f32 %v3855_v63, %v7914_v0  ;;  %v7939_v53 = vld [vmem:[#allocation40_spill] sm:$0xff]  ;;  %v7940_v63 = vld [vmem:[#allocation49_spill] sm:$0xff] }
 0x4f4   : > { %v3888_v25 = vmul.f32 %v3856_v23, %v7915_v18  ;;  %v3889_v55 = vmul.f32 %v3857_v32, %v7916_v38  ;;  %v3890_v45 = vmul.f32 %v3858_v6, %v7917_v41  ;;  %v3891_v9 = vmul.f32 %v3859_v29, %v7918_v35  ;;  %v7941_v23 = vld [vmem:[#allocation36_spill] sm:$0xff] }
 0x4f5   : > { %v3892_v39 = vmul.f32 %v3860_v27, %v7919_v60  ;;  %v3893_v19 = vmul.f32 %v3861_v21, %v7920_v59  ;;  %vm3787_vm3 = vcmp.ge.f32.partialorder %v7206_v36, 0.0  ;;  %v3894_v17 = vmul.f32 %v3862_v31, %v7921_v14 }
 0x4f6   : > { %v3895_v49 = vmul.f32 %v3863_v50, %v7922_v51  ;;  %v3896_v5 = vmul.f32 %v3864_v33, %v7923_v40  ;;  %v3897_v30 = vmul.f32 %v3865_v11, %v7924_v15  ;;  %v3898_v0 = vmul.f32 %v3866_v28, %v7939_v53 }
 0x4f7   : > { %v3899_v18 = vmul.f32 %v3867_v16, %v7940_v63  ;;  %v3900_v38 = vmul.f32 %v3868_v47, %v7941_v23  ;;  %v3901_v32 = vmul.f32 %v3869_v26, %v7928_v12  ;;  %v3902_v41 = vmul.f32 %v3870_v24, %v7929_v62 }
 0x4f8   : > { %v3903_v6 = vmul.f32 %v3871_v61, %v7930_v43  ;;  %v3904_v35 = vmul.f32 %v3872_v10, %v7931_v8  ;;  %v3905_v29 = vmul.f32 %v3873_v4, %v7932_v3  ;;  %v3906_v60 = vmul.f32 %v3874_v42, %v7933_v20 }
 0x4f9   : > { %v7416_v27 = vmul.f32 %v3876_v1, %v7935_v56  ;;  %v7419_v59 = vmul.f32 %v3877_v7, %v7936_v58  ;;  %vm7942_vm5 = vcmask 261120  }
 0x4fa   : > { %v3916_v21 = vsel %vm7942_vm5, %v3884_v54, 0.0  ;;  %vm7943_vm6 = vmmov %vm7942_vm5  ;;  %v7959_v54 = vld [vmem:[#allocation67_spill] sm:$0xff] }
 0x4fb   : > { %v3917_v14 = vsel %vm7943_vm6, %v3885_v57, 0.0  ;;  %vm7944_vm7 = vmmov %vm7942_vm5  ;;  %v3850_v57 = vsel %vm3786_vm0, %v7192_v22, %v7959_v54  ;;  %v3907_v22 = vmul.f32 %v7380_v52, %v7934_v37 }
 0x4fc   : > { %v3919_v31 = vsel %vm7944_vm7, %v3886_v48, 0.0  ;;  %vm7945_vm1 = vmmov %vm7942_vm5  ;;  %v3918_v50 = vadd.f32 %v3917_v14, %v3916_v21 }
 0x4fd   : > { %v3921_v51 = vsel %vm7945_vm1, %v3887_v13, 0.0  ;;  %vm7946_vm10 = vmmov %vm7945_vm1  ;;  %v3971_v58 = vsel %vm7945_vm1, %v3902_v41, 0.0 }
 0x4fe   : > { %v3929_v8 = vsel %vm7946_vm10, %v3888_v25, 0.0  ;;  %vm7947_vm12 = vmmov %vm7945_vm1  ;;  %v3920_v28 = vadd.f32 %v3919_v31, %v3918_v50  ;;  %v7960_v25 = vld [vmem:[#allocation66_spill] sm:$0xff] }
 0x4ff   : > { %v3930_v3 = vsel %vm7947_vm12, %v3889_v55, 0.0  ;;  %vm7948_vm9 = vmmov %vm7945_vm1  ;;  %v3851_v55 = vsel %vm3787_vm3, %v7206_v36, %v7960_v25  ;;  %v3911_v36 = vmul.f32 %v7388_v2, %v7938_v34 }
 0x500   : > { %v3932_v20 = vsel %vm7948_vm9, %v3890_v45, 0.0  ;;  %vm7949_vm13 = vmmov %vm7945_vm1  ;;  %v3931_v33 = vadd.f32 %v3930_v3, %v3929_v8  ;;  %v3922_v43 = vadd.f32 %v3921_v51, %v3920_v28  ;;  %v7961_v45 = vld [vmem:[#allocation51_spill] sm:$0xff] }
 0x501   : > { %v3934_v40 = vsel %vm7949_vm13, %v3891_v9, 0.0  ;;  %vm7950_vm15 = vmmov %vm7945_vm1  ;;  %v7962_v9 = vld [vmem:[#allocation69_spill] sm:$0xff] }
 0x502   : > { %v3942_v15 = vsel %vm7950_vm15, %v3892_v39, 0.0  ;;  %vm7951_vm14 = vmmov %vm7945_vm1  ;;  %v3933_v12 = vadd.f32 %v3932_v20, %v3931_v33  ;;  %v3923_v48 = vrot.slane %v3922_v43, 4  ;;  %v3880_v39 = vmul.f32 %v7962_v9, %v7961_v45 }
 0x503   : > { %v3943_v11 = vsel %vm7951_vm14, %v3893_v19, 0.0  ;;  %vm7952_vm4 = vmmov %vm7945_vm1 }
 0x504   : > { %v3945_v1 = vsel %vm7952_vm4, %v3894_v17, 0.0  ;;  %v3944_v7 = vadd.f32 %v3943_v11, %v3942_v15  ;;  %vm7953_vm2 = vmmov %vm7945_vm1  ;;  %v3935_v42 = vadd.f32 %v3934_v40, %v3933_v12  ;;  %v7963_v17 = vld [vmem:[#allocation50_spill] sm:$0xff]  ;;  %v3924_v23 = vadd.f32 %v3923_v48, %v3922_v43 }
 0x505   : > { %v3947_v16 = vsel %vm7953_vm2, %v3895_v49, 0.0  ;;  %vm7954_vm11 = vmmov %vm7945_vm1  ;;  %v7964_v49 = vld [vmem:[#allocation68_spill] sm:$0xff] }
 0x506   : > { %v3955_v47 = vsel %vm7954_vm11, %v3896_v5, 0.0  ;;  %vm7955_vm8 = vmmov %vm7945_vm1  ;;  %v3946_v61 = vadd.f32 %v3945_v1, %v3944_v7  ;;  %v3936_v19 = vrot.slane %v3935_v42, 4  ;;  %v3881_v5 = vmul.f32 %v7964_v49, %v7963_v17 }
 0x507   : > { %v3956_v26 = vsel %vm7955_vm8, %v3897_v30, 0.0  ;;  %vm7956_vm5 = vmmov %vm7945_vm1  ;;  %v7965_v30 = vld [vmem:[#allocation54_spill] sm:$0xff]  ;;  %v3925_v31 = vrot.slane %v3924_v23, 2 }
 0x508   : > { %v3958_v62 = vsel %vm7956_vm5, %v3898_v0, 0.0  ;;  %vm7957_vm6 = vmmov %vm7945_vm1  ;;  %v3957_v10 = vadd.f32 %v3956_v26, %v3955_v47  ;;  %v3948_v13 = vadd.f32 %v3947_v16, %v3946_v61  ;;  %v3882_v53 = vmul.f32 %v3850_v57, %v7965_v30  ;;  %v7966_v0 = vld [vmem:[#allocation56_spill] sm:$0xff] }
 0x509   : > { %v3968_v24 = vsel %vm7957_vm6, %v3900_v38, 0.0  ;;  %vm7958_vm7 = vmmov %vm7945_vm1  ;;  %v3883_v63 = vmul.f32 %v3851_v55, %v7966_v0  ;;  %v3910_v38 = vmul.f32 %v7385_v44, %v7937_v46  ;;  %v3913_v41 = vmul.f32 %v3881_v5, %v7963_v17 }
 0x50a   : > { %v3969_v4 = vsel %vm7958_vm7, %v3901_v32, 0.0  ;;  %v3912_v32 = vmul.f32 %v3880_v39, %v7961_v45  ;;  %v3914_v21 = vmul.f32 %v3882_v53, %v7965_v30  ;;  %v3937_v51 = vadd.f32 %v3936_v19, %v3935_v42  ;;  %vm7967_vm0 = vmmov %vm7945_vm1 }
 0x50b   : > { %v3970_v56 = vadd.f32 %v3969_v4, %v3968_v24  ;;  %v3915_v14 = vmul.f32 %v3883_v63, %v7966_v0  ;;  %v3949_v8 = vrot.slane %v3948_v13, 4  ;;  %v3959_v50 = vadd.f32 %v3958_v62, %v3957_v10  ;;  %vm7968_vm3 = vmmov %vm7967_vm0 }
 0x50c   : > { %v3960_v37 = vsel %vm7967_vm0, %v3899_v18, 0.0  ;;  %v3973_v44 = vsel %vm7968_vm3, %v3903_v6, 0.0  ;;  %vm7969_vm10 = vmmov %vm7967_vm0  ;;  %v3926_v34 = vadd.f32 %v3925_v31, %v3924_v23  ;;  %v3938_v2 = vrot.slane %v3937_v51, 2 }
 0x50d   : > { %v3972_v52 = vadd.f32 %v3971_v58, %v3970_v56  ;;  %v3981_v46 = vsel %vm7969_vm10, %v3904_v35, 0.0  ;;  %v3950_v3 = vadd.f32 %v3949_v8, %v3948_v13  ;;  %v3961_v20 = vadd.f32 %v3960_v37, %v3959_v50  ;;  %vm7970_vm12 = vmmov %vm7967_vm0 }
 0x50e   : > { %v3982_v33 = vsel %vm7970_vm12, %v3905_v29, 0.0  ;;  %vm7971_vm9 = vmmov %vm7967_vm0  ;;  %v3927_v1 = vrot.slane %v3926_v34, 1  ;;  %v3939_v28 = vadd.f32 %v3938_v2, %v3937_v51  ;;  %vm7981_vm7 = vcmask 1041409  }
 0x50f   : > { %v3974_v40 = vadd.f32 %v3973_v44, %v3972_v52  ;;  %v3984_v15 = vsel %vm7971_vm9, %v3906_v60, 0.0  ;;  %vm7972_vm13 = vmmov %vm7967_vm0  ;;  %v3951_v7 = vrot.slane %v3950_v3, 2  ;;  %v3962_v18 = vrot.slane %v3961_v20, 4  ;;  %v7985_v52 = vld [vmem:[#allocation61_spill] sm:$0xff] }
 0x510   : > { %v3986_v11 = vsel %vm7972_vm13, %v3907_v22, 0.0  ;;  %v3983_v47 = vadd.f32 %v3982_v33, %v3981_v46  ;;  %vm7973_vm15 = vmmov %vm7967_vm0  ;;  %v3928_v12 = vadd.f32 %v3927_v1, %v3926_v34  ;;  %v3940_v26 = vrot.slane %v3939_v28, 1 }
 0x511   : > { %v3975_v16 = vrot.slane %v3974_v40, 4  ;;  %v3994_v6 = vsel %vm7973_vm15, %v7416_v27, 0.0  ;;  %vm7974_vm14 = vmmov %vm7967_vm0  ;;  %v3952_v62 = vadd.f32 %v3951_v7, %v3950_v3  ;;  %v3963_v29 = vadd.f32 %v3962_v18, %v3961_v20  ;;  %v7990_v18 = vld [vmem:[#allocation63_spill] sm:$0xff] }
 0x512   : > { %v3995_v35 = vsel %vm7974_vm14, %v7419_v59, 0.0  ;;  %v3985_v60 = vadd.f32 %v3984_v15, %v3983_v47  ;;  %vm7975_vm4 = vmmov %vm7967_vm0  ;;  %v3941_v10 = vadd.f32 %v3940_v26, %v3939_v28  ;;  %v4028_v49 = vmul.f32 0.01, %v3928_v12 }
 0x513   : > { %v3976_v24 = vadd.f32 %v3975_v16, %v3974_v40  ;;  %v3996_v43 = vadd.f32 %v3995_v35, %v3994_v6  ;;  %v3997_v61 = vsel %vm7975_vm4, %v3910_v38, 0.0  ;;  %v3953_v4 = vrot.slane %v3952_v62, 1  ;;  %vm7976_vm2 = vmmov %vm7967_vm0  ;;  %v7987_v40 = vld [vmem:[#allocation60_spill] sm:$0xff] }
 0x514   : > { %v3964_v42 = vrot.slane %v3963_v29, 2  ;;  %v3999_v56 = vsel %vm7976_vm2, %v3911_v36, 0.0  ;;  %v3987_v54 = vadd.f32 %v3986_v11, %v3985_v60  ;;  %vm7977_vm11 = vmmov %vm7967_vm0  ;;  %v4029_v5 = vmul.f32 0.01, %v3941_v10  ;;  %v7982_v36 = vld [vmem:[#allocation59_spill] sm:$0xff] }
 0x515   : > { %v3977_v58 = vrot.slane %v3976_v24, 2  ;;  %v3998_v27 = vadd.f32 %v3997_v61, %v3996_v43  ;;  %v4007_v57 = vsel %vm7977_vm11, %v3912_v32, 0.0  ;;  %v3954_v59 = vadd.f32 %v3953_v4, %v3952_v62  ;;  %vm7978_vm8 = vmmov %vm7967_vm0  ;;  %v7994_v43 = vld [vmem:[#allocation62_spill] sm:$0xff] }
 0x516   : > { %v3965_v48 = vadd.f32 %v3964_v42, %v3963_v29  ;;  %v4008_v13 = vsel %vm7978_vm8, %v3913_v41, 0.0  ;;  %vm7979_vm5 = vmmov %vm7967_vm0  ;;  %v3988_v45 = vrot.slane %v3987_v54, 4  ;;  %v4050_v38 = vsel %vm7981_vm7, %v4029_v5, %v4028_v49 }
 0x517   : > { %v4010_v25 = vsel %vm7979_vm5, %v3914_v21, 0.0  ;;  %v3978_v55 = vadd.f32 %v3977_v58, %v3976_v24  ;;  %v4000_v9 = vadd.f32 %v3999_v56, %v3998_v27  ;;  %v4009_v39 = vadd.f32 %v4008_v13, %v4007_v57  ;;  %vm7980_vm6 = vmmov %vm7967_vm0  ;;  %v7996_v56 = vld [vmem:[#allocation65_spill] sm:$0xff] }
 0x518   : > { %v3966_v19 = vrot.slane %v3965_v48, 1  ;;  %v4012_v17 = vsel %vm7980_vm6, %v3915_v14, 0.0  ;;  %v3989_v53 = vadd.f32 %v3988_v45, %v3987_v54  ;;  %v4030_v22 = vmul.f32 0.01, %v3954_v59  ;;  %v7984_v14 = vld [vmem:[#allocation58_spill] sm:$0xff]  ;;  %vm7988_vm3 = vmmov %vm7981_vm7  ;;  %v1078_v54 = vld [vmem:[%s7773_s6 + $0x20] sm:$0xff] }
 0x519   : > { %v3979_v30 = vrot.slane %v3978_v55, 1  ;;  %v4001_v0 = vrot.slane %v4000_v9, 4  ;;  %v4011_v63 = vadd.f32 %v4010_v25, %v4009_v39  ;;  %v4020_v32 = vmul.f32 %v3928_v12, %v7982_v36  ;;  %v1079_v27 = vld [vmem:[%s7773_s6 + $0x28] sm:$0xff]  ;;  %v1080_v39 = vld [vmem:[%s7773_s6 + $0x30] sm:$0xff]  ;;  %vm8006_vm7 = vmmov %vm7979_vm5 }
 0x51a   : > { %v3967_v23 = vadd.f32 %v3966_v19, %v3965_v48  ;;  %v3990_v21 = vrot.slane %v3989_v53, 2  ;;  %vm7983_vm1 = vcmask 1042434   ;;  %v4021_v37 = vmul.f32 %v3941_v10, %v7984_v14  ;;  %v8000_v45 = vld [vmem:[#allocation64_spill] sm:$0xff]  ;;  %v1081_v19 = vld [vmem:[%s7773_s6 + $0x38] sm:$0xff]  ;;  %s4936_s6 = sshll.u32 %s5890_s0, 7 }
 0x51b   : > { %v3980_v41 = vadd.f32 %v3979_v30, %v3978_v55  ;;  %v4002_v31 = vadd.f32 %v4001_v0, %v4000_v9  ;;  %v4013_v51 = vadd.f32 %v4012_v17, %v4011_v63  ;;  %v4051_v50 = vsel %vm7983_vm1, %v4030_v22, %v4050_v38  ;;  %vm7991_vm12 = vmmov %vm7983_vm1  ;;  %v1086_v0 = vld [vmem:[%s5827_s24 + $0x20] sm:$0xff]  ;;  %v1087_v63 = vld [vmem:[%s5827_s24 + $0x28] sm:$0xff]  ;;  %s7570_s8 = scalar_lea.hbm %s5867_s15, %s4936_s6 }
 0x51c   : > { %v4031_v8 = vmul.f32 0.01, %v3967_v23  ;;  %v4022_v44 = vmul.f32 %v3954_v59, %v7985_v52  ;;  %v3991_v46 = vadd.f32 %v3990_v21, %v3989_v53  ;;  %vm7986_vm0 = vcmask 1043459   ;;  %v1088_v22 = vld [vmem:[%s5827_s24 + $0x30] sm:$0xff]  ;;  %v1089_v38 = vld [vmem:[%s5827_s24 + $0x38] sm:$0xff]  ;;  %vm8007_vm1 = vmmov %vm7979_vm5 }
 0x51d   : > { %v4003_v34 = vrot.slane %v4002_v31, 2  ;;  %v4014_v2 = vrot.slane %v4013_v51, 4  ;;  %v4032_v3 = vmul.f32 0.01, %v3980_v41  ;;  %v4023_v33 = vmul.f32 %v3967_v23, %v7987_v40  ;;  %vm7992_vm9 = vmmov %vm7986_vm0  ;;  %v1061_v14 = vld [vmem:[%s7856_s23 + $0x18] sm:$0xff]  ;;  %v8010_v52 = vld [vmem:[#allocation97_spill] sm:$0xff] }
 0x51e   : > { %v4052_v20 = vsel %vm7986_vm0, %v4031_v8, %v4051_v50  ;;  %v4219_v15 = vsel %vm7988_vm3, %v4021_v37, %v4020_v32  ;;  %v3992_v11 = vrot.slane %v3991_v46, 1  ;;  %vm7989_vm10 = vcmask 1044484   ;;  %v1096_v32 = vld [vmem:[%s7855_s11 + $0x20] sm:$0xff]  ;;  %v1060_v50 = vld [vmem:[%s7856_s23 + $0x10] sm:$0xff]  ;;  %vm8011_vm0 = vmmov %vm8007_vm1 }
 0x51f   : > { %v4004_v1 = vadd.f32 %v4003_v34, %v4002_v31  ;;  %v4015_v28 = vadd.f32 %v4014_v2, %v4013_v51  ;;  %v4053_v7 = vsel %vm7989_vm10, %v4032_v3, %v4052_v20  ;;  %v4024_v16 = vmul.f32 %v3980_v41, %v7990_v18  ;;  %vm7993_vm13 = vmmov %vm7989_vm10  ;;  %v1097_v41 = vld [vmem:[%s7855_s11 + $0x28] sm:$0xff]  ;;  %v1098_v31 = vld [vmem:[%s7855_s11 + $0x30] sm:$0xff] }
 0x520   : > { %v4220_v47 = vsel %vm7991_vm12, %v4022_v44, %v4219_v15  ;;  %v3993_v6 = vadd.f32 %v3992_v11, %v3991_v46  ;;  %vm7995_vm15 = vcmask 1045509   ;;  %vm7998_vm4 = vcmask 1046534   ;;  %v1099_v51 = vld [vmem:[%s7855_s11 + $0x38] sm:$0xff]  ;;  %v8009_v37 = vld [vmem:[#allocation96_spill] sm:$0xff]  ;;  %s5710_s11 = smov [#allocation3]  }
 0x521   : > { %v4005_v35 = vrot.slane %v4004_v1, 1  ;;  %v4016_v12 = vrot.slane %v4015_v28, 2  ;;  %v4221_v26 = vsel %vm7992_vm9, %v4023_v33, %v4220_v47  ;;  %vm7997_vm14 = vmmov %vm7995_vm15  ;;  %v5461_v55 = vpack.c.bf16 %v1079_v27, %v1078_v54  ;;  %v1045_v3 = vld [vmem:[%s8008_s5] sm:$0xff]  ;;  %v1046_v20 = vld [vmem:[%s8008_s5 + $0x8] sm:$0xff]  ;;  %s8017_s5 = sld [smem:[#allocation15_spill]]  ;;  %s5615_s13 = sshll.u32 %s5710_s11, 4  ;;  %s5616_s13 = int_to_ptr.vmem [resolvable:$false] %s5615_s13 }
 0x522   : > { %v4222_v62 = vsel %vm7993_vm13, %v4024_v16, %v4221_v26  ;;  %v4033_v60 = vmul.f32 0.01, %v3993_v6  ;;  %v4025_v61 = vmul.f32 %v3993_v6, %v7994_v43  ;;  %vm7999_vm2 = vmmov %vm7998_vm4  ;;  %vm8001_vm11 = vcmask 1047559   ;;  %v4921_v33 = vld [vmem:[%s7858_s1 + $0x1] ss:$0 sm:$0xff]  ;;  %s8013_s1 = sld [smem:[#allocation14_spill]] }
 0x523   : > { %v4006_v29 = vadd.f32 %v4005_v35, %v4004_v1  ;;  %v4017_v24 = vadd.f32 %v4016_v12, %v4015_v28  ;;  %vm8002_vm8 = vmmov %vm8001_vm11  ;;  %v5464_v5 = vpack.c.bf16 %v1081_v19, %v1080_v39  ;;  %v8003_v30 = vmov 0.0   ;;  %v4924_v47 = vld [vmem:[%s7859_s3 + $0x1] ss:$0 sm:$0xff]  ;;  %s8014_s3 = sld [smem:[#allocation13_spill]] }
 0x524   : > { %v4054_v42 = vsel %vm7995_vm15, %v4033_v60, %v4053_v7  ;;  %v4223_v57 = vsel %vm7997_vm14, %v4025_v61, %v4222_v62  ;;  %vm8004_vm6 = vmmov 0   ;;  %v8005_v53 = vmov 0.0|0.0   ;;  %v4927_v61 = vld [vmem:[%s7861_s30 + $0x1] ss:$0 sm:$0xff]  ;;  %vm8018_vm15 = vmmov %vm8011_vm0 }
 0x525   : > { %v4018_v10 = vrot.slane %v4017_v24, 1  ;;  %v4034_v4 = vmul.f32 0.01, %v4006_v29  ;;  %v4026_v58 = vmul.f32 %v4006_v29, %v7996_v56  ;;  %v5467_v23 = vpack.c.bf16 %v1087_v63, %v1086_v0 }
 0x526   : > { %v5470_v36 = vpack.c.bf16 %v1089_v38, %v1088_v22  ;;  %v5473_v21 = vpack.c.bf16 %v1097_v41, %v1096_v32  ;;  %v5476_v8 = vpack.c.bf16 %v1099_v51, %v1098_v31  ;;  %v3720_v44 = vadd.f32 %v8010_v52, %v8009_v37  ;;  %v1053_v32 = vld [vmem:[%s8016_s4] sm:$0xff]  ;;  %v1054_v41 = vld [vmem:[%s8016_s4 + $0x8] sm:$0xff]  ;;  %v1055_v31 = vld [vmem:[%s8016_s4 + $0x10] sm:$0xff] }
 0x527   : > { %v4019_v59 = vadd.f32 %v4018_v10, %v4017_v24  ;;  %v4055_v48 = vsel %vm7998_vm4, %v4034_v4, %v4054_v42  ;;  %v4224_v13 = vsel %vm7999_vm2, %v4026_v58, %v4223_v57  ;;  %v5479_v46 = vpack.c.bf16 %v1061_v14, %v1060_v50  ;;  %v1056_v51 = vld [vmem:[%s8016_s4 + $0x18] sm:$0xff]  ;;  %v4931_v50 = vld [vmem:[%s8017_s5] ss:$0 sm:$0xff]  ;;  %vm8019_vm4 = vmmov %vm8011_vm0 }
 0x528   : > { %v3722_v34 = vmul.f32 0.01, %v3720_v44  ;;  %vm3721_vm3 = vcmp.ge.f32.partialorder %v3720_v44, 0.0  ;;  %vm8012_vm10 = vcmask 130048   ;;  %v5482_v40 = vpack.c.bf16 %v1046_v20, %v1045_v3 }
 0x529   : > { %v4035_v25 = vmul.f32 0.01, %v4019_v59  ;;  %v4027_v9 = vmul.f32 %v4019_v59, %v8000_v45  ;;  %vm8015_vm9 = vmmov %vm8012_vm10  ;;  %v4929_v0 = vld [vmem:[%s8014_s3] ss:$0 sm:$0xff]  ;;  %s944_s3 = sand.u32 1, %s5665_s16  }
 0x52a   : > { %v3723_v2 = vsel %vm3721_vm3, %v3720_v44, %v3722_v34  ;;  %v4933_v34 = vld [vmem:[#allocation2] ss:$0 sm:$0xff]  ;;  %s4712_s9 = scalar_lea.sflag [#allocation4], %s944_s3 }
 0x52b   : > { %v4056_v17 = vsel %vm8001_vm11, %v4035_v25, %v4055_v48  ;;  %v4225_v49 = vsel %vm8002_vm8, %v4027_v9, %v4224_v13  ;;  %v1048_v25 = vld [vmem:[%s8013_s1] sm:$0xff] }
 0x52c   : > { %5316 = vmatmul.mubr.msk.f32.vlgmr.msra.gmra.mrb[20].mxu1 %vm7979_vm5, %v4056_v17 }
 0x52d   : > { %5462 = vmatpush3.bf16.msra.mxu1 %v5461_v55  ;;  %5326 = vmatprep.mubr.msk.f32.mxu1 %vm8004_vm6, %v8003_v30  ;;  %v1049_v55 = vld [vmem:[%s8013_s1 + $0x8] sm:$0xff] }
 0x52e   : > { %5463 = vmatprep.subr.bf16.mxu1 %v8005_v53  ;;  %v5485_v39 = vpack.c.bf16 %v1049_v55, %v1048_v25 }
 0x531   : > { %5465 = vmatpush3.bf16.msra.mxu1 %v5464_v5 }
 0x532   : > { %5466 = vmatprep.subr.bf16.mxu1 %v8005_v53 }
 0x534   : > { %5327 = vmatmul.mubr.msk.f32.vlgmr.msra.gmra.mrb[22].mxu1 %vm8006_vm7, %v4056_v17  ;;  %v1050_v17 = vld [vmem:[%s8013_s1 + $0x10] sm:$0xff] }
 0x535   : > { %5468 = vmatpush3.bf16.msra.mxu1 %v5467_v23  ;;  %5337 = vmatprep.mubr.msk.f32.mxu1 %vm8004_vm6, %v8003_v30 }
 0x536   : > { %5469 = vmatprep.subr.bf16.mxu1 %v8005_v53 }
 0x539   : > { %5471 = vmatpush3.bf16.msra.mxu1 %v5470_v36 }
 0x53a   : > { %5472 = vmatprep.subr.bf16.mxu1 %v8005_v53 }
 0x53c   : > { %5338 = vmatmul.mubr.msk.f32.vlgmr.msra.gmra.mrb[24].mxu1 %vm8007_vm1, %v4225_v49 }
 0x53d   : > { %5474 = vmatpush3.bf16.msra.mxu1 %v5473_v21  ;;  %5348 = vmatprep.mubr.msk.f32.mxu1 %vm8004_vm6, %v8003_v30  ;;  %v5491_v21 = vpack.c.bf16 %v1054_v41, %v1053_v32 }
 0x53e   : > { %5475 = vmatprep.subr.bf16.mxu1 %v8005_v53 }
 0x541   : > { %5477 = vmatpush3.bf16.msra.mxu1 %v5476_v8  ;;  %v5494_v8 = vpack.c.bf16 %v1056_v51, %v1055_v31 }
 0x542   : > { %5478 = vmatprep.subr.bf16.mxu1 %v8005_v53 }
 0x544   : > { %5349 = vmatmul.mubr.msk.f32.vlgmr.msra.gmra.mrb[26].mxu1 %vm8011_vm0, %v4225_v49  ;;  %v1051_v49 = vld [vmem:[%s8013_s1 + $0x18] sm:$0xff]  ;;  %s4830_s1 = sshll.u32 %s944_s3, 3 }
 0x545   : > { %5480 = vmatpush3.bf16.msra.mxu1 %v5479_v46  ;;  %5355 = vmatprep.mubr.msk.f32.mxu1 %vm8004_vm6, %v8003_v30  ;;  %v5488_v5 = vpack.c.bf16 %v1051_v49, %v1050_v17  ;;  %s946_s5 = scalar_lea.vmem [#allocation3], %s4830_s1  ;;  %s5617_s1 = scalar_lea.vmem %s5616_s13, 256 }
 0x546   : > { %5481 = vmatprep.subr.bf16.mxu1 %v8005_v53  ;;  %s4725_s4 = sshll.u32 %s946_s5, 4  ;;  %s7567_s4 = int_to_ptr.vmem [resolvable:$true] %s4725_s4 }
 0x547   : > { %s5611_s10 = scalar_lea.vmem %s7567_s4, 128  ;;  %p5618_p0 = scmp.lt.s32.totalorder %s7567_s4, %s5616_s13 }
 0x548   : > { %5356 = vmatmul.mubr.msk.f32.vlgmr.msra.gmra.mrb[28].mxu1 %vm8012_vm10, %v3723_v2  ;;  %p5612_p11 = scmp.ne.s32.totalorder %s7567_s4, %s5611_s10  ;;  %p5619_p1 = scmp.lt.s32.totalorder %s5617_s1, %s5611_s10 }
 0x549   : > { %5362 = vmatprep.mubr.msk.f32.mxu1 %vm8004_vm6, %v8003_v30  ;;  %5483 = vmatpush3.bf16.msra.mxu1 %v5482_v40 }
 0x54a   : > { %5484 = vmatprep.subr.bf16.mxu1 %v8005_v53  ;;  %p5613_p12 = pnand %p5612_p11, %p5907_p5  ;;  %p5620_p2 = por %p5619_p1, %p5618_p0 }
 0x54c   : > { %p5614_p13 = pneg %p5613_p12 }
 0x54e   : > { %p5621_p3 = pnand %p5620_p2, %p5614_p13 }
 0x5ff   : > { %v4125_v15 = vpop.f32.mrb[20].mxu1 }
 0x600   : > { %v4126_v11 = vadd.f32 %v4921_v33, %v4125_v15  ;;  %v5317_v1 = vpop.f32.mrb[21].mxu1 }
 0x602   : > { %v4129_v28 = vsub.f32 0.0, %v4126_v11 }
 0x604   : > { %v4130_v7 = vmul.f32 1.442695, %v4129_v28 }
 0x606   : > { %5603 = vpow2.f32 %v4130_v7 }
 0x607   : > { %v4201_v18 = vpop.f32.mrb[22].mxu1 }
 0x608   : > { %v5328_v16 = vpop.f32.mrb[23].mxu1 }
 0x60f   : > { %v4294_v6 = vpop.f32.mrb[24].mxu1 }
 0x610   : > { %v5604_v35 = vpop.eup %5603  ;;  %v4295_v12 = vadd.f32 %v4924_v47, %v4294_v6  ;;  %v5339_v26 = vpop.f32.mrb[25].mxu1 }
 0x611   : > { %v4132_v62 = vadd.f32 1.0, %v5604_v35 }
 0x612   : > { %v4298_v29 = vsub.f32 0.0, %v4295_v12 }
 0x613   : > { %5605 = vrcp.f32 %v4132_v62 }
 0x614   : > { %v4299_v24 = vmul.f32 1.442695, %v4298_v29 }
 0x616   : > { %5607 = vpow2.f32 %v4299_v24 }
 0x617   : > { %v4370_v60 = vpop.f32.mrb[26].mxu1 }
 0x618   : > { %v5350_v43 = vpop.f32.mrb[27].mxu1 }
 0x61b   : > { %v4449_v10 = vpop.f32.mrb[28].mxu1 }
 0x61c   : > { %v4450_v4 = vadd.f32 %v4927_v61, %v4449_v10  ;;  %v5357_v42 = vpop.f32.mrb[29].mxu1 }
 0x61d   : > { %v5606_v56 = vpop.eup %5605 }
 0x61e   : > { %v4453_v58 = vmul.f32 %v5606_v56, %v4450_v4 }
 0x620   : > { %v5608_v54 = vpop.eup %5607 }
 0x621   : > { %v4301_v27 = vadd.f32 1.0, %v5608_v54 }
 0x623   : > { %5609 = vrcp.f32 %v4301_v27 }
 0x62d   : > { %v5610_v57 = vpop.eup %5609 }
 0x62e   : > { %v4454_v59 = vmul.f32 %v5610_v57, %v4453_v58 }
 0x630   : > { %v4455_v48 = vadd.f32 %v4454_v59, %v4201_v18 }
 0x632   : > { %v4456_v13 = vadd.f32 %v4455_v48, %v4370_v60 }
 0x634   : > { %v4457_v45 = vadd.f32 %v4456_v13, %v3723_v2 }
 0x636   : > { %vm4458_vm12 = vcmp.ge.f32.partialorder %v4457_v45, 0.0  ;;  %v4459_v9 = vmul.f32 0.01, %v4457_v45 }
 0x638   : > { %v4460_v19 = vsel %vm4458_vm12, %v4457_v45, %v4459_v9 }
 0x639   : > { %5363 = vmatmul.mubr.msk.f32.vlgmr.msra.gmra.mrb[30].mxu1 %vm8015_vm9, %v4460_v19 }
 0x63a   : > { %5486 = vmatpush3.bf16.msra.mxu1 %v5485_v39  ;;  %5373 = vmatprep.mubr.msk.f32.mxu1 %vm8004_vm6, %v8003_v30 }
 0x63b   : > { %5487 = vmatprep.subr.bf16.mxu1 %v8005_v53 }
 0x63e   : > { %5489 = vmatpush3.bf16.msra.mxu1 %v5488_v5 }
 0x63f   : > { %5490 = vmatprep.subr.bf16.mxu1 %v8005_v53 }
 0x70c   : > { %v4536_v63 = vpop.f32.mrb[30].mxu1 }
 0x70d   : > { %v4537_v23 = vadd.f32 %v4929_v0, %v4536_v63  ;;  %v5364_v22 = vpop.f32.mrb[31].mxu1 }
 0x70f   : > { %vm4540_vm13 = vcmp.ge.f32.partialorder %v4537_v23, 0.0  ;;  %v4541_v38 = vmul.f32 0.01, %v4537_v23 }
 0x711   : > { %v4542_v36 = vsel %vm4540_vm13, %v4537_v23, %v4541_v38 }
 0x712   : > { %5374 = vmatmul.mubr.msk.f32.vlgmr.msra.gmra.mrb[32].mxu1 %vm8018_vm15, %v4542_v36 }
 0x713   : > { %5384 = vmatprep.mubr.msk.f32.mxu1 %vm8004_vm6, %v8003_v30  ;;  %5492 = vmatpush3.bf16.msra.mxu1 %v5491_v21 }
 0x714   : > { %5493 = vmatprep.subr.bf16.mxu1 %v8005_v53 }
 0x717   : > { %5495 = vmatpush3.bf16.msra.mxu1 %v5494_v8 }
 0x7e5   : > { %v4618_v14 = vpop.f32.mrb[32].mxu1 }
 0x7e6   : > { %v4619_v37 = vadd.f32 %v4931_v50, %v4618_v14  ;;  %v5375_v52 = vpop.f32.mrb[33].mxu1 }
 0x7e8   : > { %v4622_v44 = vadd.f32 %v4619_v37, %v4542_v36 }
 0x7ea   : > { %vm4623_vm14 = vcmp.ge.f32.partialorder %v4622_v44, 0.0  ;;  %v4624_v30 = vmul.f32 0.01, %v4622_v44 }
 0x7ec   : > { %v4625_v46 = vsel %vm4623_vm14, %v4622_v44, %v4624_v30 }
 0x7ed   : > { %5385 = vmatmul.mubr.msk.f32.vlgmr.msra.gmra.mrb[34].mxu1 %vm8019_vm4, %v4625_v46 }
 0x8c0   : > { %v4701_v2 = vpop.f32.mrb[34].mxu1 }
 0x8c1   : > { %v4702_v53 = vadd.f32 %v4933_v34, %v4701_v2  ;;  %v5386_v3 = vpop.f32.mrb[35].mxu1 }
 0x8c3   : > { %4707 = vperm.xlu0 %5573, %v4702_v53  }
 0x942   : > { %v4708_v20 = vpop.permute.xlu0 %4707 }
 0x943   : > { %4710 = vst [vmem:[%s946_s5] sm:$0xff] %v4708_v20 }
 0x944   : > { %5624 = shalt.err (!%p5621_p3)
}
 0x945   : > { %s5625_s6 = scalar_lea.hbm %s7570_s8, 128  ;;  %s5629_s0 = scalar_lea.hbm %s5867_s15, 256 }
 0x946   : > { %p5626_p4 = scmp.ne.s32.totalorder %s7570_s8, %s5625_s6  ;;  %p5630_p9 = scmp.lt.u32.totalorder %s7570_s8, %s5867_s15 }
 0x947   : > { %p5631_p10 = scmp.lt.u32.totalorder %s5629_s0, %s5625_s6  ;;  %p5633_p12 = scmp.lt.u32.totalorder %s5625_s6, %s7570_s8 }
 0x948   : > { %p5627_p7 = pnand %p5626_p4, %p5907_p5 }
 0x949   : > { %p5632_p11 = por %p5631_p10, %p5630_p9 }
 0x94a   : > { %p5628_p8 = pneg %p5627_p7 }
 0x94b   : > { %p5634_p0 = por %p5633_p12, %p5632_p11 }
 0x94d   : > { %p5635_p13 = pnand %p5634_p0, %p5628_p8 }
 0x94f   : > { %5638 = shalt.err (!%p5635_p13)
}
 0x950   : > { %5499 = dma.vmem_to_hbm [thread:$0]  (%p5907_p5), %s7567_s4, 128, %s7570_s8, %s4712_s9  }
 0x951 PF: > { %p5505_p1 = scmp.ge.s32.totalorder %s5673_s12, 2  ;;  %s4737_s13 = sand.u32 1, %s5661_s22  }
 0x952   : > { %s4738_s10 = scalar_lea.sflag [#allocation4], %s4737_s13 }
 0x953   : > { %p5502_p2 = pnand %p5505_p1, %p5911_p6 }
 0x955   : > { %5656 = dma.done.wait (!%p5502_p2), %s4738_s10, 128  }
 0x956   : > { %5658 = vsyncadd (!%p5502_p2), %s4738_s10, 4294967168  ;;  %p73_p3 = scmp.ge.s32.totalorder %s5894_s26, 4   ;;  %s8020_s22 = smov %s5665_s16 }
 0x957   : > { %s8021_s16 = smov %s5669_s18  ;;  %s8022_s18 = smov %s5905_s2 }
 0x958   : > { %s8023_s12 = smov %s5894_s26  ;;  %75 = sbr.rel (!%p73_p3) target bundleno = 57 (0x39), region = 208 }
 0x95f   :  { %4743 = vsyncpa [#allocation4], 1 }
 0x960   :  { %4745 = vsyncpa [#allocation4 + $0x1], 1 }

</bundles_post_ra>
